<compile_context>
chip_gen: v6e
topology: v6e:2x2x1
jax: 0.10.0
libtpu: 0.0.40
codegen_flags: <defaults>
</compile_context>

<pallas_src>
import math

import jax
import jax.numpy as jnp
from jax import lax
from jax.experimental import pallas as pl
from jax.experimental.pallas import tpu as pltpu


def _make_fused_decoder_kernel(num_heads, num_layers, batch_block, seq_len, enc_len):
    H = num_heads
    Bb = batch_block
    S = seq_len
    Se = enc_len

    def kernel(x_ref, enc_ref,
               wself_ref, wcross_ref, w1_ref, w2_ref, b1_ref, misc_ref,
               out_ref, x_sc, ctx_sc):
        l = pl.program_id(1)
        BS, D = x_sc.shape          # BS = Bb * S
        hd = D // H

        # First layer of each batch group: load the (embedded + pos-enc) activation into the
        # VMEM-resident scratch; it stays there for all subsequent layers.
        @pl.when(l == 0)
        def _():
            x_sc[...] = x_ref[...]

        x = x_sc[...]               # (Bb*S, D)  f32, layer-resident
        enc = enc_ref[...]          # (Bb*Se, D) bf16

        misc = misc_ref[...]        # (15, D) f32 packed small params
        b_self = misc[0:4]          # q,k,v,o biases (self-attn)
        b_cross = misc[4:8]         # q,k,v,o biases (cross-attn)
        b2 = misc[8:9]              # FFN second bias
        ln_g = misc[9:12]           # 3 layernorm gammas
        ln_b = misc[12:15]          # 3 layernorm betas

        def add_norm(residual, sublayer, idx):
            v = residual + sublayer
            mu = jnp.mean(v, axis=-1, keepdims=True)
            var = jnp.mean((v - mu) ** 2, axis=-1, keepdims=True)
            nv = (v - mu) * lax.rsqrt(var + 1e-5)
            return nv * ln_g[idx:idx + 1] + ln_b[idx:idx + 1]

        # Causal look-ahead mask generated in-kernel (2 iotas + a where, once per layer).
        row = lax.broadcasted_iota(jnp.int32, (S, S), 0)
        col = lax.broadcasted_iota(jnp.int32, (S, S), 1)
        causal_neg = jnp.where(row >= col, 0.0, -1e9).astype(jnp.float32)

        def mha(q_in, kv_bf16, kv_len, w_ref, b_arr, neg_mask):
            # Q/K/V projections on the FLATTENED activation: M = Bb*S (or Bb*Se) -> one big
            # MXU matmul each (1/sqrt(hd) is pre-folded into w_q at init).
            qb = q_in.astype(jnp.bfloat16)
            q = (jnp.dot(qb, w_ref[0], preferred_element_type=jnp.float32)
                 + b_arr[0:1]).astype(jnp.bfloat16)
            k = (jnp.dot(kv_bf16, w_ref[1], preferred_element_type=jnp.float32)
                 + b_arr[1:2]).astype(jnp.bfloat16)
            v = (jnp.dot(kv_bf16, w_ref[2], preferred_element_type=jnp.float32)
                 + b_arr[2:3]).astype(jnp.bfloat16)

            # Per-sequence, per-head score/softmax/PV (static loops: Bb and H are small).
            # Head contexts are staged into a (Bb*S, D) bf16 VMEM scratch so the output
            # projection is ONE K=D matmul instead of H small K=hd dots + f32 accumulates.
            # (Head slices are lane-aligned whenever hd is a multiple of 128.)
            # TODO(synk): for S >= 512 switch the score/softmax/PV block to a flash-style
            # online-softmax over Sk tiles to avoid holding (S,S) f32 in registers.
            for b in range(Bb):
                qs = slice(b * S, (b + 1) * S)
                ks = slice(b * kv_len, (b + 1) * kv_len)
                for h in range(H):
                    hs = slice(h * hd, (h + 1) * hd)
                    s = lax.dot_general(q[qs, hs], k[ks, hs],
                                        (((1,), (1,)), ((), ())),
                                        preferred_element_type=jnp.float32)
                    if neg_mask is not None:
                        s = s + neg_mask
                    s = s - jnp.max(s, axis=-1, keepdims=True)
                    p = jnp.exp(s)
                    # exact reciprocal -> matches torch softmax numerics
                    attn = p * pl.reciprocal(jnp.sum(p, axis=-1, keepdims=True),
                                             approx=False)
                    ctx_sc[qs, hs] = jnp.dot(
                        attn.astype(jnp.bfloat16), v[ks, hs],
                        preferred_element_type=jnp.float32).astype(jnp.bfloat16)

            # Single full-width output projection (fills the 256-wide MXU on v6e/v7x).
            return (jnp.dot(ctx_sc[...], w_ref[3], preferred_element_type=jnp.float32)
                    + b_arr[3:4])

        # --- self-attention (causal look-ahead mask) + AddNorm1 ---
        sa = mha(x, x.astype(jnp.bfloat16), S, wself_ref, b_self, causal_neg)
        x1 = add_norm(x, sa, 0)

        # --- encoder-decoder attention (no padding mask) + AddNorm2 ---
        ca = mha(x1, enc, Se, wcross_ref, b_cross, None)
        x2 = add_norm(x1, ca, 1)

        # --- feed-forward on the flattened (Bb*S, D) activation + AddNorm3 ---
        # TODO(synk): tile w1/w2 over F (extra grid axis) for v7x at D>=1024, F>=4096 so the
        # double-buffered per-layer weight set stays within 64 MiB VMEM.
        h1 = jnp.dot(x2.astype(jnp.bfloat16), w1_ref[...],
                     preferred_element_type=jnp.float32) + b1_ref[...]
        h1 = jnp.maximum(h1, 0.0)
        ff = jnp.dot(h1.astype(jnp.bfloat16), w2_ref[...],
                     preferred_element_type=jnp.float32) + b2
        x3 = add_norm(x2, ff, 2)

        x_sc[...] = x3              # carry activation to next layer (stays in VMEM)

        @pl.when(l == num_layers - 1)
        def _():
            out_ref[...] = x3

    return kernel


def transformer_decoder_forward(ids, enc_out, params, num_heads, num_batch_blocks=1):
    B, S = ids.shape
    D = params['embedding'].shape[1]
    Se = enc_out.shape[1]
    L = params['w_self'].shape[0]
    F = params['w1'].shape[2]

    assert B % num_batch_blocks == 0
    G = num_batch_blocks            # >=2 keeps both v7x TensorCores busy (at the cost of
    Bb = B // G                     # re-streaming the weights G times); default 1.

    # glue: embedding gather + sqrt(D) scale + positional encoding (dropout = identity in eval)
    x = params['embedding'][ids] * jnp.sqrt(jnp.float32(D))
    x = (x + params['pos_enc'][:S][None, :, :]).astype(jnp.float32)
    x = x.reshape(G, Bb * S, D)
    enc_b = enc_out.astype(jnp.bfloat16).reshape(G, Bb * Se, D)

    kernel = _make_fused_decoder_kernel(num_heads, L, Bb, S, Se)

    act = lambda g, l: (g, 0, 0)        # activation blocks: depend on batch group only
    w4 = lambda g, l: (l, 0, 0, 0)      # stacked weights: depend on layer only
    w3 = lambda g, l: (l, 0, 0)

    # VMEM budget: ~85% of physical capacity, capped at 110 MiB.
    #   v7x (64 MiB)  -> ~54 MiB (headroom for compiler scratch / pipelining)
    #   v5e/v6e (128) -> 110 MiB (room to hide per-layer weight DMA)
    try:
        vmem_cap = pltpu.get_tpu_info().vmem_capacity_bytes
    except Exception:  # pragma: no cover - conservative fallback
        vmem_cap = 64 * 1024 * 1024
    vmem_limit = int(min(110 * 2 ** 20, int(vmem_cap * 0.85)))
    # TODO(synk): if profiling shows exposed weight DMA on v5e/v6e, add
    # pipeline_mode=pl.Buffered(3) on the four weight BlockSpecs below.

    grid_spec = pltpu.PrefetchScalarGridSpec(
        num_scalar_prefetch=0,
        grid=(G, L),                         # batch groups parallel, layers sequential
        in_specs=[
            pl.BlockSpec((None, Bb * S, D), act),      # x (f32), DMA'd once per group
            pl.BlockSpec((None, Bb * Se, D), act),     # encoder output (bf16)
            pl.BlockSpec((None, 4, D, D), w4),         # self-attn W (q,k,v,o)  bf16
            pl.BlockSpec((None, 4, D, D), w4),         # cross-attn W           bf16
            pl.BlockSpec((None, D, F), w3),            # ffn w1                 bf16
            pl.BlockSpec((None, F, D), w3),            # ffn w2                 bf16
            pl.BlockSpec((None, 1, F), w3),            # ffn b1                 f32
            pl.BlockSpec((None, 15, D), w3),           # packed biases + LN params f32
        ],
        out_specs=pl.BlockSpec((None, Bb * S, D), act),
        scratch_shapes=[pltpu.VMEM((Bb * S, D), jnp.float32),    # layer-resident activation
                        pltpu.VMEM((Bb * S, D), jnp.bfloat16)],  # attention context staging
    )
    out = pl.pallas_call(
        kernel,
        out_shape=jax.ShapeDtypeStruct((G, Bb * S, D), jnp.float32),
        grid_spec=grid_spec,
        compiler_params=pltpu.CompilerParams(
            dimension_semantics=("parallel", "arbitrary"),
            vmem_limit_bytes=vmem_limit),
    )(x, enc_b,
      params['w_self'], params['w_cross'],
      params['w1'], params['w2'], params['b1'], params['misc'])
    return out.reshape(B, S, D)


def init_params(key, num_layers, model_dim, ffn_dim, vocab, max_seq_len, num_heads):
    D, F, L = model_dim, ffn_dim, num_layers
    keys = jax.random.split(key, 1 + L)
    params = {}
    params['embedding'] = jax.random.normal(keys[0], (vocab, D), jnp.float32) * 0.02

    # sinusoidal positional encoding (matches create_positional_encoding)
    position = jnp.arange(max_seq_len, dtype=jnp.float32)[:, None]
    div_term = jnp.exp(jnp.arange(0, D, 2, dtype=jnp.float32) * (-math.log(10000.0) / D))
    pe = jnp.zeros((max_seq_len, D), jnp.float32)
    pe = pe.at[:, 0::2].set(jnp.sin(position * div_term))
    pe = pe.at[:, 1::2].set(jnp.cos(position * div_term))
    params['pos_enc'] = pe

    s_d = 1.0 / math.sqrt(D)
    s_f = 1.0 / math.sqrt(F)
    qscale = 1.0 / math.sqrt(D // num_heads)   # folded into Q projection (bias is zero)

    w_self, w_cross, w1, w2 = [], [], [], []
    for l in range(L):
        lk = jax.random.split(keys[1 + l], 4)
        ws = jax.random.uniform(lk[0], (4, D, D), jnp.float32, -s_d, s_d)
        wc = jax.random.uniform(lk[1], (4, D, D), jnp.float32, -s_d, s_d)
        ws = ws.at[0].multiply(qscale)
        wc = wc.at[0].multiply(qscale)
        w_self.append(ws)
        w_cross.append(wc)
        w1.append(jax.random.uniform(lk[2], (D, F), jnp.float32, -s_d, s_d))
        w2.append(jax.random.uniform(lk[3], (F, D), jnp.float32, -s_f, s_f))

    params['w_self'] = jnp.stack(w_self).astype(jnp.bfloat16)    # (L, 4, D, D)
    params['w_cross'] = jnp.stack(w_cross).astype(jnp.bfloat16)  # (L, 4, D, D)
    params['w1'] = jnp.stack(w1).astype(jnp.bfloat16)            # (L, D, F)
    params['w2'] = jnp.stack(w2).astype(jnp.bfloat16)            # (L, F, D)
    params['b1'] = jnp.zeros((L, 1, F), jnp.float32)

    # Packed small per-layer f32 params (single input instead of six):
    #   rows 0-3: b_self(q,k,v,o)  4-7: b_cross(q,k,v,o)  8: ffn b2
    #   rows 9-11: layernorm gammas  12-14: layernorm betas
    misc = jnp.zeros((L, 15, D), jnp.float32)
    misc = misc.at[:, 9:12, :].set(1.0)   # gammas = 1
    params['misc'] = misc
    return params


if __name__ == "__main__":
    num_layers, model_dim, num_heads, ffn_dim = 2, 32, 4, 64
    vocab, max_seq_len = 50, 16
    B, S, Se = 2, 8, 8

    key = jax.random.PRNGKey(0)
    k_param, k_ids, k_enc = jax.random.split(key, 3)
    params = init_params(k_param, num_layers, model_dim, ffn_dim, vocab, max_seq_len, num_heads)
    ids = jax.random.randint(k_ids, (B, S), 0, vocab)
    enc_out = jax.random.normal(k_enc, (B, Se, model_dim), jnp.float32)

    out = transformer_decoder_forward(ids, enc_out, params, num_heads)
    out = jax.block_until_ready(out)
    assert out.shape == (B, S, model_dim)
    assert bool(jnp.all(jnp.isfinite(out)))
    print("KERNEL_OK")
</pallas_src>

<mosaic_0001>
module attributes {stable_mosaic.version = 11 : i64} {
  func.func @kernel(%arg0: i32, %arg1: i32, %arg2: memref<1x16x32xf32, #tpu.memory_space<vmem>>, %arg3: memref<1x16x32xbf16, #tpu.memory_space<vmem>>, %arg4: memref<1x4x32x32xbf16, #tpu.memory_space<vmem>>, %arg5: memref<1x4x32x32xbf16, #tpu.memory_space<vmem>>, %arg6: memref<1x32x64xbf16, #tpu.memory_space<vmem>>, %arg7: memref<1x64x32xbf16, #tpu.memory_space<vmem>>, %arg8: memref<1x1x64xf32, #tpu.memory_space<vmem>>, %arg9: memref<1x15x32xf32, #tpu.memory_space<vmem>>, %arg10: memref<1x16x32xf32, #tpu.memory_space<vmem>>, %arg11: memref<16x32xf32, #tpu.memory_space<vmem>>, %arg12: memref<16x32xbf16, #tpu.memory_space<vmem>>) attributes {dimension_semantics = [#tpu.dimension_semantics<parallel>, #tpu.dimension_semantics<arbitrary>], iteration_bounds = array<i64: 1, 2>, scalar_prefetch = 0 : i64, scratch_operands = 2 : i64, tpu.core_type = #tpu.core_type<tc>, window_params = [{transform_indices = @transform_0, window_bounds = array<i64: 1, 16, 32>}, {transform_indices = @transform_1, window_bounds = array<i64: 1, 16, 32>}, {transform_indices = @transform_2, window_bounds = array<i64: 1, 4, 32, 32>}, {transform_indices = @transform_3, window_bounds = array<i64: 1, 4, 32, 32>}, {transform_indices = @transform_4, window_bounds = array<i64: 1, 32, 64>}, {transform_indices = @transform_5, window_bounds = array<i64: 1, 64, 32>}, {transform_indices = @transform_6, window_bounds = array<i64: 1, 1, 64>}, {transform_indices = @transform_7, window_bounds = array<i64: 1, 15, 32>}, {transform_indices = @transform_8, window_bounds = array<i64: 1, 16, 32>}]} {
    %c0_i32 = arith.constant 0 : i32
    %0 = arith.cmpi eq, %arg1, %c0_i32 : i32
    %1 = arith.extui %0 : i1 to i32
    %c0_i32_0 = arith.constant 0 : i32
    %2 = arith.cmpi ne, %1, %c0_i32_0 : i32
    scf.if %2 {
      %c0_173 = arith.constant 0 : index
      %c0_174 = arith.constant 0 : index
      %c0_175 = arith.constant 0 : index
      %469 = vector.load %arg2[%c0_173, %c0_174, %c0_175] : memref<1x16x32xf32, #tpu.memory_space<vmem>>, vector<1x16x32xf32>
      %470 = vector.shape_cast %469 : vector<1x16x32xf32> to vector<16x32xf32>
      %c0_176 = arith.constant 0 : index
      %c0_177 = arith.constant 0 : index
      %471 = vector.load %arg11[%c0_176, %c0_177] : memref<16x32xf32, #tpu.memory_space<vmem>>, vector<16x32xf32>
      tpu.vector_store %arg11[%c0_176, %c0_177], %470 {strides = array<i32>} : memref<16x32xf32, #tpu.memory_space<vmem>>, vector<16x32xf32>,
    } else {
    }
    %c0 = arith.constant 0 : index
    %c0_1 = arith.constant 0 : index
    %3 = vector.load %arg11[%c0, %c0_1] : memref<16x32xf32, #tpu.memory_space<vmem>>, vector<16x32xf32>
    %c0_2 = arith.constant 0 : index
    %c0_3 = arith.constant 0 : index
    %c0_4 = arith.constant 0 : index
    %4 = vector.load %arg3[%c0_2, %c0_3, %c0_4] : memref<1x16x32xbf16, #tpu.memory_space<vmem>>, vector<1x16x32xbf16>
    %5 = vector.shape_cast %4 : vector<1x16x32xbf16> to vector<16x32xbf16>
    %c0_5 = arith.constant 0 : index
    %c0_6 = arith.constant 0 : index
    %c0_7 = arith.constant 0 : index
    %6 = vector.load %arg9[%c0_5, %c0_6, %c0_7] : memref<1x15x32xf32, #tpu.memory_space<vmem>>, vector<1x15x32xf32>
    %7 = vector.shape_cast %6 : vector<1x15x32xf32> to vector<15x32xf32>
    %8 = vector.extract_strided_slice %7 {offsets = [0, 0], sizes = [4, 32], strides = [1, 1]} : vector<15x32xf32> to vector<4x32xf32>
    %9 = vector.extract_strided_slice %7 {offsets = [4, 0], sizes = [4, 32], strides = [1, 1]} : vector<15x32xf32> to vector<4x32xf32>
    %10 = vector.extract_strided_slice %7 {offsets = [8, 0], sizes = [1, 32], strides = [1, 1]} : vector<15x32xf32> to vector<1x32xf32>
    %11 = vector.extract_strided_slice %7 {offsets = [9, 0], sizes = [3, 32], strides = [1, 1]} : vector<15x32xf32> to vector<3x32xf32>
    %12 = vector.extract_strided_slice %7 {offsets = [12, 0], sizes = [3, 32], strides = [1, 1]} : vector<15x32xf32> to vector<3x32xf32>
    %13 = tpu.iota {dimensions = array<i32: 0>} : vector<8x8xi32>
    %14 = tpu.iota {dimensions = array<i32: 1>} : vector<8x8xi32>
    %15 = arith.cmpi sge, %13, %14 : vector<8x8xi32>
    %cst = arith.constant 0.000000e+00 : f32
    %cst_8 = arith.constant -1.000000e+09 : f32
    %16 = vector.broadcast %cst : f32 to vector<8x8xf32>
    %17 = vector.broadcast %cst_8 : f32 to vector<8x8xf32>
    %18 = arith.select %15, %16, %17 : vector<8x8xi1>, vector<8x8xf32>
    %19 = arith.truncf %3 : vector<16x32xf32> to vector<16x32xbf16>
    %20 = arith.truncf %3 : vector<16x32xf32> to vector<16x32xbf16>
    %c0_9 = arith.constant 0 : index
    %c0_10 = arith.constant 0 : index
    %c0_11 = arith.constant 0 : index
    %c0_12 = arith.constant 0 : index
    %21 = vector.load %arg4[%c0_9, %c0_10, %c0_11, %c0_12] : memref<1x4x32x32xbf16, #tpu.memory_space<vmem>>, vector<1x1x32x32xbf16>
    %22 = vector.shape_cast %21 : vector<1x1x32x32xbf16> to vector<32x32xbf16>
    %cst_13 = arith.constant dense<0.000000e+00> : vector<16x32xf32>
    %23 = tpu.matmul %20, %22, %cst_13 {dimension_numbers = #tpu.dot_dimension_numbers<[1], [0], [0], [1], [0, 0, 1, 1], [], []>} : vector<16x32xbf16>, vector<32x32xbf16>, vector<16x32xf32> -> vector<16x32xf32>
    %24 = vector.extract_strided_slice %8 {offsets = [0, 0], sizes = [1, 32], strides = [1, 1]} : vector<4x32xf32> to vector<1x32xf32>
    %25 = vector.broadcast %24 : vector<1x32xf32> to vector<16x32xf32>
    %26 = arith.addf %23, %25 : vector<16x32xf32>
    %27 = arith.truncf %26 : vector<16x32xf32> to vector<16x32xbf16>
    %c0_14 = arith.constant 0 : index
    %c1 = arith.constant 1 : index
    %c0_15 = arith.constant 0 : index
    %c0_16 = arith.constant 0 : index
    %28 = vector.load %arg4[%c0_14, %c1, %c0_15, %c0_16] : memref<1x4x32x32xbf16, #tpu.memory_space<vmem>>, vector<1x1x32x32xbf16>
    %29 = vector.shape_cast %28 : vector<1x1x32x32xbf16> to vector<32x32xbf16>
    %cst_17 = arith.constant dense<0.000000e+00> : vector<16x32xf32>
    %30 = tpu.matmul %19, %29, %cst_17 {dimension_numbers = #tpu.dot_dimension_numbers<[1], [0], [0], [1], [0, 0, 1, 1], [], []>} : vector<16x32xbf16>, vector<32x32xbf16>, vector<16x32xf32> -> vector<16x32xf32>
    %31 = vector.extract_strided_slice %8 {offsets = [1, 0], sizes = [1, 32], strides = [1, 1]} : vector<4x32xf32> to vector<1x32xf32>
    %32 = vector.broadcast %31 : vector<1x32xf32> to vector<16x32xf32>
    %33 = arith.addf %30, %32 : vector<16x32xf32>
    %34 = arith.truncf %33 : vector<16x32xf32> to vector<16x32xbf16>
    %c0_18 = arith.constant 0 : index
    %c2 = arith.constant 2 : index
    %c0_19 = arith.constant 0 : index
    %c0_20 = arith.constant 0 : index
    %35 = vector.load %arg4[%c0_18, %c2, %c0_19, %c0_20] : memref<1x4x32x32xbf16, #tpu.memory_space<vmem>>, vector<1x1x32x32xbf16>
    %36 = vector.shape_cast %35 : vector<1x1x32x32xbf16> to vector<32x32xbf16>
    %cst_21 = arith.constant dense<0.000000e+00> : vector<16x32xf32>
    %37 = tpu.matmul %19, %36, %cst_21 {dimension_numbers = #tpu.dot_dimension_numbers<[1], [0], [0], [1], [0, 0, 1, 1], [], []>} : vector<16x32xbf16>, vector<32x32xbf16>, vector<16x32xf32> -> vector<16x32xf32>
    %38 = vector.extract_strided_slice %8 {offsets = [2, 0], sizes = [1, 32], strides = [1, 1]} : vector<4x32xf32> to vector<1x32xf32>
    %39 = vector.broadcast %38 : vector<1x32xf32> to vector<16x32xf32>
    %40 = arith.addf %37, %39 : vector<16x32xf32>
    %41 = arith.truncf %40 : vector<16x32xf32> to vector<16x32xbf16>
    %42 = vector.extract_strided_slice %27 {offsets = [0, 0], sizes = [8, 8], strides = [1, 1]} : vector<16x32xbf16> to vector<8x8xbf16>
    %43 = vector.extract_strided_slice %34 {offsets = [0, 0], sizes = [8, 8], strides = [1, 1]} : vector<16x32xbf16> to vector<8x8xbf16>
    %cst_22 = arith.constant dense<0.000000e+00> : vector<8x8xf32>
    %44 = tpu.matmul %42, %43, %cst_22 {dimension_numbers = #tpu.dot_dimension_numbers<[1], [1], [0], [0], [0, 0, 1, 0], [], []>} : vector<8x8xbf16>, vector<8x8xbf16>, vector<8x8xf32> -> vector<8x8xf32>
    %45 = arith.addf %44, %18 : vector<8x8xf32>
    %cst_23 = arith.constant dense<0xFF800000> : vector<8xf32>
    %46 = vector.multi_reduction <maximumf>, %45, %cst_23 [1] : vector<8x8xf32> to vector<8xf32>
    %47 = vector.shape_cast %46 : vector<8xf32> to vector<8x1xf32>
    %48 = vector.broadcast %47 : vector<8x1xf32> to vector<8x8xf32>
    %49 = arith.subf %45, %48 : vector<8x8xf32>
    %50 = math.exp %49 : vector<8x8xf32>
    %cst_24 = arith.constant dense<0.000000e+00> : vector<8xf32>
    %51 = vector.multi_reduction <add>, %50, %cst_24 [1] : vector<8x8xf32> to vector<8xf32>
    %52 = vector.shape_cast %51 : vector<8xf32> to vector<8x1xf32>
    %53 = tpu.reciprocal %52 : vector<8x1xf32> -> vector<8x1xf32>
    %54 = vector.broadcast %53 : vector<8x1xf32> to vector<8x8xf32>
    %55 = arith.mulf %50, %54 : vector<8x8xf32>
    %56 = arith.truncf %55 : vector<8x8xf32> to vector<8x8xbf16>
    %57 = vector.extract_strided_slice %41 {offsets = [0, 0], sizes = [8, 8], strides = [1, 1]} : vector<16x32xbf16> to vector<8x8xbf16>
    %cst_25 = arith.constant dense<0.000000e+00> : vector<8x8xf32>
    %58 = tpu.matmul %56, %57, %cst_25 {dimension_numbers = #tpu.dot_dimension_numbers<[1], [0], [0], [1], [0, 0, 1, 1], [], []>} : vector<8x8xbf16>, vector<8x8xbf16>, vector<8x8xf32> -> vector<8x8xf32>
    %59 = arith.truncf %58 : vector<8x8xf32> to vector<8x8xbf16>
    %c0_26 = arith.constant 0 : index
    %c0_27 = arith.constant 0 : index
    %60 = vector.load %arg12[%c0_26, %c0_27] : memref<16x32xbf16, #tpu.memory_space<vmem>>, vector<8x8xbf16>
    tpu.vector_store %arg12[%c0_26, %c0_27], %59 {strides = array<i32>} : memref<16x32xbf16, #tpu.memory_space<vmem>>, vector<8x8xbf16>,
    %61 = vector.extract_strided_slice %27 {offsets = [0, 8], sizes = [8, 8], strides = [1, 1]} : vector<16x32xbf16> to vector<8x8xbf16>
    %62 = vector.extract_strided_slice %34 {offsets = [0, 8], sizes = [8, 8], strides = [1, 1]} : vector<16x32xbf16> to vector<8x8xbf16>
    %cst_28 = arith.constant dense<0.000000e+00> : vector<8x8xf32>
    %63 = tpu.matmul %61, %62, %cst_28 {dimension_numbers = #tpu.dot_dimension_numbers<[1], [1], [0], [0], [0, 0, 1, 0], [], []>} : vector<8x8xbf16>, vector<8x8xbf16>, vector<8x8xf32> -> vector<8x8xf32>
    %64 = arith.addf %63, %18 : vector<8x8xf32>
    %cst_29 = arith.constant dense<0xFF800000> : vector<8xf32>
    %65 = vector.multi_reduction <maximumf>, %64, %cst_29 [1] : vector<8x8xf32> to vector<8xf32>
    %66 = vector.shape_cast %65 : vector<8xf32> to vector<8x1xf32>
    %67 = vector.broadcast %66 : vector<8x1xf32> to vector<8x8xf32>
    %68 = arith.subf %64, %67 : vector<8x8xf32>
    %69 = math.exp %68 : vector<8x8xf32>
    %cst_30 = arith.constant dense<0.000000e+00> : vector<8xf32>
    %70 = vector.multi_reduction <add>, %69, %cst_30 [1] : vector<8x8xf32> to vector<8xf32>
    %71 = vector.shape_cast %70 : vector<8xf32> to vector<8x1xf32>
    %72 = tpu.reciprocal %71 : vector<8x1xf32> -> vector<8x1xf32>
    %73 = vector.broadcast %72 : vector<8x1xf32> to vector<8x8xf32>
    %74 = arith.mulf %69, %73 : vector<8x8xf32>
    %75 = arith.truncf %74 : vector<8x8xf32> to vector<8x8xbf16>
    %76 = vector.extract_strided_slice %41 {offsets = [0, 8], sizes = [8, 8], strides = [1, 1]} : vector<16x32xbf16> to vector<8x8xbf16>
    %cst_31 = arith.constant dense<0.000000e+00> : vector<8x8xf32>
    %77 = tpu.matmul %75, %76, %cst_31 {dimension_numbers = #tpu.dot_dimension_numbers<[1], [0], [0], [1], [0, 0, 1, 1], [], []>} : vector<8x8xbf16>, vector<8x8xbf16>, vector<8x8xf32> -> vector<8x8xf32>
    %78 = arith.truncf %77 : vector<8x8xf32> to vector<8x8xbf16>
    %c0_32 = arith.constant 0 : index
    %c8 = arith.constant 8 : index
    %79 = vector.load %arg12[%c0_32, %c8] : memref<16x32xbf16, #tpu.memory_space<vmem>>, vector<8x8xbf16>
    tpu.vector_store %arg12[%c0_32, %c8], %78 {strides = array<i32>} : memref<16x32xbf16, #tpu.memory_space<vmem>>, vector<8x8xbf16>,
    %80 = vector.extract_strided_slice %27 {offsets = [0, 16], sizes = [8, 8], strides = [1, 1]} : vector<16x32xbf16> to vector<8x8xbf16>
    %81 = vector.extract_strided_slice %34 {offsets = [0, 16], sizes = [8, 8], strides = [1, 1]} : vector<16x32xbf16> to vector<8x8xbf16>
    %cst_33 = arith.constant dense<0.000000e+00> : vector<8x8xf32>
    %82 = tpu.matmul %80, %81, %cst_33 {dimension_numbers = #tpu.dot_dimension_numbers<[1], [1], [0], [0], [0, 0, 1, 0], [], []>} : vector<8x8xbf16>, vector<8x8xbf16>, vector<8x8xf32> -> vector<8x8xf32>
    %83 = arith.addf %82, %18 : vector<8x8xf32>
    %cst_34 = arith.constant dense<0xFF800000> : vector<8xf32>
    %84 = vector.multi_reduction <maximumf>, %83, %cst_34 [1] : vector<8x8xf32> to vector<8xf32>
    %85 = vector.shape_cast %84 : vector<8xf32> to vector<8x1xf32>
    %86 = vector.broadcast %85 : vector<8x1xf32> to vector<8x8xf32>
    %87 = arith.subf %83, %86 : vector<8x8xf32>
    %88 = math.exp %87 : vector<8x8xf32>
    %cst_35 = arith.constant dense<0.000000e+00> : vector<8xf32>
    %89 = vector.multi_reduction <add>, %88, %cst_35 [1] : vector<8x8xf32> to vector<8xf32>
    %90 = vector.shape_cast %89 : vector<8xf32> to vector<8x1xf32>
    %91 = tpu.reciprocal %90 : vector<8x1xf32> -> vector<8x1xf32>
    %92 = vector.broadcast %91 : vector<8x1xf32> to vector<8x8xf32>
    %93 = arith.mulf %88, %92 : vector<8x8xf32>
    %94 = arith.truncf %93 : vector<8x8xf32> to vector<8x8xbf16>
    %95 = vector.extract_strided_slice %41 {offsets = [0, 16], sizes = [8, 8], strides = [1, 1]} : vector<16x32xbf16> to vector<8x8xbf16>
    %cst_36 = arith.constant dense<0.000000e+00> : vector<8x8xf32>
    %96 = tpu.matmul %94, %95, %cst_36 {dimension_numbers = #tpu.dot_dimension_numbers<[1], [0], [0], [1], [0, 0, 1, 1], [], []>} : vector<8x8xbf16>, vector<8x8xbf16>, vector<8x8xf32> -> vector<8x8xf32>
    %97 = arith.truncf %96 : vector<8x8xf32> to vector<8x8xbf16>
    %c0_37 = arith.constant 0 : index
    %c16 = arith.constant 16 : index
    %98 = vector.load %arg12[%c0_37, %c16] : memref<16x32xbf16, #tpu.memory_space<vmem>>, vector<8x8xbf16>
    tpu.vector_store %arg12[%c0_37, %c16], %97 {strides = array<i32>} : memref<16x32xbf16, #tpu.memory_space<vmem>>, vector<8x8xbf16>,
    %99 = vector.extract_strided_slice %27 {offsets = [0, 24], sizes = [8, 8], strides = [1, 1]} : vector<16x32xbf16> to vector<8x8xbf16>
    %100 = vector.extract_strided_slice %34 {offsets = [0, 24], sizes = [8, 8], strides = [1, 1]} : vector<16x32xbf16> to vector<8x8xbf16>
    %cst_38 = arith.constant dense<0.000000e+00> : vector<8x8xf32>
    %101 = tpu.matmul %99, %100, %cst_38 {dimension_numbers = #tpu.dot_dimension_numbers<[1], [1], [0], [0], [0, 0, 1, 0], [], []>} : vector<8x8xbf16>, vector<8x8xbf16>, vector<8x8xf32> -> vector<8x8xf32>
    %102 = arith.addf %101, %18 : vector<8x8xf32>
    %cst_39 = arith.constant dense<0xFF800000> : vector<8xf32>
    %103 = vector.multi_reduction <maximumf>, %102, %cst_39 [1] : vector<8x8xf32> to vector<8xf32>
    %104 = vector.shape_cast %103 : vector<8xf32> to vector<8x1xf32>
    %105 = vector.broadcast %104 : vector<8x1xf32> to vector<8x8xf32>
    %106 = arith.subf %102, %105 : vector<8x8xf32>
    %107 = math.exp %106 : vector<8x8xf32>
    %cst_40 = arith.constant dense<0.000000e+00> : vector<8xf32>
    %108 = vector.multi_reduction <add>, %107, %cst_40 [1] : vector<8x8xf32> to vector<8xf32>
    %109 = vector.shape_cast %108 : vector<8xf32> to vector<8x1xf32>
    %110 = tpu.reciprocal %109 : vector<8x1xf32> -> vector<8x1xf32>
    %111 = vector.broadcast %110 : vector<8x1xf32> to vector<8x8xf32>
    %112 = arith.mulf %107, %111 : vector<8x8xf32>
    %113 = arith.truncf %112 : vector<8x8xf32> to vector<8x8xbf16>
    %114 = vector.extract_strided_slice %41 {offsets = [0, 24], sizes = [8, 8], strides = [1, 1]} : vector<16x32xbf16> to vector<8x8xbf16>
    %cst_41 = arith.constant dense<0.000000e+00> : vector<8x8xf32>
    %115 = tpu.matmul %113, %114, %cst_41 {dimension_numbers = #tpu.dot_dimension_numbers<[1], [0], [0], [1], [0, 0, 1, 1], [], []>} : vector<8x8xbf16>, vector<8x8xbf16>, vector<8x8xf32> -> vector<8x8xf32>
    %116 = arith.truncf %115 : vector<8x8xf32> to vector<8x8xbf16>
    %c0_42 = arith.constant 0 : index
    %c24 = arith.constant 24 : index
    %117 = vector.load %arg12[%c0_42, %c24] : memref<16x32xbf16, #tpu.memory_space<vmem>>, vector<8x8xbf16>
    tpu.vector_store %arg12[%c0_42, %c24], %116 {strides = array<i32>} : memref<16x32xbf16, #tpu.memory_space<vmem>>, vector<8x8xbf16>,
    %118 = vector.extract_strided_slice %27 {offsets = [8, 0], sizes = [8, 8], strides = [1, 1]} : vector<16x32xbf16> to vector<8x8xbf16>
    %119 = vector.extract_strided_slice %34 {offsets = [8, 0], sizes = [8, 8], strides = [1, 1]} : vector<16x32xbf16> to vector<8x8xbf16>
    %cst_43 = arith.constant dense<0.000000e+00> : vector<8x8xf32>
    %120 = tpu.matmul %118, %119, %cst_43 {dimension_numbers = #tpu.dot_dimension_numbers<[1], [1], [0], [0], [0, 0, 1, 0], [], []>} : vector<8x8xbf16>, vector<8x8xbf16>, vector<8x8xf32> -> vector<8x8xf32>
    %121 = arith.addf %120, %18 : vector<8x8xf32>
    %cst_44 = arith.constant dense<0xFF800000> : vector<8xf32>
    %122 = vector.multi_reduction <maximumf>, %121, %cst_44 [1] : vector<8x8xf32> to vector<8xf32>
    %123 = vector.shape_cast %122 : vector<8xf32> to vector<8x1xf32>
    %124 = vector.broadcast %123 : vector<8x1xf32> to vector<8x8xf32>
    %125 = arith.subf %121, %124 : vector<8x8xf32>
    %126 = math.exp %125 : vector<8x8xf32>
    %cst_45 = arith.constant dense<0.000000e+00> : vector<8xf32>
    %127 = vector.multi_reduction <add>, %126, %cst_45 [1] : vector<8x8xf32> to vector<8xf32>
    %128 = vector.shape_cast %127 : vector<8xf32> to vector<8x1xf32>
    %129 = tpu.reciprocal %128 : vector<8x1xf32> -> vector<8x1xf32>
    %130 = vector.broadcast %129 : vector<8x1xf32> to vector<8x8xf32>
    %131 = arith.mulf %126, %130 : vector<8x8xf32>
    %132 = arith.truncf %131 : vector<8x8xf32> to vector<8x8xbf16>
    %133 = vector.extract_strided_slice %41 {offsets = [8, 0], sizes = [8, 8], strides = [1, 1]} : vector<16x32xbf16> to vector<8x8xbf16>
    %cst_46 = arith.constant dense<0.000000e+00> : vector<8x8xf32>
    %134 = tpu.matmul %132, %133, %cst_46 {dimension_numbers = #tpu.dot_dimension_numbers<[1], [0], [0], [1], [0, 0, 1, 1], [], []>} : vector<8x8xbf16>, vector<8x8xbf16>, vector<8x8xf32> -> vector<8x8xf32>
    %135 = arith.truncf %134 : vector<8x8xf32> to vector<8x8xbf16>
    %c8_47 = arith.constant 8 : index
    %c0_48 = arith.constant 0 : index
    %136 = vector.load %arg12[%c8_47, %c0_48] : memref<16x32xbf16, #tpu.memory_space<vmem>>, vector<8x8xbf16>
    tpu.vector_store %arg12[%c8_47, %c0_48], %135 {strides = array<i32>} : memref<16x32xbf16, #tpu.memory_space<vmem>>, vector<8x8xbf16>,
    %137 = vector.extract_strided_slice %27 {offsets = [8, 8], sizes = [8, 8], strides = [1, 1]} : vector<16x32xbf16> to vector<8x8xbf16>
    %138 = vector.extract_strided_slice %34 {offsets = [8, 8], sizes = [8, 8], strides = [1, 1]} : vector<16x32xbf16> to vector<8x8xbf16>
    %cst_49 = arith.constant dense<0.000000e+00> : vector<8x8xf32>
    %139 = tpu.matmul %137, %138, %cst_49 {dimension_numbers = #tpu.dot_dimension_numbers<[1], [1], [0], [0], [0, 0, 1, 0], [], []>} : vector<8x8xbf16>, vector<8x8xbf16>, vector<8x8xf32> -> vector<8x8xf32>
    %140 = arith.addf %139, %18 : vector<8x8xf32>
    %cst_50 = arith.constant dense<0xFF800000> : vector<8xf32>
    %141 = vector.multi_reduction <maximumf>, %140, %cst_50 [1] : vector<8x8xf32> to vector<8xf32>
    %142 = vector.shape_cast %141 : vector<8xf32> to vector<8x1xf32>
    %143 = vector.broadcast %142 : vector<8x1xf32> to vector<8x8xf32>
    %144 = arith.subf %140, %143 : vector<8x8xf32>
    %145 = math.exp %144 : vector<8x8xf32>
    %cst_51 = arith.constant dense<0.000000e+00> : vector<8xf32>
    %146 = vector.multi_reduction <add>, %145, %cst_51 [1] : vector<8x8xf32> to vector<8xf32>
    %147 = vector.shape_cast %146 : vector<8xf32> to vector<8x1xf32>
    %148 = tpu.reciprocal %147 : vector<8x1xf32> -> vector<8x1xf32>
    %149 = vector.broadcast %148 : vector<8x1xf32> to vector<8x8xf32>
    %150 = arith.mulf %145, %149 : vector<8x8xf32>
    %151 = arith.truncf %150 : vector<8x8xf32> to vector<8x8xbf16>
    %152 = vector.extract_strided_slice %41 {offsets = [8, 8], sizes = [8, 8], strides = [1, 1]} : vector<16x32xbf16> to vector<8x8xbf16>
    %cst_52 = arith.constant dense<0.000000e+00> : vector<8x8xf32>
    %153 = tpu.matmul %151, %152, %cst_52 {dimension_numbers = #tpu.dot_dimension_numbers<[1], [0], [0], [1], [0, 0, 1, 1], [], []>} : vector<8x8xbf16>, vector<8x8xbf16>, vector<8x8xf32> -> vector<8x8xf32>
    %154 = arith.truncf %153 : vector<8x8xf32> to vector<8x8xbf16>
    %c8_53 = arith.constant 8 : index
    %c8_54 = arith.constant 8 : index
    %155 = vector.load %arg12[%c8_53, %c8_54] : memref<16x32xbf16, #tpu.memory_space<vmem>>, vector<8x8xbf16>
    tpu.vector_store %arg12[%c8_53, %c8_54], %154 {strides = array<i32>} : memref<16x32xbf16, #tpu.memory_space<vmem>>, vector<8x8xbf16>,
    %156 = vector.extract_strided_slice %27 {offsets = [8, 16], sizes = [8, 8], strides = [1, 1]} : vector<16x32xbf16> to vector<8x8xbf16>
    %157 = vector.extract_strided_slice %34 {offsets = [8, 16], sizes = [8, 8], strides = [1, 1]} : vector<16x32xbf16> to vector<8x8xbf16>
    %cst_55 = arith.constant dense<0.000000e+00> : vector<8x8xf32>
    %158 = tpu.matmul %156, %157, %cst_55 {dimension_numbers = #tpu.dot_dimension_numbers<[1], [1], [0], [0], [0, 0, 1, 0], [], []>} : vector<8x8xbf16>, vector<8x8xbf16>, vector<8x8xf32> -> vector<8x8xf32>
    %159 = arith.addf %158, %18 : vector<8x8xf32>
    %cst_56 = arith.constant dense<0xFF800000> : vector<8xf32>
    %160 = vector.multi_reduction <maximumf>, %159, %cst_56 [1] : vector<8x8xf32> to vector<8xf32>
    %161 = vector.shape_cast %160 : vector<8xf32> to vector<8x1xf32>
    %162 = vector.broadcast %161 : vector<8x1xf32> to vector<8x8xf32>
    %163 = arith.subf %159, %162 : vector<8x8xf32>
    %164 = math.exp %163 : vector<8x8xf32>
    %cst_57 = arith.constant dense<0.000000e+00> : vector<8xf32>
    %165 = vector.multi_reduction <add>, %164, %cst_57 [1] : vector<8x8xf32> to vector<8xf32>
    %166 = vector.shape_cast %165 : vector<8xf32> to vector<8x1xf32>
    %167 = tpu.reciprocal %166 : vector<8x1xf32> -> vector<8x1xf32>
    %168 = vector.broadcast %167 : vector<8x1xf32> to vector<8x8xf32>
    %169 = arith.mulf %164, %168 : vector<8x8xf32>
    %170 = arith.truncf %169 : vector<8x8xf32> to vector<8x8xbf16>
    %171 = vector.extract_strided_slice %41 {offsets = [8, 16], sizes = [8, 8], strides = [1, 1]} : vector<16x32xbf16> to vector<8x8xbf16>
    %cst_58 = arith.constant dense<0.000000e+00> : vector<8x8xf32>
    %172 = tpu.matmul %170, %171, %cst_58 {dimension_numbers = #tpu.dot_dimension_numbers<[1], [0], [0], [1], [0, 0, 1, 1], [], []>} : vector<8x8xbf16>, vector<8x8xbf16>, vector<8x8xf32> -> vector<8x8xf32>
    %173 = arith.truncf %172 : vector<8x8xf32> to vector<8x8xbf16>
    %c8_59 = arith.constant 8 : index
    %c16_60 = arith.constant 16 : index
    %174 = vector.load %arg12[%c8_59, %c16_60] : memref<16x32xbf16, #tpu.memory_space<vmem>>, vector<8x8xbf16>
    tpu.vector_store %arg12[%c8_59, %c16_60], %173 {strides = array<i32>} : memref<16x32xbf16, #tpu.memory_space<vmem>>, vector<8x8xbf16>,
    %175 = vector.extract_strided_slice %27 {offsets = [8, 24], sizes = [8, 8], strides = [1, 1]} : vector<16x32xbf16> to vector<8x8xbf16>
    %176 = vector.extract_strided_slice %34 {offsets = [8, 24], sizes = [8, 8], strides = [1, 1]} : vector<16x32xbf16> to vector<8x8xbf16>
    %cst_61 = arith.constant dense<0.000000e+00> : vector<8x8xf32>
    %177 = tpu.matmul %175, %176, %cst_61 {dimension_numbers = #tpu.dot_dimension_numbers<[1], [1], [0], [0], [0, 0, 1, 0], [], []>} : vector<8x8xbf16>, vector<8x8xbf16>, vector<8x8xf32> -> vector<8x8xf32>
    %178 = arith.addf %177, %18 : vector<8x8xf32>
    %cst_62 = arith.constant dense<0xFF800000> : vector<8xf32>
    %179 = vector.multi_reduction <maximumf>, %178, %cst_62 [1] : vector<8x8xf32> to vector<8xf32>
    %180 = vector.shape_cast %179 : vector<8xf32> to vector<8x1xf32>
    %181 = vector.broadcast %180 : vector<8x1xf32> to vector<8x8xf32>
    %182 = arith.subf %178, %181 : vector<8x8xf32>
    %183 = math.exp %182 : vector<8x8xf32>
    %cst_63 = arith.constant dense<0.000000e+00> : vector<8xf32>
    %184 = vector.multi_reduction <add>, %183, %cst_63 [1] : vector<8x8xf32> to vector<8xf32>
    %185 = vector.shape_cast %184 : vector<8xf32> to vector<8x1xf32>
    %186 = tpu.reciprocal %185 : vector<8x1xf32> -> vector<8x1xf32>
    %187 = vector.broadcast %186 : vector<8x1xf32> to vector<8x8xf32>
    %188 = arith.mulf %183, %187 : vector<8x8xf32>
    %189 = arith.truncf %188 : vector<8x8xf32> to vector<8x8xbf16>
    %190 = vector.extract_strided_slice %41 {offsets = [8, 24], sizes = [8, 8], strides = [1, 1]} : vector<16x32xbf16> to vector<8x8xbf16>
    %cst_64 = arith.constant dense<0.000000e+00> : vector<8x8xf32>
    %191 = tpu.matmul %189, %190, %cst_64 {dimension_numbers = #tpu.dot_dimension_numbers<[1], [0], [0], [1], [0, 0, 1, 1], [], []>} : vector<8x8xbf16>, vector<8x8xbf16>, vector<8x8xf32> -> vector<8x8xf32>
    %192 = arith.truncf %191 : vector<8x8xf32> to vector<8x8xbf16>
    %c8_65 = arith.constant 8 : index
    %c24_66 = arith.constant 24 : index
    %193 = vector.load %arg12[%c8_65, %c24_66] : memref<16x32xbf16, #tpu.memory_space<vmem>>, vector<8x8xbf16>
    tpu.vector_store %arg12[%c8_65, %c24_66], %192 {strides = array<i32>} : memref<16x32xbf16, #tpu.memory_space<vmem>>, vector<8x8xbf16>,
    %c0_67 = arith.constant 0 : index
    %c0_68 = arith.constant 0 : index
    %194 = vector.load %arg12[%c0_67, %c0_68] : memref<16x32xbf16, #tpu.memory_space<vmem>>, vector<16x32xbf16>
    %c0_69 = arith.constant 0 : index
    %c3 = arith.constant 3 : index
    %c0_70 = arith.constant 0 : index
    %c0_71 = arith.constant 0 : index
    %195 = vector.load %arg4[%c0_69, %c3, %c0_70, %c0_71] : memref<1x4x32x32xbf16, #tpu.memory_space<vmem>>, vector<1x1x32x32xbf16>
    %196 = vector.shape_cast %195 : vector<1x1x32x32xbf16> to vector<32x32xbf16>
    %cst_72 = arith.constant dense<0.000000e+00> : vector<16x32xf32>
    %197 = tpu.matmul %194, %196, %cst_72 {dimension_numbers = #tpu.dot_dimension_numbers<[1], [0], [0], [1], [0, 0, 1, 1], [], []>} : vector<16x32xbf16>, vector<32x32xbf16>, vector<16x32xf32> -> vector<16x32xf32>
    %198 = vector.extract_strided_slice %8 {offsets = [3, 0], sizes = [1, 32], strides = [1, 1]} : vector<4x32xf32> to vector<1x32xf32>
    %199 = vector.broadcast %198 : vector<1x32xf32> to vector<16x32xf32>
    %200 = arith.addf %197, %199 : vector<16x32xf32>
    %201 = arith.addf %3, %200 : vector<16x32xf32>
    %cst_73 = arith.constant dense<0.000000e+00> : vector<16xf32>
    %202 = vector.multi_reduction <add>, %201, %cst_73 [1] : vector<16x32xf32> to vector<16xf32>
    %203 = vector.shape_cast %202 : vector<16xf32> to vector<16x1xf32>
    %cst_74 = arith.constant 3.200000e+01 : f32
    %204 = vector.broadcast %cst_74 : f32 to vector<16x1xf32>
    %205 = arith.divf %203, %204 : vector<16x1xf32>
    %206 = vector.broadcast %205 : vector<16x1xf32> to vector<16x32xf32>
    %207 = arith.subf %201, %206 : vector<16x32xf32>
    %208 = arith.mulf %207, %207 : vector<16x32xf32>
    %cst_75 = arith.constant dense<0.000000e+00> : vector<16xf32>
    %209 = vector.multi_reduction <add>, %208, %cst_75 [1] : vector<16x32xf32> to vector<16xf32>
    %210 = vector.shape_cast %209 : vector<16xf32> to vector<16x1xf32>
    %cst_76 = arith.constant 3.200000e+01 : f32
    %211 = vector.broadcast %cst_76 : f32 to vector<16x1xf32>
    %212 = arith.divf %210, %211 : vector<16x1xf32>
    %213 = vector.broadcast %205 : vector<16x1xf32> to vector<16x32xf32>
    %214 = arith.subf %201, %213 : vector<16x32xf32>
    %cst_77 = arith.constant 9.99999974E-6 : f32
    %215 = vector.broadcast %cst_77 : f32 to vector<16x1xf32>
    %216 = arith.addf %212, %215 : vector<16x1xf32>
    %217 = math.rsqrt %216 : vector<16x1xf32>
    %218 = vector.broadcast %217 : vector<16x1xf32> to vector<16x32xf32>
    %219 = arith.mulf %214, %218 : vector<16x32xf32>
    %220 = vector.extract_strided_slice %11 {offsets = [0, 0], sizes = [1, 32], strides = [1, 1]} : vector<3x32xf32> to vector<1x32xf32>
    %221 = vector.broadcast %220 : vector<1x32xf32> to vector<16x32xf32>
    %222 = arith.mulf %219, %221 : vector<16x32xf32>
    %223 = vector.extract_strided_slice %12 {offsets = [0, 0], sizes = [1, 32], strides = [1, 1]} : vector<3x32xf32> to vector<1x32xf32>
    %224 = vector.broadcast %223 : vector<1x32xf32> to vector<16x32xf32>
    %225 = arith.addf %222, %224 : vector<16x32xf32>
    %226 = arith.truncf %225 : vector<16x32xf32> to vector<16x32xbf16>
    %c0_78 = arith.constant 0 : index
    %c0_79 = arith.constant 0 : index
    %c0_80 = arith.constant 0 : index
    %c0_81 = arith.constant 0 : index
    %227 = vector.load %arg5[%c0_78, %c0_79, %c0_80, %c0_81] : memref<1x4x32x32xbf16, #tpu.memory_space<vmem>>, vector<1x1x32x32xbf16>
    %228 = vector.shape_cast %227 : vector<1x1x32x32xbf16> to vector<32x32xbf16>
    %cst_82 = arith.constant dense<0.000000e+00> : vector<16x32xf32>
    %229 = tpu.matmul %226, %228, %cst_82 {dimension_numbers = #tpu.dot_dimension_numbers<[1], [0], [0], [1], [0, 0, 1, 1], [], []>} : vector<16x32xbf16>, vector<32x32xbf16>, vector<16x32xf32> -> vector<16x32xf32>
    %230 = vector.extract_strided_slice %9 {offsets = [0, 0], sizes = [1, 32], strides = [1, 1]} : vector<4x32xf32> to vector<1x32xf32>
    %231 = vector.broadcast %230 : vector<1x32xf32> to vector<16x32xf32>
    %232 = arith.addf %229, %231 : vector<16x32xf32>
    %233 = arith.truncf %232 : vector<16x32xf32> to vector<16x32xbf16>
    %c0_83 = arith.constant 0 : index
    %c1_84 = arith.constant 1 : index
    %c0_85 = arith.constant 0 : index
    %c0_86 = arith.constant 0 : index
    %234 = vector.load %arg5[%c0_83, %c1_84, %c0_85, %c0_86] : memref<1x4x32x32xbf16, #tpu.memory_space<vmem>>, vector<1x1x32x32xbf16>
    %235 = vector.shape_cast %234 : vector<1x1x32x32xbf16> to vector<32x32xbf16>
    %cst_87 = arith.constant dense<0.000000e+00> : vector<16x32xf32>
    %236 = tpu.matmul %5, %235, %cst_87 {dimension_numbers = #tpu.dot_dimension_numbers<[1], [0], [0], [1], [0, 0, 1, 1], [], []>} : vector<16x32xbf16>, vector<32x32xbf16>, vector<16x32xf32> -> vector<16x32xf32>
    %237 = vector.extract_strided_slice %9 {offsets = [1, 0], sizes = [1, 32], strides = [1, 1]} : vector<4x32xf32> to vector<1x32xf32>
    %238 = vector.broadcast %237 : vector<1x32xf32> to vector<16x32xf32>
    %239 = arith.addf %236, %238 : vector<16x32xf32>
    %240 = arith.truncf %239 : vector<16x32xf32> to vector<16x32xbf16>
    %c0_88 = arith.constant 0 : index
    %c2_89 = arith.constant 2 : index
    %c0_90 = arith.constant 0 : index
    %c0_91 = arith.constant 0 : index
    %241 = vector.load %arg5[%c0_88, %c2_89, %c0_90, %c0_91] : memref<1x4x32x32xbf16, #tpu.memory_space<vmem>>, vector<1x1x32x32xbf16>
    %242 = vector.shape_cast %241 : vector<1x1x32x32xbf16> to vector<32x32xbf16>
    %cst_92 = arith.constant dense<0.000000e+00> : vector<16x32xf32>
    %243 = tpu.matmul %5, %242, %cst_92 {dimension_numbers = #tpu.dot_dimension_numbers<[1], [0], [0], [1], [0, 0, 1, 1], [], []>} : vector<16x32xbf16>, vector<32x32xbf16>, vector<16x32xf32> -> vector<16x32xf32>
    %244 = vector.extract_strided_slice %9 {offsets = [2, 0], sizes = [1, 32], strides = [1, 1]} : vector<4x32xf32> to vector<1x32xf32>
    %245 = vector.broadcast %244 : vector<1x32xf32> to vector<16x32xf32>
    %246 = arith.addf %243, %245 : vector<16x32xf32>
    %247 = arith.truncf %246 : vector<16x32xf32> to vector<16x32xbf16>
    %248 = vector.extract_strided_slice %233 {offsets = [0, 0], sizes = [8, 8], strides = [1, 1]} : vector<16x32xbf16> to vector<8x8xbf16>
    %249 = vector.extract_strided_slice %240 {offsets = [0, 0], sizes = [8, 8], strides = [1, 1]} : vector<16x32xbf16> to vector<8x8xbf16>
    %cst_93 = arith.constant dense<0.000000e+00> : vector<8x8xf32>
    %250 = tpu.matmul %248, %249, %cst_93 {dimension_numbers = #tpu.dot_dimension_numbers<[1], [1], [0], [0], [0, 0, 1, 0], [], []>} : vector<8x8xbf16>, vector<8x8xbf16>, vector<8x8xf32> -> vector<8x8xf32>
    %cst_94 = arith.constant dense<0xFF800000> : vector<8xf32>
    %251 = vector.multi_reduction <maximumf>, %250, %cst_94 [1] : vector<8x8xf32> to vector<8xf32>
    %252 = vector.shape_cast %251 : vector<8xf32> to vector<8x1xf32>
    %253 = vector.broadcast %252 : vector<8x1xf32> to vector<8x8xf32>
    %254 = arith.subf %250, %253 : vector<8x8xf32>
    %255 = math.exp %254 : vector<8x8xf32>
    %cst_95 = arith.constant dense<0.000000e+00> : vector<8xf32>
    %256 = vector.multi_reduction <add>, %255, %cst_95 [1] : vector<8x8xf32> to vector<8xf32>
    %257 = vector.shape_cast %256 : vector<8xf32> to vector<8x1xf32>
    %258 = tpu.reciprocal %257 : vector<8x1xf32> -> vector<8x1xf32>
    %259 = vector.broadcast %258 : vector<8x1xf32> to vector<8x8xf32>
    %260 = arith.mulf %255, %259 : vector<8x8xf32>
    %261 = arith.truncf %260 : vector<8x8xf32> to vector<8x8xbf16>
    %262 = vector.extract_strided_slice %247 {offsets = [0, 0], sizes = [8, 8], strides = [1, 1]} : vector<16x32xbf16> to vector<8x8xbf16>
    %cst_96 = arith.constant dense<0.000000e+00> : vector<8x8xf32>
    %263 = tpu.matmul %261, %262, %cst_96 {dimension_numbers = #tpu.dot_dimension_numbers<[1], [0], [0], [1], [0, 0, 1, 1], [], []>} : vector<8x8xbf16>, vector<8x8xbf16>, vector<8x8xf32> -> vector<8x8xf32>
    %264 = arith.truncf %263 : vector<8x8xf32> to vector<8x8xbf16>
    %c0_97 = arith.constant 0 : index
    %c0_98 = arith.constant 0 : index
    %265 = vector.load %arg12[%c0_97, %c0_98] : memref<16x32xbf16, #tpu.memory_space<vmem>>, vector<8x8xbf16>
    tpu.vector_store %arg12[%c0_97, %c0_98], %264 {strides = array<i32>} : memref<16x32xbf16, #tpu.memory_space<vmem>>, vector<8x8xbf16>,
    %266 = vector.extract_strided_slice %233 {offsets = [0, 8], sizes = [8, 8], strides = [1, 1]} : vector<16x32xbf16> to vector<8x8xbf16>
    %267 = vector.extract_strided_slice %240 {offsets = [0, 8], sizes = [8, 8], strides = [1, 1]} : vector<16x32xbf16> to vector<8x8xbf16>
    %cst_99 = arith.constant dense<0.000000e+00> : vector<8x8xf32>
    %268 = tpu.matmul %266, %267, %cst_99 {dimension_numbers = #tpu.dot_dimension_numbers<[1], [1], [0], [0], [0, 0, 1, 0], [], []>} : vector<8x8xbf16>, vector<8x8xbf16>, vector<8x8xf32> -> vector<8x8xf32>
    %cst_100 = arith.constant dense<0xFF800000> : vector<8xf32>
    %269 = vector.multi_reduction <maximumf>, %268, %cst_100 [1] : vector<8x8xf32> to vector<8xf32>
    %270 = vector.shape_cast %269 : vector<8xf32> to vector<8x1xf32>
    %271 = vector.broadcast %270 : vector<8x1xf32> to vector<8x8xf32>
    %272 = arith.subf %268, %271 : vector<8x8xf32>
    %273 = math.exp %272 : vector<8x8xf32>
    %cst_101 = arith.constant dense<0.000000e+00> : vector<8xf32>
    %274 = vector.multi_reduction <add>, %273, %cst_101 [1] : vector<8x8xf32> to vector<8xf32>
    %275 = vector.shape_cast %274 : vector<8xf32> to vector<8x1xf32>
    %276 = tpu.reciprocal %275 : vector<8x1xf32> -> vector<8x1xf32>
    %277 = vector.broadcast %276 : vector<8x1xf32> to vector<8x8xf32>
    %278 = arith.mulf %273, %277 : vector<8x8xf32>
    %279 = arith.truncf %278 : vector<8x8xf32> to vector<8x8xbf16>
    %280 = vector.extract_strided_slice %247 {offsets = [0, 8], sizes = [8, 8], strides = [1, 1]} : vector<16x32xbf16> to vector<8x8xbf16>
    %cst_102 = arith.constant dense<0.000000e+00> : vector<8x8xf32>
    %281 = tpu.matmul %279, %280, %cst_102 {dimension_numbers = #tpu.dot_dimension_numbers<[1], [0], [0], [1], [0, 0, 1, 1], [], []>} : vector<8x8xbf16>, vector<8x8xbf16>, vector<8x8xf32> -> vector<8x8xf32>
    %282 = arith.truncf %281 : vector<8x8xf32> to vector<8x8xbf16>
    %c0_103 = arith.constant 0 : index
    %c8_104 = arith.constant 8 : index
    %283 = vector.load %arg12[%c0_103, %c8_104] : memref<16x32xbf16, #tpu.memory_space<vmem>>, vector<8x8xbf16>
    tpu.vector_store %arg12[%c0_103, %c8_104], %282 {strides = array<i32>} : memref<16x32xbf16, #tpu.memory_space<vmem>>, vector<8x8xbf16>,
    %284 = vector.extract_strided_slice %233 {offsets = [0, 16], sizes = [8, 8], strides = [1, 1]} : vector<16x32xbf16> to vector<8x8xbf16>
    %285 = vector.extract_strided_slice %240 {offsets = [0, 16], sizes = [8, 8], strides = [1, 1]} : vector<16x32xbf16> to vector<8x8xbf16>
    %cst_105 = arith.constant dense<0.000000e+00> : vector<8x8xf32>
    %286 = tpu.matmul %284, %285, %cst_105 {dimension_numbers = #tpu.dot_dimension_numbers<[1], [1], [0], [0], [0, 0, 1, 0], [], []>} : vector<8x8xbf16>, vector<8x8xbf16>, vector<8x8xf32> -> vector<8x8xf32>
    %cst_106 = arith.constant dense<0xFF800000> : vector<8xf32>
    %287 = vector.multi_reduction <maximumf>, %286, %cst_106 [1] : vector<8x8xf32> to vector<8xf32>
    %288 = vector.shape_cast %287 : vector<8xf32> to vector<8x1xf32>
    %289 = vector.broadcast %288 : vector<8x1xf32> to vector<8x8xf32>
    %290 = arith.subf %286, %289 : vector<8x8xf32>
    %291 = math.exp %290 : vector<8x8xf32>
    %cst_107 = arith.constant dense<0.000000e+00> : vector<8xf32>
    %292 = vector.multi_reduction <add>, %291, %cst_107 [1] : vector<8x8xf32> to vector<8xf32>
    %293 = vector.shape_cast %292 : vector<8xf32> to vector<8x1xf32>
    %294 = tpu.reciprocal %293 : vector<8x1xf32> -> vector<8x1xf32>
    %295 = vector.broadcast %294 : vector<8x1xf32> to vector<8x8xf32>
    %296 = arith.mulf %291, %295 : vector<8x8xf32>
    %297 = arith.truncf %296 : vector<8x8xf32> to vector<8x8xbf16>
    %298 = vector.extract_strided_slice %247 {offsets = [0, 16], sizes = [8, 8], strides = [1, 1]} : vector<16x32xbf16> to vector<8x8xbf16>
    %cst_108 = arith.constant dense<0.000000e+00> : vector<8x8xf32>
    %299 = tpu.matmul %297, %298, %cst_108 {dimension_numbers = #tpu.dot_dimension_numbers<[1], [0], [0], [1], [0, 0, 1, 1], [], []>} : vector<8x8xbf16>, vector<8x8xbf16>, vector<8x8xf32> -> vector<8x8xf32>
    %300 = arith.truncf %299 : vector<8x8xf32> to vector<8x8xbf16>
    %c0_109 = arith.constant 0 : index
    %c16_110 = arith.constant 16 : index
    %301 = vector.load %arg12[%c0_109, %c16_110] : memref<16x32xbf16, #tpu.memory_space<vmem>>, vector<8x8xbf16>
    tpu.vector_store %arg12[%c0_109, %c16_110], %300 {strides = array<i32>} : memref<16x32xbf16, #tpu.memory_space<vmem>>, vector<8x8xbf16>,
    %302 = vector.extract_strided_slice %233 {offsets = [0, 24], sizes = [8, 8], strides = [1, 1]} : vector<16x32xbf16> to vector<8x8xbf16>
    %303 = vector.extract_strided_slice %240 {offsets = [0, 24], sizes = [8, 8], strides = [1, 1]} : vector<16x32xbf16> to vector<8x8xbf16>
    %cst_111 = arith.constant dense<0.000000e+00> : vector<8x8xf32>
    %304 = tpu.matmul %302, %303, %cst_111 {dimension_numbers = #tpu.dot_dimension_numbers<[1], [1], [0], [0], [0, 0, 1, 0], [], []>} : vector<8x8xbf16>, vector<8x8xbf16>, vector<8x8xf32> -> vector<8x8xf32>
    %cst_112 = arith.constant dense<0xFF800000> : vector<8xf32>
    %305 = vector.multi_reduction <maximumf>, %304, %cst_112 [1] : vector<8x8xf32> to vector<8xf32>
    %306 = vector.shape_cast %305 : vector<8xf32> to vector<8x1xf32>
    %307 = vector.broadcast %306 : vector<8x1xf32> to vector<8x8xf32>
    %308 = arith.subf %304, %307 : vector<8x8xf32>
    %309 = math.exp %308 : vector<8x8xf32>
    %cst_113 = arith.constant dense<0.000000e+00> : vector<8xf32>
    %310 = vector.multi_reduction <add>, %309, %cst_113 [1] : vector<8x8xf32> to vector<8xf32>
    %311 = vector.shape_cast %310 : vector<8xf32> to vector<8x1xf32>
    %312 = tpu.reciprocal %311 : vector<8x1xf32> -> vector<8x1xf32>
    %313 = vector.broadcast %312 : vector<8x1xf32> to vector<8x8xf32>
    %314 = arith.mulf %309, %313 : vector<8x8xf32>
    %315 = arith.truncf %314 : vector<8x8xf32> to vector<8x8xbf16>
    %316 = vector.extract_strided_slice %247 {offsets = [0, 24], sizes = [8, 8], strides = [1, 1]} : vector<16x32xbf16> to vector<8x8xbf16>
    %cst_114 = arith.constant dense<0.000000e+00> : vector<8x8xf32>
    %317 = tpu.matmul %315, %316, %cst_114 {dimension_numbers = #tpu.dot_dimension_numbers<[1], [0], [0], [1], [0, 0, 1, 1], [], []>} : vector<8x8xbf16>, vector<8x8xbf16>, vector<8x8xf32> -> vector<8x8xf32>
    %318 = arith.truncf %317 : vector<8x8xf32> to vector<8x8xbf16>
    %c0_115 = arith.constant 0 : index
    %c24_116 = arith.constant 24 : index
    %319 = vector.load %arg12[%c0_115, %c24_116] : memref<16x32xbf16, #tpu.memory_space<vmem>>, vector<8x8xbf16>
    tpu.vector_store %arg12[%c0_115, %c24_116], %318 {strides = array<i32>} : memref<16x32xbf16, #tpu.memory_space<vmem>>, vector<8x8xbf16>,
    %320 = vector.extract_strided_slice %233 {offsets = [8, 0], sizes = [8, 8], strides = [1, 1]} : vector<16x32xbf16> to vector<8x8xbf16>
    %321 = vector.extract_strided_slice %240 {offsets = [8, 0], sizes = [8, 8], strides = [1, 1]} : vector<16x32xbf16> to vector<8x8xbf16>
    %cst_117 = arith.constant dense<0.000000e+00> : vector<8x8xf32>
    %322 = tpu.matmul %320, %321, %cst_117 {dimension_numbers = #tpu.dot_dimension_numbers<[1], [1], [0], [0], [0, 0, 1, 0], [], []>} : vector<8x8xbf16>, vector<8x8xbf16>, vector<8x8xf32> -> vector<8x8xf32>
    %cst_118 = arith.constant dense<0xFF800000> : vector<8xf32>
    %323 = vector.multi_reduction <maximumf>, %322, %cst_118 [1] : vector<8x8xf32> to vector<8xf32>
    %324 = vector.shape_cast %323 : vector<8xf32> to vector<8x1xf32>
    %325 = vector.broadcast %324 : vector<8x1xf32> to vector<8x8xf32>
    %326 = arith.subf %322, %325 : vector<8x8xf32>
    %327 = math.exp %326 : vector<8x8xf32>
    %cst_119 = arith.constant dense<0.000000e+00> : vector<8xf32>
    %328 = vector.multi_reduction <add>, %327, %cst_119 [1] : vector<8x8xf32> to vector<8xf32>
    %329 = vector.shape_cast %328 : vector<8xf32> to vector<8x1xf32>
    %330 = tpu.reciprocal %329 : vector<8x1xf32> -> vector<8x1xf32>
    %331 = vector.broadcast %330 : vector<8x1xf32> to vector<8x8xf32>
    %332 = arith.mulf %327, %331 : vector<8x8xf32>
    %333 = arith.truncf %332 : vector<8x8xf32> to vector<8x8xbf16>
    %334 = vector.extract_strided_slice %247 {offsets = [8, 0], sizes = [8, 8], strides = [1, 1]} : vector<16x32xbf16> to vector<8x8xbf16>
    %cst_120 = arith.constant dense<0.000000e+00> : vector<8x8xf32>
    %335 = tpu.matmul %333, %334, %cst_120 {dimension_numbers = #tpu.dot_dimension_numbers<[1], [0], [0], [1], [0, 0, 1, 1], [], []>} : vector<8x8xbf16>, vector<8x8xbf16>, vector<8x8xf32> -> vector<8x8xf32>
    %336 = arith.truncf %335 : vector<8x8xf32> to vector<8x8xbf16>
    %c8_121 = arith.constant 8 : index
    %c0_122 = arith.constant 0 : index
    %337 = vector.load %arg12[%c8_121, %c0_122] : memref<16x32xbf16, #tpu.memory_space<vmem>>, vector<8x8xbf16>
    tpu.vector_store %arg12[%c8_121, %c0_122], %336 {strides = array<i32>} : memref<16x32xbf16, #tpu.memory_space<vmem>>, vector<8x8xbf16>,
    %338 = vector.extract_strided_slice %233 {offsets = [8, 8], sizes = [8, 8], strides = [1, 1]} : vector<16x32xbf16> to vector<8x8xbf16>
    %339 = vector.extract_strided_slice %240 {offsets = [8, 8], sizes = [8, 8], strides = [1, 1]} : vector<16x32xbf16> to vector<8x8xbf16>
    %cst_123 = arith.constant dense<0.000000e+00> : vector<8x8xf32>
    %340 = tpu.matmul %338, %339, %cst_123 {dimension_numbers = #tpu.dot_dimension_numbers<[1], [1], [0], [0], [0, 0, 1, 0], [], []>} : vector<8x8xbf16>, vector<8x8xbf16>, vector<8x8xf32> -> vector<8x8xf32>
    %cst_124 = arith.constant dense<0xFF800000> : vector<8xf32>
    %341 = vector.multi_reduction <maximumf>, %340, %cst_124 [1] : vector<8x8xf32> to vector<8xf32>
    %342 = vector.shape_cast %341 : vector<8xf32> to vector<8x1xf32>
    %343 = vector.broadcast %342 : vector<8x1xf32> to vector<8x8xf32>
    %344 = arith.subf %340, %343 : vector<8x8xf32>
    %345 = math.exp %344 : vector<8x8xf32>
    %cst_125 = arith.constant dense<0.000000e+00> : vector<8xf32>
    %346 = vector.multi_reduction <add>, %345, %cst_125 [1] : vector<8x8xf32> to vector<8xf32>
    %347 = vector.shape_cast %346 : vector<8xf32> to vector<8x1xf32>
    %348 = tpu.reciprocal %347 : vector<8x1xf32> -> vector<8x1xf32>
    %349 = vector.broadcast %348 : vector<8x1xf32> to vector<8x8xf32>
    %350 = arith.mulf %345, %349 : vector<8x8xf32>
    %351 = arith.truncf %350 : vector<8x8xf32> to vector<8x8xbf16>
    %352 = vector.extract_strided_slice %247 {offsets = [8, 8], sizes = [8, 8], strides = [1, 1]} : vector<16x32xbf16> to vector<8x8xbf16>
    %cst_126 = arith.constant dense<0.000000e+00> : vector<8x8xf32>
    %353 = tpu.matmul %351, %352, %cst_126 {dimension_numbers = #tpu.dot_dimension_numbers<[1], [0], [0], [1], [0, 0, 1, 1], [], []>} : vector<8x8xbf16>, vector<8x8xbf16>, vector<8x8xf32> -> vector<8x8xf32>
    %354 = arith.truncf %353 : vector<8x8xf32> to vector<8x8xbf16>
    %c8_127 = arith.constant 8 : index
    %c8_128 = arith.constant 8 : index
    %355 = vector.load %arg12[%c8_127, %c8_128] : memref<16x32xbf16, #tpu.memory_space<vmem>>, vector<8x8xbf16>
    tpu.vector_store %arg12[%c8_127, %c8_128], %354 {strides = array<i32>} : memref<16x32xbf16, #tpu.memory_space<vmem>>, vector<8x8xbf16>,
    %356 = vector.extract_strided_slice %233 {offsets = [8, 16], sizes = [8, 8], strides = [1, 1]} : vector<16x32xbf16> to vector<8x8xbf16>
    %357 = vector.extract_strided_slice %240 {offsets = [8, 16], sizes = [8, 8], strides = [1, 1]} : vector<16x32xbf16> to vector<8x8xbf16>
    %cst_129 = arith.constant dense<0.000000e+00> : vector<8x8xf32>
    %358 = tpu.matmul %356, %357, %cst_129 {dimension_numbers = #tpu.dot_dimension_numbers<[1], [1], [0], [0], [0, 0, 1, 0], [], []>} : vector<8x8xbf16>, vector<8x8xbf16>, vector<8x8xf32> -> vector<8x8xf32>
    %cst_130 = arith.constant dense<0xFF800000> : vector<8xf32>
    %359 = vector.multi_reduction <maximumf>, %358, %cst_130 [1] : vector<8x8xf32> to vector<8xf32>
    %360 = vector.shape_cast %359 : vector<8xf32> to vector<8x1xf32>
    %361 = vector.broadcast %360 : vector<8x1xf32> to vector<8x8xf32>
    %362 = arith.subf %358, %361 : vector<8x8xf32>
    %363 = math.exp %362 : vector<8x8xf32>
    %cst_131 = arith.constant dense<0.000000e+00> : vector<8xf32>
    %364 = vector.multi_reduction <add>, %363, %cst_131 [1] : vector<8x8xf32> to vector<8xf32>
    %365 = vector.shape_cast %364 : vector<8xf32> to vector<8x1xf32>
    %366 = tpu.reciprocal %365 : vector<8x1xf32> -> vector<8x1xf32>
    %367 = vector.broadcast %366 : vector<8x1xf32> to vector<8x8xf32>
    %368 = arith.mulf %363, %367 : vector<8x8xf32>
    %369 = arith.truncf %368 : vector<8x8xf32> to vector<8x8xbf16>
    %370 = vector.extract_strided_slice %247 {offsets = [8, 16], sizes = [8, 8], strides = [1, 1]} : vector<16x32xbf16> to vector<8x8xbf16>
    %cst_132 = arith.constant dense<0.000000e+00> : vector<8x8xf32>
    %371 = tpu.matmul %369, %370, %cst_132 {dimension_numbers = #tpu.dot_dimension_numbers<[1], [0], [0], [1], [0, 0, 1, 1], [], []>} : vector<8x8xbf16>, vector<8x8xbf16>, vector<8x8xf32> -> vector<8x8xf32>
    %372 = arith.truncf %371 : vector<8x8xf32> to vector<8x8xbf16>
    %c8_133 = arith.constant 8 : index
    %c16_134 = arith.constant 16 : index
    %373 = vector.load %arg12[%c8_133, %c16_134] : memref<16x32xbf16, #tpu.memory_space<vmem>>, vector<8x8xbf16>
    tpu.vector_store %arg12[%c8_133, %c16_134], %372 {strides = array<i32>} : memref<16x32xbf16, #tpu.memory_space<vmem>>, vector<8x8xbf16>,
    %374 = vector.extract_strided_slice %233 {offsets = [8, 24], sizes = [8, 8], strides = [1, 1]} : vector<16x32xbf16> to vector<8x8xbf16>
    %375 = vector.extract_strided_slice %240 {offsets = [8, 24], sizes = [8, 8], strides = [1, 1]} : vector<16x32xbf16> to vector<8x8xbf16>
    %cst_135 = arith.constant dense<0.000000e+00> : vector<8x8xf32>
    %376 = tpu.matmul %374, %375, %cst_135 {dimension_numbers = #tpu.dot_dimension_numbers<[1], [1], [0], [0], [0, 0, 1, 0], [], []>} : vector<8x8xbf16>, vector<8x8xbf16>, vector<8x8xf32> -> vector<8x8xf32>
    %cst_136 = arith.constant dense<0xFF800000> : vector<8xf32>
    %377 = vector.multi_reduction <maximumf>, %376, %cst_136 [1] : vector<8x8xf32> to vector<8xf32>
    %378 = vector.shape_cast %377 : vector<8xf32> to vector<8x1xf32>
    %379 = vector.broadcast %378 : vector<8x1xf32> to vector<8x8xf32>
    %380 = arith.subf %376, %379 : vector<8x8xf32>
    %381 = math.exp %380 : vector<8x8xf32>
    %cst_137 = arith.constant dense<0.000000e+00> : vector<8xf32>
    %382 = vector.multi_reduction <add>, %381, %cst_137 [1] : vector<8x8xf32> to vector<8xf32>
    %383 = vector.shape_cast %382 : vector<8xf32> to vector<8x1xf32>
    %384 = tpu.reciprocal %383 : vector<8x1xf32> -> vector<8x1xf32>
    %385 = vector.broadcast %384 : vector<8x1xf32> to vector<8x8xf32>
    %386 = arith.mulf %381, %385 : vector<8x8xf32>
    %387 = arith.truncf %386 : vector<8x8xf32> to vector<8x8xbf16>
    %388 = vector.extract_strided_slice %247 {offsets = [8, 24], sizes = [8, 8], strides = [1, 1]} : vector<16x32xbf16> to vector<8x8xbf16>
    %cst_138 = arith.constant dense<0.000000e+00> : vector<8x8xf32>
    %389 = tpu.matmul %387, %388, %cst_138 {dimension_numbers = #tpu.dot_dimension_numbers<[1], [0], [0], [1], [0, 0, 1, 1], [], []>} : vector<8x8xbf16>, vector<8x8xbf16>, vector<8x8xf32> -> vector<8x8xf32>
    %390 = arith.truncf %389 : vector<8x8xf32> to vector<8x8xbf16>
    %c8_139 = arith.constant 8 : index
    %c24_140 = arith.constant 24 : index
    %391 = vector.load %arg12[%c8_139, %c24_140] : memref<16x32xbf16, #tpu.memory_space<vmem>>, vector<8x8xbf16>
    tpu.vector_store %arg12[%c8_139, %c24_140], %390 {strides = array<i32>} : memref<16x32xbf16, #tpu.memory_space<vmem>>, vector<8x8xbf16>,
    %c0_141 = arith.constant 0 : index
    %c0_142 = arith.constant 0 : index
    %392 = vector.load %arg12[%c0_141, %c0_142] : memref<16x32xbf16, #tpu.memory_space<vmem>>, vector<16x32xbf16>
    %c0_143 = arith.constant 0 : index
    %c3_144 = arith.constant 3 : index
    %c0_145 = arith.constant 0 : index
    %c0_146 = arith.constant 0 : index
    %393 = vector.load %arg5[%c0_143, %c3_144, %c0_145, %c0_146] : memref<1x4x32x32xbf16, #tpu.memory_space<vmem>>, vector<1x1x32x32xbf16>
    %394 = vector.shape_cast %393 : vector<1x1x32x32xbf16> to vector<32x32xbf16>
    %cst_147 = arith.constant dense<0.000000e+00> : vector<16x32xf32>
    %395 = tpu.matmul %392, %394, %cst_147 {dimension_numbers = #tpu.dot_dimension_numbers<[1], [0], [0], [1], [0, 0, 1, 1], [], []>} : vector<16x32xbf16>, vector<32x32xbf16>, vector<16x32xf32> -> vector<16x32xf32>
    %396 = vector.extract_strided_slice %9 {offsets = [3, 0], sizes = [1, 32], strides = [1, 1]} : vector<4x32xf32> to vector<1x32xf32>
    %397 = vector.broadcast %396 : vector<1x32xf32> to vector<16x32xf32>
    %398 = arith.addf %395, %397 : vector<16x32xf32>
    %399 = arith.addf %225, %398 : vector<16x32xf32>
    %cst_148 = arith.constant dense<0.000000e+00> : vector<16xf32>
    %400 = vector.multi_reduction <add>, %399, %cst_148 [1] : vector<16x32xf32> to vector<16xf32>
    %401 = vector.shape_cast %400 : vector<16xf32> to vector<16x1xf32>
    %cst_149 = arith.constant 3.200000e+01 : f32
    %402 = vector.broadcast %cst_149 : f32 to vector<16x1xf32>
    %403 = arith.divf %401, %402 : vector<16x1xf32>
    %404 = vector.broadcast %403 : vector<16x1xf32> to vector<16x32xf32>
    %405 = arith.subf %399, %404 : vector<16x32xf32>
    %406 = arith.mulf %405, %405 : vector<16x32xf32>
    %cst_150 = arith.constant dense<0.000000e+00> : vector<16xf32>
    %407 = vector.multi_reduction <add>, %406, %cst_150 [1] : vector<16x32xf32> to vector<16xf32>
    %408 = vector.shape_cast %407 : vector<16xf32> to vector<16x1xf32>
    %cst_151 = arith.constant 3.200000e+01 : f32
    %409 = vector.broadcast %cst_151 : f32 to vector<16x1xf32>
    %410 = arith.divf %408, %409 : vector<16x1xf32>
    %411 = vector.broadcast %403 : vector<16x1xf32> to vector<16x32xf32>
    %412 = arith.subf %399, %411 : vector<16x32xf32>
    %cst_152 = arith.constant 9.99999974E-6 : f32
    %413 = vector.broadcast %cst_152 : f32 to vector<16x1xf32>
    %414 = arith.addf %410, %413 : vector<16x1xf32>
    %415 = math.rsqrt %414 : vector<16x1xf32>
    %416 = vector.broadcast %415 : vector<16x1xf32> to vector<16x32xf32>
    %417 = arith.mulf %412, %416 : vector<16x32xf32>
    %418 = vector.extract_strided_slice %11 {offsets = [1, 0], sizes = [1, 32], strides = [1, 1]} : vector<3x32xf32> to vector<1x32xf32>
    %419 = vector.broadcast %418 : vector<1x32xf32> to vector<16x32xf32>
    %420 = arith.mulf %417, %419 : vector<16x32xf32>
    %421 = vector.extract_strided_slice %12 {offsets = [1, 0], sizes = [1, 32], strides = [1, 1]} : vector<3x32xf32> to vector<1x32xf32>
    %422 = vector.broadcast %421 : vector<1x32xf32> to vector<16x32xf32>
    %423 = arith.addf %420, %422 : vector<16x32xf32>
    %424 = arith.truncf %423 : vector<16x32xf32> to vector<16x32xbf16>
    %c0_153 = arith.constant 0 : index
    %c0_154 = arith.constant 0 : index
    %c0_155 = arith.constant 0 : index
    %425 = vector.load %arg6[%c0_153, %c0_154, %c0_155] : memref<1x32x64xbf16, #tpu.memory_space<vmem>>, vector<1x32x64xbf16>
    %426 = vector.shape_cast %425 : vector<1x32x64xbf16> to vector<32x64xbf16>
    %cst_156 = arith.constant dense<0.000000e+00> : vector<16x64xf32>
    %427 = tpu.matmul %424, %426, %cst_156 {dimension_numbers = #tpu.dot_dimension_numbers<[1], [0], [0], [1], [0, 0, 1, 1], [], []>} : vector<16x32xbf16>, vector<32x64xbf16>, vector<16x64xf32> -> vector<16x64xf32>
    %c0_157 = arith.constant 0 : index
    %c0_158 = arith.constant 0 : index
    %c0_159 = arith.constant 0 : index
    %428 = vector.load %arg8[%c0_157, %c0_158, %c0_159] : memref<1x1x64xf32, #tpu.memory_space<vmem>>, vector<1x1x64xf32>
    %429 = vector.shape_cast %428 : vector<1x1x64xf32> to vector<1x64xf32>
    %430 = vector.broadcast %429 : vector<1x64xf32> to vector<16x64xf32>
    %431 = arith.addf %427, %430 : vector<16x64xf32>
    %cst_160 = arith.constant 0.000000e+00 : f32
    %432 = vector.broadcast %cst_160 : f32 to vector<16x64xf32>
    %433 = arith.maximumf %431, %432 : vector<16x64xf32>
    %434 = arith.truncf %433 : vector<16x64xf32> to vector<16x64xbf16>
    %c0_161 = arith.constant 0 : index
    %c0_162 = arith.constant 0 : index
    %c0_163 = arith.constant 0 : index
    %435 = vector.load %arg7[%c0_161, %c0_162, %c0_163] : memref<1x64x32xbf16, #tpu.memory_space<vmem>>, vector<1x64x32xbf16>
    %436 = vector.shape_cast %435 : vector<1x64x32xbf16> to vector<64x32xbf16>
    %cst_164 = arith.constant dense<0.000000e+00> : vector<16x32xf32>
    %437 = tpu.matmul %434, %436, %cst_164 {dimension_numbers = #tpu.dot_dimension_numbers<[1], [0], [0], [1], [0, 0, 1, 1], [], []>} : vector<16x64xbf16>, vector<64x32xbf16>, vector<16x32xf32> -> vector<16x32xf32>
    %438 = vector.broadcast %10 : vector<1x32xf32> to vector<16x32xf32>
    %439 = arith.addf %437, %438 : vector<16x32xf32>
    %440 = arith.addf %423, %439 : vector<16x32xf32>
    %cst_165 = arith.constant dense<0.000000e+00> : vector<16xf32>
    %441 = vector.multi_reduction <add>, %440, %cst_165 [1] : vector<16x32xf32> to vector<16xf32>
    %442 = vector.shape_cast %441 : vector<16xf32> to vector<16x1xf32>
    %cst_166 = arith.constant 3.200000e+01 : f32
    %443 = vector.broadcast %cst_166 : f32 to vector<16x1xf32>
    %444 = arith.divf %442, %443 : vector<16x1xf32>
    %445 = vector.broadcast %444 : vector<16x1xf32> to vector<16x32xf32>
    %446 = arith.subf %440, %445 : vector<16x32xf32>
    %447 = arith.mulf %446, %446 : vector<16x32xf32>
    %cst_167 = arith.constant dense<0.000000e+00> : vector<16xf32>
    %448 = vector.multi_reduction <add>, %447, %cst_167 [1] : vector<16x32xf32> to vector<16xf32>
    %449 = vector.shape_cast %448 : vector<16xf32> to vector<16x1xf32>
    %cst_168 = arith.constant 3.200000e+01 : f32
    %450 = vector.broadcast %cst_168 : f32 to vector<16x1xf32>
    %451 = arith.divf %449, %450 : vector<16x1xf32>
    %452 = vector.broadcast %444 : vector<16x1xf32> to vector<16x32xf32>
    %453 = arith.subf %440, %452 : vector<16x32xf32>
    %cst_169 = arith.constant 9.99999974E-6 : f32
    %454 = vector.broadcast %cst_169 : f32 to vector<16x1xf32>
    %455 = arith.addf %451, %454 : vector<16x1xf32>
    %456 = math.rsqrt %455 : vector<16x1xf32>
    %457 = vector.broadcast %456 : vector<16x1xf32> to vector<16x32xf32>
    %458 = arith.mulf %453, %457 : vector<16x32xf32>
    %459 = vector.extract_strided_slice %11 {offsets = [2, 0], sizes = [1, 32], strides = [1, 1]} : vector<3x32xf32> to vector<1x32xf32>
    %460 = vector.broadcast %459 : vector<1x32xf32> to vector<16x32xf32>
    %461 = arith.mulf %458, %460 : vector<16x32xf32>
    %462 = vector.extract_strided_slice %12 {offsets = [2, 0], sizes = [1, 32], strides = [1, 1]} : vector<3x32xf32> to vector<1x32xf32>
    %463 = vector.broadcast %462 : vector<1x32xf32> to vector<16x32xf32>
    %464 = arith.addf %461, %463 : vector<16x32xf32>
    %c0_170 = arith.constant 0 : index
    %c0_171 = arith.constant 0 : index
    %465 = vector.load %arg11[%c0_170, %c0_171] : memref<16x32xf32, #tpu.memory_space<vmem>>, vector<16x32xf32>
    tpu.vector_store %arg11[%c0_170, %c0_171], %464 {strides = array<i32>} : memref<16x32xf32, #tpu.memory_space<vmem>>, vector<16x32xf32>,
    %c1_i32 = arith.constant 1 : i32
    %466 = arith.cmpi eq, %arg1, %c1_i32 : i32
    %467 = arith.extui %466 : i1 to i32
    %c0_i32_172 = arith.constant 0 : i32
    %468 = arith.cmpi ne, %467, %c0_i32_172 : i32
    scf.if %468 {
      %c0_173 = arith.constant 0 : index
      %c0_174 = arith.constant 0 : index
      %c0_175 = arith.constant 0 : index
      %469 = vector.load %arg10[%c0_173, %c0_174, %c0_175] : memref<1x16x32xf32, #tpu.memory_space<vmem>>, vector<1x16x32xf32>
      %470 = vector.shape_cast %469 : vector<1x16x32xf32> to vector<16x32xf32>
      %471 = vector.shape_cast %464 : vector<16x32xf32> to vector<1x16x32xf32>
      tpu.vector_store %arg10[%c0_173, %c0_174, %c0_175], %471 {strides = array<i32>} : memref<1x16x32xf32, #tpu.memory_space<vmem>>, vector<1x16x32xf32>,
    } else {
    }
    return
  }
  func.func @transform_0(%arg0: i32, %arg1: i32) -> (i32, i32, i32) {
    %c0_i32 = arith.constant 0 : i32
    %c0_i32_0 = arith.constant 0 : i32
    %c0_i32_1 = arith.constant 0 : i32
    return %arg0, %c0_i32, %c0_i32_0 : i32, i32, i32
  }
  func.func @transform_1(%arg0: i32, %arg1: i32) -> (i32, i32, i32) {
    %c0_i32 = arith.constant 0 : i32
    %c0_i32_0 = arith.constant 0 : i32
    %c0_i32_1 = arith.constant 0 : i32
    return %arg0, %c0_i32, %c0_i32_0 : i32, i32, i32
  }
  func.func @transform_2(%arg0: i32, %arg1: i32) -> (i32, i32, i32, i32) {
    %c0_i32 = arith.constant 0 : i32
    %c0_i32_0 = arith.constant 0 : i32
    %c0_i32_1 = arith.constant 0 : i32
    %c0_i32_2 = arith.constant 0 : i32
    return %arg1, %c0_i32, %c0_i32_0, %c0_i32_1 : i32, i32, i32, i32
  }
  func.func @transform_3(%arg0: i32, %arg1: i32) -> (i32, i32, i32, i32) {
    %c0_i32 = arith.constant 0 : i32
    %c0_i32_0 = arith.constant 0 : i32
    %c0_i32_1 = arith.constant 0 : i32
    %c0_i32_2 = arith.constant 0 : i32
    return %arg1, %c0_i32, %c0_i32_0, %c0_i32_1 : i32, i32, i32, i32
  }
  func.func @transform_4(%arg0: i32, %arg1: i32) -> (i32, i32, i32) {
    %c0_i32 = arith.constant 0 : i32
    %c0_i32_0 = arith.constant 0 : i32
    %c0_i32_1 = arith.constant 0 : i32
    return %arg1, %c0_i32, %c0_i32_0 : i32, i32, i32
  }
  func.func @transform_5(%arg0: i32, %arg1: i32) -> (i32, i32, i32) {
    %c0_i32 = arith.constant 0 : i32
    %c0_i32_0 = arith.constant 0 : i32
    %c0_i32_1 = arith.constant 0 : i32
    return %arg1, %c0_i32, %c0_i32_0 : i32, i32, i32
  }
  func.func @transform_6(%arg0: i32, %arg1: i32) -> (i32, i32, i32) {
    %c0_i32 = arith.constant 0 : i32
    %c0_i32_0 = arith.constant 0 : i32
    %c0_i32_1 = arith.constant 0 : i32
    return %arg1, %c0_i32, %c0_i32_0 : i32, i32, i32
  }
  func.func @transform_7(%arg0: i32, %arg1: i32) -> (i32, i32, i32) {
    %c0_i32 = arith.constant 0 : i32
    %c0_i32_0 = arith.constant 0 : i32
    %c0_i32_1 = arith.constant 0 : i32
    return %arg1, %c0_i32, %c0_i32_0 : i32, i32, i32
  }
  func.func @transform_8(%arg0: i32, %arg1: i32) -> (i32, i32, i32) {
    %c0_i32 = arith.constant 0 : i32
    %c0_i32_0 = arith.constant 0 : i32
    %c0_i32_1 = arith.constant 0 : i32
    return %arg0, %c0_i32, %c0_i32_0 : i32, i32, i32
  }
}

</mosaic_0001>

<bundles_post_ra>
// kernel: tpu_custom_call.1
= control target key start
LH: loop header
LB: loop body
LE: loop exit
PB: predicated region body
PF: predicated region fallthrough
CT: control target
= control target key end

     0   :  { %s4995_s0 = inlined_call_operand.hbm [shape: f32[1,16,32], index: 0, kind: input, shape index: {}]   ;;  %s4996_s1 = inlined_call_operand.hbm [shape: bf16[1,16,32], index: 1, kind: input, shape index: {}]   ;;  %s4997_s2 = inlined_call_operand.vmem [shape: bf16[2,4,32,32], index: 2, kind: input, shape index: {}]   ;;  %s4998_s3 = inlined_call_operand.hbm [shape: bf16[2,4,32,32], index: 3, kind: input, shape index: {}]   ;;  %s4999_s4 = inlined_call_operand.vmem [shape: bf16[2,32,64], index: 4, kind: input, shape index: {}]   ;;  %s5000_s5 = inlined_call_operand.vmem [shape: bf16[2,64,32], index: 5, kind: input, shape index: {}]   ;;  %s5001_s6 = inlined_call_operand.vmem [shape: f32[2,1,64], index: 6, kind: input, shape index: {}]   ;;  %s5002_s7 = inlined_call_operand.vmem [shape: f32[2,15,32], index: 7, kind: input, shape index: {}]   ;;  %s5003_s8 = inlined_call_operand.hbm [shape: f32[1,16,32], index: 8, kind: output, shape index: {}]  }
   0x1   :  { %5005 = sst [smem:[#allocation15_spill]] %s4995_s0 }
   0x2   :  { %5006 = sst [smem:[#allocation16_spill]] %s4996_s1 }
   0x3   :  { %5007 = sst [smem:[#allocation17_spill]] %s4998_s3 }
   0x4   :  { %5008 = sst [smem:[#allocation18_spill]] %s5000_s5 }
   0x5   :  { %5009 = sst [smem:[#allocation19_spill]] %s5002_s7 }
   0x6   :  { %5010 = sst [smem:[#allocation20_spill]] %s5003_s8 }
   0x7   :  { %13 = vsyncpa [#allocation5], 0 }
   0x8   :  { %14 = vsyncpa [#allocation8], 0 }
   0x9   :  { %15 = vsyncpa [#allocation6], 0  ;;  %s4266_s27 = smov 0   ;;  %s4268_s28 = smov 0  }
   0xa   :  { %s4270_s29 = smov 0   ;;  %s4272_s30 = smov 0  }
   0xb   :  { %s4274_s9 = smov 0   ;;  %s4276_s10 = smov 0  }
   0xc LB: > { %s4295_s11 = sadd.s32 4294967295, %s4201_s10   ;;  %p125_p0 = scmp.ne.s32.totalorder %s4189_s29, %s4185_s28  ;;  %s4201_s10 = sphi %s4276_s10, %s21_s10   ;;  %s4197_s9 = sphi %s4274_s9, %s5031_s9   ;;  %s4193_s30 = sphi %s4272_s30, %s5030_s30   ;;  %s4189_s29 = sphi %s4270_s29, %s5029_s29   ;;  %s4185_s28 = sphi %s4268_s28, %s5028_s28   ;;  %s4181_s27 = sphi %s4266_s27, %s5027_s27  }
   0xd   : > { %p126_p1 = scmp.eq.s32.totalorder %s4201_s10, 0  ;;  %p131_p2 = scmp.ne.s32.totalorder %s4185_s28, %s4181_s27 }
   0xe   : > { %p5004_p3 = scmp.eq.s32.totalorder %s4295_s11, 0  ;;  %p3318_p4 = scmp.ge.s32.totalorder %s4201_s10, 1 }
   0xf   : > { %p127_p5 = por %p126_p1, %p125_p0  ;;  %p272_p6 = scmp.lt.s32.totalorder %s4201_s10, 3 }
  0x10   : > { %p4306_p7 = por %p5004_p3, %p131_p2  ;;  %s4203_s14 = smov [#allocation4]  }
  0x11   : > { %p4310_p8 = pnand %p3318_p4, %p272_p6  ;;  %s287_s15 = sshll.u32 %s4203_s14, 4  ;;  %s288_s15 = int_to_ptr.vmem [resolvable:$true] %s287_s15 }
  0x12   : > { %p3863_p11 = scmp.lt.s32.totalorder %s4201_s10, 2  ;;  %s4046_s18 = scalar_lea.vmem %s288_s15, 256 }
  0x13   : > { %p3850_p9 = pneg %p4310_p8  ;;  %p4047_p0 = scmp.ne.s32.totalorder %s288_s15, %s4046_s18 }
  0x14   : > { %p4323_p12 = pnand %p3863_p11, %p127_p5  ;;  %p4054_p4 = scmp.lt.s32.totalorder %s288_s15, %s288_s15 }
  0x15   : > { %p4318_p10 = pnand %p3850_p9, %p5004_p3  ;;  %p4055_p6 = scmp.lt.s32.totalorder %s4046_s18, %s4046_s18 }
  0x17   : > { %p4037_p13 = pneg %p4318_p10  ;;  %p4056_p9 = por %p4055_p6, %p4054_p4 }
  0x19   : > { %p4049_p1 = pnand %p4047_p0, %p4037_p13 }
  0x1b   : > { %p4050_p2 = pneg %p4049_p1 }
  0x1d   : > { %p4057_p3 = pnand %p4056_p9, %p4050_p2 }
  0x1f   : > { %4060 = shalt.err (!%p4057_p3)
}
  0x20   : > { %s4204_s19 = smov 128   ;;  %s4205_s20 = smov 8  }
  0x21   : > { %s5015_s0 = sld [smem:[#allocation15_spill]]  ;;  %s4206_s23 = smov [#allocation7]  }
  0x22   : > { %s303_s24 = sshll.u32 %s4206_s23, 4  ;;  %s304_s24 = int_to_ptr.vmem [resolvable:$true] %s303_s24 }
  0x23   : > { %s4072_s25 = scalar_lea.vmem %s304_s24, 128  ;;  %p4080_p1 = scmp.lt.s32.totalorder %s304_s24, %s304_s24 }
  0x24   : > { %p4073_p5 = scmp.ne.s32.totalorder %s304_s24, %s4072_s25  ;;  %p4081_p3 = scmp.lt.s32.totalorder %s4072_s25, %s4072_s25 }
  0x26   : > { %p4075_p11 = pnand %p4073_p5, %p4037_p13  ;;  %p4082_p2 = por %p4081_p3, %p4080_p1 }
  0x27   : > { %3853 = dma.hbm_to_vmem [thread:$0]  (!%p4318_p10), %s5015_s0, 256, %s288_s15, [#allocation5], %s4204_s19, %s4204_s19, %s4205_s20  }
  0x28   : > { %p4076_p0 = pneg %p4075_p11 }
  0x2a   : > { %p4083_p4 = pnand %p4082_p2, %p4076_p0 }
  0x2c   : > { %4086 = shalt.err (!%p4083_p4)
}
  0x2d   : > { %s4207_s26 = smov 64   ;;  %s4208_s27 = smov 4  }
  0x2e   : > { %s5016_s1 = sld [smem:[#allocation16_spill]]  ;;  %s325_s19 = sand.u32 1, %s4201_s10  }
  0x2f   : > { %s30_s20 = sadd.s32 1, %s4197_s9  ;;  %s327_s21 = sand.u32 1, %s4189_s29  }
  0x30   : > { %p31_p13 = scmp.ge.s32.totalorder %s30_s20, 2  ;;  %s3322_s22 = sshll.u32 %s327_s21, 6 }
  0x31   : > { %s3447_s23 = sshll.u32 %s4197_s9, 10  ;;  %s5017_s3 = sld [smem:[#allocation17_spill]] }
  0x32   : > { %s5033_s20 = smov (%p31_p13, %s30_s20), 0  ;;  %s329_s7 = scalar_lea.vmem [#allocation9], %s3322_s22 }
  0x33   : > { %s115_s8 = ssub.s32 %s4197_s9, %s5033_s20  ;;  %s336_s5 = sshll.u32 %s329_s7, 4  ;;  %s337_s5 = int_to_ptr.vmem [resolvable:$true] %s336_s5 }
  0x34   : > { %3856 = dma.hbm_to_vmem [thread:$0]  (!%p4318_p10), %s5016_s1, 128, %s304_s24, [#allocation8], %s4207_s26, %s4207_s26, %s4208_s27  }
  0x35   : > { %p4360_p6 = scmp.eq.s32.totalorder %s115_s8, 0  ;;  %s326_s14 = scalar_lea.sflag [#allocation5], %s325_s19 }
  0x36   : > { %p4089_p10 = pneg %p4323_p12  ;;  %s4100_s15 = scalar_lea.vmem %s337_s5, 1024 }
  0x37   : > { %s335_s16 = scalar_lea.hbm %s5017_s3, %s3447_s23  ;;  %p4101_p9 = scmp.ne.s32.totalorder %s337_s5, %s4100_s15 }
  0x38   : > { %s4209_s21 = smov [#allocation9]  }
  0x39   : > { %p4103_p5 = pnand %p4101_p9, %p4089_p10  ;;  %s4105_s18 = sshll.u32 %s4209_s21, 4  ;;  %s4106_s18 = int_to_ptr.vmem [resolvable:$false] %s4105_s18 }
  0x3a   : > { %s4107_s0 = scalar_lea.vmem %s4106_s18, 2048  ;;  %p4108_p0 = scmp.lt.s32.totalorder %s337_s5, %s4106_s18 }
  0x3b   : > { %p4104_p11 = pneg %p4103_p5  ;;  %p4109_p1 = scmp.lt.s32.totalorder %s4107_s0, %s4100_s15 }
  0x3d   : > { %p4110_p3 = por %p4109_p1, %p4108_p0 }
  0x3f   : > { %p4111_p2 = pnand %p4110_p3, %p4104_p11 }
  0x41   : > { %4114 = shalt.err (!%p4111_p2)
}
  0x42   : > { %3860 = dma.hbm_to_vmem [thread:$0]  (!%p4323_p12), %s335_s16, 1024, %s337_s5, %s326_s14, %s4207_s26, %s4207_s26, %s4208_s27  }
  0x43   : > { %s5019_s7 = sadd.s32 1, %s4189_s29  ;;  %378 = sbr.rel (%p4310_p8) target bundleno = 4326 (0x10e6), region = 52 }
  0x44   : > { %s4376_s8 = scalar_select %p4360_p6, %s4189_s29, %s5019_s7  }
  0x45   : > { %p5020_p4 = scmp.eq.s32.totalorder (!%p4310_p8), %s4295_s11, 0 }
  0x48   : > { %4164 = dma.done.wait (%p5020_p4), [#allocation5], 256   ;;  %p5021_p13 = pmov %p5020_p4 }
  0x49   : > { %p5022_p10 = pmov %p5020_p4 }
  0x4a   : > { %4166 = vsyncadd (%p5021_p13), [#allocation5], 4294967040 }
  0x4b   : > { %4168 = dma.done.wait (%p5022_p10), [#allocation8], 128   ;;  %p5023_p9 = pmov %p5020_p4 }
  0x4c   : > { %s388_s5 = sand.u32 1, %s4295_s11   ;;  %s390_s17 = sand.u32 1, %s4185_s28  }
  0x4d   : > { %4170 = vsyncadd (%p5023_p9), [#allocation8], 4294967168  ;;  %s3328_s26 = sshll.u32 %s390_s17, 6  ;;  %s389_s13 = scalar_lea.sflag [#allocation5], %s388_s5 }
  0x4e   : > { %s4390_s27 = scalar_lea.vmem [#allocation9], %s3328_s26 }
  0x4f   : > { %4172 = dma.done.wait (%p4306_p7), %s389_s13, 1024  }
  0x50   : > { %4174 = vsyncadd (%p4306_p7), %s389_s13, 4294966272  ;;  %p443_p8 = scmp.lt.s32.totalorder %s4193_s30, 1  ;;  %s5024_s26 = sld [smem:[#allocation18_spill]] }
  0x51   : > { %s5025_s23 = sld [smem:[#allocation19_spill]]  ;;  %p3337_p7 = scmp.ne.s32.totalorder %s4193_s30, 0 }
  0x52   : > { %s4398_s18 = scalar_select %p443_p8, %s4193_s30, 1 }
  0x53   : > { %470 = sbr.rel (%p3337_p7) target bundleno = 90 (0x5a), region = 68 }
  0x54   : > { %s3448_s19 = sshll.u32 %s4398_s18, 6  ;;  %s3449_s22 = sshll.u32 %s4398_s18, 4 }
  0x55   : > { %s4405_s16 = scalar_lea.vmem %s4997_s2, %s3448_s19  ;;  %s4410_s12 = scalar_lea.vmem %s4999_s4, %s3449_s22 }
  0x56   : > { %s3450_s15 = sshll.u32 %s4398_s18, 5  ;;  %s460_s7 = scalar_lea.vmem %s5001_s6, %s4398_s18 }
  0x57   : > { %s4420_s13 = scalar_lea.vmem %s5024_s26, %s3450_s15  ;;  %s4425_s19 = scalar_lea.vmem %s5025_s23, %s3449_s22 }
  0x58   : > { %v471_v0 = vld [vmem:[#allocation4] sm:$0xff]  ;;  %vm473_vm0 = vcmask 261120   ;;  %v472_v1 = vld [vmem:[#allocation4 + $0x8] sm:$0xff] }
  0x59   : > { %474 = vst.msk [vmem:[#allocation2] sm:$0xff] %vm473_vm0, %v471_v0  ;;  %475 = vst.msk [vmem:[#allocation2 + $0x8] sm:$0xff] %vm473_vm0, %v472_v1 }
  0x5a PF: > { %v3933_v2 = vld [vmem:[%s4405_s16 + $0x18] sm:$0xff]   ;;  %v4210_v3 = vmov 0.0   ;;  %v3934_v4 = vld [vmem:[%s4405_s16 + $0x8] sm:$0xff]   ;;  %v3935_v5 = vld [vmem:[%s4405_s16 + $0x10] sm:$0xff]   ;;  %vm4211_vm1 = vmmov 0   ;;  %vm509_vm2 = vcmask 261120   ;;  %v482_v10 = vlaneseq }
  0x5b   : > { %3568 = vmatprep.subr.bf16.mxu1 %v4210_v3  ;;  %3560 = vmatprep.subr.bf16.mxu0 %v4210_v3  ;;  %v3936_v6 = vld [vmem:[%s4405_s16] sm:$0xff]   ;;  %vm681_vm3 = vcmask 64512   ;;  %s4212_s1 = smov 112   ;;  %s4213_s3 = smov 120   ;;  %v3937_v34 = vld [vmem:[%s4405_s16 + $0x28] sm:$0xff]   ;;  %vm743_vm5 = vcmask 1043456  }
  0x5c   : > { %3569 = vmatpush3.bf16.msra.mxu1 %v3933_v2  ;;  %3572 = vmatprep.mubr.msk.bf16.mxu1 %vm4211_vm1, %v4210_v3  ;;  %v4455_v11 = vshrl.u32 %v482_v10, 7  ;;  %v4460_v14 = vld [vmem:[%s4425_s19] sm:$0xff]  ;;  %s4214_s22 = smov 104   ;;  %v485_v55 = vand.u32 127, %v482_v10  ;;  %v4215_v56 = vmov -1e+09  }
  0x5d   : > { %3561 = vmatpush3.bf16.msra.mxu0 %v3934_v4  ;;  %3570 = vmatprep.subr.bf16.mxu1 %v4210_v3  ;;  %v3938_v35 = vld [vmem:[%s4405_s16 + $0x20] sm:$0xff]   ;;  %vm788_vm6 = vcmask 60416   ;;  %s4216_s25 = smov 8   ;;  %s4217_s24 = smov 16   ;;  %vm910_vm7 = vcmask 126016   ;;  %vm1029_vm8 = vcmask 191616  }
  0x5e   : > { %3562 = vmatprep.subr.bf16.mxu0 %v4210_v3  ;;  %3564 = vmatprep.mubr.msk.bf16.mxu0 %vm4211_vm1, %v4210_v3  ;;  %v562_v12 = vsub.s32 1, %v4455_v11  ;;  %v495_v13 = vsub.s32 0, %v4455_v11  ;;  %vm486_vm4 = vcmp.ge.s32.totalorder %v4455_v11, %v485_v55  ;;  %s4218_s14 = smov 24   ;;  %vm1148_vm9 = vcmask 257216   ;;  %p3442_p12 = scmp.ne.s32.totalorder %s4193_s30, 1 }
  0x5f   : > { %v4529_v57 = vsel %vm486_vm4, 0.0, %v4215_v56  ;;  %vm3071_vm10 = vcmask 523264  }
  0x60   : > { %v4438_v7 = vld [vmem:[#allocation2] sm:$0xff]  ;;  %v4440_v8 = vld [vmem:[#allocation2 + $0x8] sm:$0xff]  ;;  %3571 = vmatpush3.bf16.msra.mxu1 %v3935_v5  ;;  %v563_v16 = vrot.slane %v4460_v14, %v562_v12  ;;  %v496_v17 = vrot.slane %v4460_v14, %v495_v13 }
  0x61   : > { %v488_v9 = vpack.c.bf16 %v4440_v8, %v4438_v7  ;;  %3563 = vmatpush3.bf16.msra.mxu0 %v3936_v6  ;;  %3584 = vmatprep.subr.bf16.mxu1 %v4210_v3 }
  0x62   : > { %3576 = vmatprep.subr.bf16.mxu0 %v4210_v3 }
  0x63   : > { %3573 = vmatmul.mubr.msk.bf16.vlgmr.msra.gmra.mxu1 %vm509_vm2, %v488_v9 }
  0x64   : > { %3565 = vmatmul.mubr.msk.bf16.vlgmr.msra.gmra.mxu0 %vm509_vm2, %v488_v9  ;;  %3586 = vmatprep.mubr.msk.bf16.mxu1 %vm4211_vm1, %v4210_v3 }
  0x65   : > { %3580 = vmatprep.mubr.msk.bf16.mxu0 %vm4211_vm1, %v4210_v3  ;;  %3577 = vmatpush3.bf16.msra.mxu0 %v3937_v34 }
  0x66   : > { %3578 = vmatprep.subr.bf16.mxu0 %v4210_v3 }
  0x69   : > { %3579 = vmatpush3.bf16.msra.mxu0 %v3938_v35 }
  0x6a   : > { %3590 = vmatprep.subr.bf16.mxu0 %v4210_v3 }
  0x6c   : > { %3581 = vmatmul.mubr.msk.bf16.vlgmr.msra.gmra.mxu0 %vm509_vm2, %v488_v9 }
  0x6d   : > { %3592 = vmatprep.mubr.msk.bf16.mxu0 %vm4211_vm1, %v4210_v3 }
 0x123   : > { %v610_v15 = vpop.f32.mrf.mxu1 }
 0x124   : > { %v547_v18 = vpop.f32.mrf.mxu0  ;;  %v611_v22 = vadd.f32 %v610_v15, %v563_v16 }
 0x125   : > { %v3574_v19 = vpop.f32.mrf.mxu1  ;;  %v548_v23 = vadd.f32 %v547_v18, %v496_v17 }
 0x126   : > { %v3566_v20 = vpop.f32.mrf.mxu0 }
 0x127   : > { %v613_v21 = vpop.f32.mrf.mxu1 }
 0x128   : > { %v614_v24 = vadd.f32 %v613_v21, %v563_v16  ;;  %v550_v25 = vpop.f32.mrf.mxu0 }
 0x129   : > { %v3575_v26 = vpop.f32.mrf.mxu1  ;;  %v551_v27 = vadd.f32 %v550_v25, %v496_v17 }
 0x12a   : > { %v617_v28 = vpack.c.bf16 %v614_v24, %v611_v22  ;;  %v3567_v29 = vpop.f32.mrf.mxu0 }
 0x12b   : > { %v554_v30 = vpack.c.bf16 %v551_v27, %v548_v23 }
 0x12c   : > { %914 = vrot.lane.b32.xlu1 %v617_v28, %s4212_s1  ;;  %794 = vrot.lane.b32.xlu0 %v617_v28, %s4213_s3  ;;  %v686_v31 = vsel %vm681_vm3, %v617_v28, 0  ;;  %v1151_v32 = vrot.slane %v617_v28, 4 }
 0x12d   : > { %3585 = vmatpush3.bf16.xpose.msra.mxu1 %v686_v31  ;;  %v1150_v33 = vrot.slane %v554_v30, 4 }
 0x12e   : > { %3596 = vmatprep.subr.bf16.mxu1 %v4210_v3  ;;  %v1156_v45 = vsel %vm681_vm3, %v1151_v32, 0 }
 0x130   : > { %912 = vrot.lane.b32.xlu1 %v554_v30, %s4212_s1  ;;  %791 = vrot.lane.b32.xlu0 %v554_v30, %s4213_s3 }
 0x134   : > { %1031 = vrot.lane.b32.xlu1 %v554_v30, %s4214_s22  ;;  %1033 = vrot.lane.b32.xlu0 %v617_v28, %s4214_s22 }
 0x135   : > { %3587 = vmatmul.mubr.msk.bf16.vlgmr.msra.gmra.mxu1 %vm681_vm3, %v554_v30 }
 0x136   : > { %3598 = vmatprep.mubr.msk.bf16.mxu1 %vm4211_vm1, %v4210_v3 }
 0x138   : > { %1261 = vrot.lane.b32.xlu0 %v1151_v32, %s4213_s3  ;;  %1259 = vrot.lane.b32.xlu1 %v1150_v33, %s4213_s3 }
 0x13c   : > { %1379 = vrot.lane.b32.xlu0 %v1151_v32, %s4212_s1  ;;  %1377 = vrot.lane.b32.xlu1 %v1150_v33, %s4212_s1 }
 0x140   : > { %1497 = vrot.lane.b32.xlu0 %v1151_v32, %s4214_s22  ;;  %1495 = vrot.lane.b32.xlu1 %v1150_v33, %s4214_s22 }
 0x19e   : > { %v795_v36 = vpop.permute.xlu0 %794  ;;  %v915_v38 = vpop.permute.xlu1 %914 }
 0x19f   : > { %v800_v37 = vsel %vm681_vm3, %v795_v36, 0  ;;  %v920_v40 = vsel %vm681_vm3, %v915_v38, 0 }
 0x1a0   : > { %3597 = vmatpush3.bf16.xpose.msra.mxu1 %v800_v37 }
 0x1a1   : > { %3608 = vmatprep.subr.bf16.mxu1 %v4210_v3 }
 0x1a2   : > { %v792_v39 = vpop.permute.xlu0 %791  ;;  %v913_v42 = vpop.permute.xlu1 %912 }
 0x1a6   : > { %v1034_v41 = vpop.permute.xlu0 %1033  ;;  %v1032_v44 = vpop.permute.xlu1 %1031 }
 0x1a7   : > { %3599 = vmatmul.mubr.msk.bf16.vlgmr.msra.gmra.mxu1 %vm681_vm3, %v792_v39  ;;  %v1039_v43 = vsel %vm681_vm3, %v1034_v41, 0 }
 0x1a8   : > { %3609 = vmatpush3.bf16.xpose.msra.mxu1 %v920_v40  ;;  %3610 = vmatprep.mubr.msk.bf16.mxu1 %vm4211_vm1, %v4210_v3 }
 0x1a9   : > { %3620 = vmatprep.subr.bf16.mxu1 %v4210_v3 }
 0x1aa   : > { %v1262_v46 = vpop.permute.xlu0 %1261  ;;  %v1260_v49 = vpop.permute.xlu1 %1259 }
 0x1ab   : > { %v1267_v47 = vsel %vm681_vm3, %v1262_v46, 0 }
 0x1ae   : > { %v1380_v48 = vpop.permute.xlu0 %1379  ;;  %v1378_v52 = vpop.permute.xlu1 %1377 }
 0x1af   : > { %3611 = vmatmul.mubr.msk.bf16.vlgmr.msra.gmra.mxu1 %vm681_vm3, %v913_v42  ;;  %v1385_v50 = vsel %vm681_vm3, %v1380_v48, 0 }
 0x1b0   : > { %3621 = vmatpush3.bf16.xpose.msra.mxu1 %v1039_v43  ;;  %3622 = vmatprep.mubr.msk.bf16.mxu1 %vm4211_vm1, %v4210_v3  ;;  %v625_v43 = vsub.s32 2, %v4455_v11 }
 0x1b1   : > { %3632 = vmatprep.subr.bf16.mxu1 %v4210_v3 }
 0x1b2   : > { %v1498_v51 = vpop.permute.xlu0 %1497  ;;  %v1496_v54 = vpop.permute.xlu1 %1495 }
 0x1b3   : > { %v1503_v53 = vsel %vm681_vm3, %v1498_v51, 0 }
 0x1b7   : > { %3623 = vmatmul.mubr.msk.bf16.vlgmr.msra.gmra.mxu1 %vm681_vm3, %v1032_v44  ;;  %v673_v44 = vpop.f32.mrf.mxu0 }
 0x1b8   : > { %3633 = vmatpush3.bf16.xpose.msra.mxu1 %v1156_v45  ;;  %3634 = vmatprep.mubr.msk.bf16.mxu1 %vm4211_vm1, %v4210_v3 }
 0x1b9   : > { %3644 = vmatprep.subr.bf16.mxu1 %v4210_v3  ;;  %v3582_v48 = vpop.f32.mrf.mxu0 }
 0x1bf   : > { %3635 = vmatmul.mubr.msk.bf16.vlgmr.msra.gmra.mxu1 %vm681_vm3, %v1150_v33 }
 0x1c0   : > { %3645 = vmatpush3.bf16.xpose.msra.mxu1 %v1267_v47  ;;  %3646 = vmatprep.mubr.msk.bf16.mxu1 %vm4211_vm1, %v4210_v3  ;;  %v626_v47 = vrot.slane %v4460_v14, %v625_v43 }
 0x1c1   : > { %3656 = vmatprep.subr.bf16.mxu1 %v4210_v3 }
 0x1c7   : > { %3647 = vmatmul.mubr.msk.bf16.vlgmr.msra.gmra.mxu1 %vm681_vm3, %v1260_v49 }
 0x1c8   : > { %3657 = vmatpush3.bf16.xpose.msra.mxu1 %v1385_v50  ;;  %3658 = vmatprep.mubr.msk.bf16.mxu1 %vm4211_vm1, %v4210_v3 }
 0x1c9   : > { %3668 = vmatprep.subr.bf16.mxu1 %v4210_v3 }
 0x1cf   : > { %3659 = vmatmul.mubr.msk.bf16.vlgmr.msra.gmra.mxu1 %vm681_vm3, %v1378_v52 }
 0x1d0   : > { %3669 = vmatpush3.bf16.xpose.msra.mxu1 %v1503_v53  ;;  %3670 = vmatprep.mubr.msk.bf16.mxu1 %vm4211_vm1, %v4210_v3  ;;  %v674_v53 = vadd.f32 %v673_v44, %v626_v47 }
 0x1d1   : > { %3680 = vmatprep.subr.bf16.mxu1 %v4210_v3 }
 0x1d7   : > { %3671 = vmatmul.mubr.msk.bf16.vlgmr.msra.gmra.mxu1 %vm681_vm3, %v1496_v54  ;;  %v676_v54 = vpop.f32.mrf.mxu0 }
 0x1d8   : > { %3684 = vmatprep.mubr.msk.bf16.mxu1 %vm4211_vm1, %v4210_v3 }
 0x1f5   : > { %v722_v58 = vpop.f32.mrf.mxu1 }
 0x1f6   : > { %v723_v59 = vadd.f32 %v722_v58, %v4529_v57  ;;  %v677_v58 = vadd.f32 %v676_v54, %v626_v47 }
 0x1f7   : > { %v3588_v60 = vpop.f32.mrf.mxu1 }
 0x1f8   : > { %v728_v61 = vsel %vm681_vm3, %v723_v59, -inf }
 0x1f9   : > { %729 = vmax.xlane.f32.xlu0 %v728_v61  ;;  %v725_v62 = vpop.f32.mrf.mxu1 }
 0x1fa   : > { %v4570_v62 = vpack.c.bf16 %v677_v58, %v674_v53 }
 0x1fb   : > { %v3589_v63 = vpop.f32.mrf.mxu1 }
 0x1fc   : > { %v1210_v47 = vrot.slane %v4570_v62, 4 }
 0x267   : > { %v836_v0 = vpop.f32.mrf.mxu1 }
 0x268   : > { %v4534_v1 = vadd.f32 %v836_v0, %v4529_v57  ;;  %v745_v0 = vsel %vm743_vm5, %v4570_v62, 0 }
 0x269   : > { %v3600_v2 = vpop.f32.mrf.mxu1  ;;  %3591 = vmatpush3.bf16.msra.mxu0 %v745_v0 }
 0x26a   : > { %v842_v4 = vsel %vm681_vm3, %v4534_v1, -inf  ;;  %3602 = vmatprep.subr.bf16.mxu0 %v4210_v3 }
 0x26b   : > { %843 = vmax.xlane.f32.xlu1 %v842_v4  ;;  %v839_v5 = vpop.f32.mrf.mxu1 }
 0x26d   : > { %v3601_v6 = vpop.f32.mrf.mxu1 }
 0x26f   : > { %v956_v9 = vpop.f32.mrf.mxu1 }
 0x270   : > { %v4539_v10 = vadd.f32 %v956_v9, %v4529_v57 }
 0x271   : > { %v3612_v15 = vpop.f32.mrf.mxu1 }
 0x272   : > { %v962_v16 = vsel %vm681_vm3, %v4539_v10, -inf }
 0x273   : > { %963 = vmax.xlane.f32.xlu0 %v962_v16  ;;  %v959_v17 = vpop.f32.mrf.mxu1 }
 0x275   : > { %v3613_v18 = vpop.f32.mrf.mxu1 }
 0x277   : > { %v1075_v19 = vpop.f32.mrf.mxu1 }
 0x278   : > { %v4544_v20 = vadd.f32 %v1075_v19, %v4529_v57 }
 0x279   : > { %v3624_v21 = vpop.f32.mrf.mxu1 }
 0x27a   : > { %v1081_v22 = vsel %vm681_vm3, %v4544_v20, -inf }
 0x27b   : > { %1082 = vmax.xlane.f32.xlu0 %v1081_v22  ;;  %v1078_v23 = vpop.f32.mrf.mxu1 }
 0x27d   : > { %v3625_v24 = vpop.f32.mrf.mxu1 }
 0x27f   : > { %v1192_v25 = vpop.f32.mrf.mxu1 }
 0x280   : > { %v4549_v26 = vadd.f32 %v1192_v25, %v4529_v57 }
 0x281   : > { %v3636_v27 = vpop.f32.mrf.mxu1 }
 0x282   : > { %v730_v28 = vpop.xlane.xlu0 %729  ;;  %v1198_v29 = vsel %vm681_vm3, %v4549_v26, -inf }
 0x283   : > { %v731_v30 = vsub.f32 %v723_v59, %v730_v28  ;;  %1199 = vmax.xlane.f32.xlu1 %v1198_v29  ;;  %v1195_v31 = vpop.f32.mrf.mxu1  ;;  %v3583_v59 = vpop.f32.mrf.mxu0 }
 0x285   : > { %v732_v32 = vmul.f32 1.442695, %v731_v30  ;;  %v3637_v33 = vpop.f32.mrf.mxu1 }
 0x287   : > { %3958 = vpow2.f32 %v732_v32  ;;  %v1303_v34 = vpop.f32.mrf.mxu1 }
 0x288   : > { %v4554_v35 = vadd.f32 %v1303_v34, %v4529_v57 }
 0x289   : > { %v3648_v36 = vpop.f32.mrf.mxu1 }
 0x28a   : > { %v1309_v37 = vsel %vm681_vm3, %v4554_v35, -inf }
 0x28b   : > { %1310 = vmax.xlane.f32.xlu0 %v1309_v37  ;;  %v1306_v38 = vpop.f32.mrf.mxu1 }
 0x28d   : > { %v3649_v39 = vpop.f32.mrf.mxu1 }
 0x28f   : > { %v1421_v40 = vpop.f32.mrf.mxu1 }
 0x290   : > { %v4559_v41 = vadd.f32 %v1421_v40, %v4529_v57 }
 0x291   : > { %v3660_v42 = vpop.f32.mrf.mxu1 }
 0x292   : > { %v1427_v45 = vsel %vm681_vm3, %v4559_v41, -inf }
 0x293   : > { %1428 = vmax.xlane.f32.xlu1 %v1427_v45  ;;  %v1424_v46 = vpop.f32.mrf.mxu1 }
 0x294   : > { %v3959_v49 = vpop.eup %3958 }
 0x295   : > { %v3661_v50 = vpop.f32.mrf.mxu1  ;;  %v734_v51 = vsel %vm681_vm3, %v3959_v49, 0.0 }
 0x297   : > { %735 = vadd.xlane.f32.xlu1 %v734_v51  ;;  %v1539_v52 = vpop.f32.mrf.mxu1 }
 0x298   : > { %v1540_v55 = vadd.f32 %v1539_v52, %v4529_v57 }
 0x299   : > { %v3672_v56 = vpop.f32.mrf.mxu1 }
 0x29a   : > { %v1545_v60 = vsel %vm681_vm3, %v1540_v55, -inf }
 0x29b   : > { %1546 = vmax.xlane.f32.xlu0 %v1545_v60  ;;  %v1542_v61 = vpop.f32.mrf.mxu1 }
 0x29d   : > { %v3673_v63 = vpop.f32.mrf.mxu1 }
 0x2f4   : > { %v844_v2 = vpop.xlane.xlu1 %843 }
 0x2f5   : > { %v845_v57 = vsub.f32 %v4534_v1, %v844_v2 }
 0x2f7   : > { %v846_v4 = vmul.f32 1.442695, %v845_v57 }
 0x2f9   : > { %3960 = vpow2.f32 %v846_v4  ;;  %v1215_v4 = vsel %vm743_vm5, %v1210_v47, 0 }
 0x2fc   : > { %v964_v5 = vpop.xlane.xlu0 %963 }
 0x2fd   : > { %v965_v6 = vsub.f32 %v4539_v10, %v964_v5 }
 0x2ff   : > { %v966_v9 = vmul.f32 1.442695, %v965_v6 }
 0x301   : > { %3962 = vpow2.f32 %v966_v9 }
 0x304   : > { %v1083_v15 = vpop.xlane.xlu0 %1082 }
 0x305   : > { %v1084_v16 = vsub.f32 %v4544_v20, %v1083_v15 }
 0x306   : > { %v3961_v17 = vpop.eup %3960 }
 0x307   : > { %v1085_v18 = vmul.f32 1.442695, %v1084_v16  ;;  %v848_v19 = vsel %vm681_vm3, %v3961_v17, 0.0 }
 0x308   : > { %849 = vadd.xlane.f32.xlu0 %v848_v19 }
 0x309   : > { %3964 = vpow2.f32 %v1085_v18 }
 0x30c   : > { %v1200_v23 = vpop.xlane.xlu1 %1199 }
 0x30d   : > { %v1201_v27 = vsub.f32 %v4549_v26, %v1200_v23 }
 0x30e   : > { %v4579_v21 = vpop.eup %3962 }
 0x30f   : > { %v968_v1 = vsel %vm681_vm3, %v4579_v21, 0.0  ;;  %v1202_v32 = vmul.f32 1.442695, %v1201_v27 }
 0x310   : > { %969 = vadd.xlane.f32.xlu1 %v968_v1 }
 0x314   : > { %v1311_v28 = vpop.xlane.xlu0 %1310 }
 0x315   : > { %v1312_v31 = vsub.f32 %v4554_v35, %v1311_v28 }
 0x316   : > { %v4583_v22 = vpop.eup %3964 }
 0x317   : > { %v1087_v10 = vsel %vm681_vm3, %v4583_v22, 0.0  ;;  %v1313_v36 = vmul.f32 1.442695, %v1312_v31 }
 0x318   : > { %1088 = vadd.xlane.f32.xlu0 %v1087_v10 }
 0x31c   : > { %v1429_v20 = vpop.xlane.xlu1 %1428 }
 0x31d   : > { %v1430_v33 = vsub.f32 %v4559_v41, %v1429_v20 }
 0x31f   : > { %v1431_v37 = vmul.f32 1.442695, %v1430_v33 }
 0x320   : > { %v736_v24 = vpop.xlane.xlu1 %735 }
 0x321   : > { %974 = vrot.lane.b32.xlu1 %v4570_v62, %s4212_s1  ;;  %3966 = vrcp.f32 %v736_v24 }
 0x322   : > { %3968 = vpow2.f32 %v1202_v32 }
 0x323   : > { %3970 = vpow2.f32 %v1313_v36 }
 0x324   : > { %v1547_v34 = vpop.xlane.xlu0 %1546  ;;  %3972 = vpow2.f32 %v1431_v37 }
 0x325   : > { %1093 = vrot.lane.b32.xlu1 %v4570_v62, %s4214_s22  ;;  %v1548_v38 = vsub.f32 %v1540_v55, %v1547_v34 }
 0x327   : > { %v1549_v26 = vmul.f32 1.442695, %v1548_v38 }
 0x329   : > { %3974 = vpow2.f32 %v1549_v26 }
 0x32e   : > { %855 = vrot.lane.b32.xlu0 %v4570_v62, %s4213_s3  ;;  %v3967_v25 = vpop.eup %3966 }
 0x32f   : > { %v738_v29 = vmul.f32 %v3967_v25, %v3959_v49  ;;  %v3969_v39 = vpop.eup %3968 }
 0x330   : > { %v4599_v40 = vpop.eup %3970  ;;  %v1204_v35 = vsel %vm681_vm3, %v3969_v39, 0.0 }
 0x331   : > { %v739_v30 = vpack.c.bf16 %v738_v29, %v738_v29  ;;  %v4602_v41 = vpop.eup %3972  ;;  %v1315_v42 = vsel %vm681_vm3, %v4599_v40, 0.0 }
 0x332   : > { %v1433_v44 = vsel %vm681_vm3, %v4602_v41, 0.0 }
 0x333   : > { %3593 = vmatmul.mubr.msk.bf16.vlgmr.msra.gmra.mxu0 %vm681_vm3, %v739_v30 }
 0x334   : > { %3604 = vmatprep.mubr.msk.bf16.mxu0 %vm4211_vm1, %v4210_v3 }
 0x336   : > { %v4608_v45 = vpop.eup %3974 }
 0x337   : > { %v1551_v46 = vsel %vm681_vm3, %v4608_v45, 0.0 }
 0x349   : > { %1205 = vadd.xlane.f32.xlu1 %v1204_v35 }
 0x34d   : > { %1316 = vadd.xlane.f32.xlu1 %v1315_v42  ;;  %1434 = vadd.xlane.f32.xlu0 %v1433_v44 }
 0x351   : > { %1552 = vadd.xlane.f32.xlu1 %v1551_v46 }
 0x362   : > { %1439 = vrot.lane.b32.xlu1 %v1210_v47, %s4212_s1 }
 0x363   : > { %1321 = vrot.lane.b32.xlu0 %v1210_v47, %s4213_s3 }
 0x367   : > { %1557 = vrot.lane.b32.xlu0 %v1210_v47, %s4214_s22 }
 0x391   : > { %v850_v48 = vpop.xlane.xlu0 %849 }
 0x392   : > { %3976 = vrcp.f32 %v850_v48 }
 0x399   : > { %v970_v49 = vpop.xlane.xlu1 %969 }
 0x39a   : > { %3978 = vrcp.f32 %v970_v49 }
 0x39d   : > { %v975_v55 = vpop.permute.xlu1 %974 }
 0x39e   : > { %v980_v59 = vsel %vm743_vm5, %v975_v55, 0 }
 0x39f   : > { %v3977_v50 = vpop.eup %3976 }
 0x3a0   : > { %v852_v52 = vmul.f32 %v3977_v50, %v3961_v17 }
 0x3a1   : > { %v1089_v51 = vpop.xlane.xlu0 %1088  ;;  %v1094_v61 = vpop.permute.xlu1 %1093 }
 0x3a2   : > { %3980 = vrcp.f32 %v1089_v51  ;;  %v853_v56 = vpack.c.bf16 %v852_v52, %v852_v52  ;;  %v1099_v0 = vsel %vm743_vm5, %v1094_v61, 0 }
 0x3a5   : > { %v856_v53 = vpop.permute.xlu0 %855 }
 0x3a6   : > { %v861_v54 = vsel %vm743_vm5, %v856_v53, 0 }
 0x3a7   : > { %3603 = vmatpush3.bf16.msra.mxu0 %v861_v54  ;;  %v3979_v58 = vpop.eup %3978 }
 0x3a8   : > { %3614 = vmatprep.subr.bf16.mxu0 %v4210_v3  ;;  %v972_v60 = vmul.f32 %v3979_v58, %v4579_v21 }
 0x3aa   : > { %3605 = vmatmul.mubr.msk.bf16.vlgmr.msra.gmra.mxu0 %vm681_vm3, %v853_v56  ;;  %v973_v62 = vpack.c.bf16 %v972_v60, %v972_v60 }
 0x3ab   : > { %3615 = vmatpush3.bf16.msra.mxu0 %v980_v59  ;;  %3616 = vmatprep.mubr.msk.bf16.mxu0 %vm4211_vm1, %v4210_v3 }
 0x3ac   : > { %3626 = vmatprep.subr.bf16.mxu0 %v4210_v3 }
 0x3af   : > { %v3981_v63 = vpop.eup %3980 }
 0x3b0   : > { %v1091_v2 = vmul.f32 %v3981_v63, %v4583_v22 }
 0x3b2   : > { %3617 = vmatmul.mubr.msk.bf16.vlgmr.msra.gmra.mxu0 %vm681_vm3, %v973_v62  ;;  %v1092_v57 = vpack.c.bf16 %v1091_v2, %v1091_v2 }
 0x3b3   : > { %3627 = vmatpush3.bf16.msra.mxu0 %v1099_v0  ;;  %3628 = vmatprep.mubr.msk.bf16.mxu0 %vm4211_vm1, %v4210_v3  ;;  %v3939_v0 = vld [vmem:[%s4405_s16 + $0x38] sm:$0xff]  }
 0x3b4   : > { %3638 = vmatprep.subr.bf16.mxu0 %v4210_v3  ;;  %3681 = vmatpush3.bf16.msra.mxu1 %v3939_v0 }
 0x3b5   : > { %3682 = vmatprep.subr.bf16.mxu1 %v4210_v3 }
 0x3ba   : > { %3629 = vmatmul.mubr.msk.bf16.vlgmr.msra.gmra.mxu0 %vm681_vm3, %v1092_v57  ;;  %v3940_v57 = vld [vmem:[%s4405_s16 + $0x30] sm:$0xff]  }
 0x3bb   : > { %3639 = vmatpush3.bf16.msra.mxu0 %v1215_v4  ;;  %3640 = vmatprep.mubr.msk.bf16.mxu0 %vm4211_vm1, %v4210_v3 }
 0x3bc   : > { %3650 = vmatprep.subr.bf16.mxu0 %v4210_v3  ;;  %3683 = vmatpush3.bf16.msra.mxu1 %v3940_v57 }
 0x3bd   : > { %3696 = vmatprep.subr.bf16.mxu1 %v4210_v3 }
 0x3d2   : > { %v1206_v5 = vpop.xlane.xlu1 %1205 }
 0x3d3   : > { %3982 = vrcp.f32 %v1206_v5 }
 0x3d6   : > { %v1317_v6 = vpop.xlane.xlu1 %1316  ;;  %v1435_v9 = vpop.xlane.xlu0 %1434 }
 0x3d7   : > { %3984 = vrcp.f32 %v1317_v6 }
 0x3d8   : > { %3986 = vrcp.f32 %v1435_v9 }
 0x3da   : > { %v1322_v17 = vpop.permute.xlu0 %1321  ;;  %v1553_v21 = vpop.xlane.xlu1 %1552 }
 0x3db   : > { %v1327_v1 = vsel %vm743_vm5, %v1322_v17, 0  ;;  %3988 = vrcp.f32 %v1553_v21 }
 0x3de   : > { %v1440_v10 = vpop.permute.xlu1 %1439  ;;  %v1558_v27 = vpop.permute.xlu0 %1557 }
 0x3df   : > { %v1445_v24 = vsel %vm743_vm5, %v1440_v10, 0  ;;  %v1563_v31 = vsel %vm743_vm5, %v1558_v27, 0 }
 0x3e0   : > { %v3983_v15 = vpop.eup %3982 }
 0x3e1   : > { %v1208_v16 = vmul.f32 %v3983_v15, %v3969_v39 }
 0x3e3   : > { %v1209_v18 = vpack.c.bf16 %v1208_v16, %v1208_v16 }
 0x3e4   : > { %v3985_v19 = vpop.eup %3984 }
 0x3e5   : > { %3641 = vmatmul.mubr.msk.bf16.vlgmr.msra.gmra.mxu0 %vm681_vm3, %v1209_v18  ;;  %v1319_v22 = vmul.f32 %v3985_v19, %v4599_v40  ;;  %v3987_v20 = vpop.eup %3986 }
 0x3e6   : > { %3651 = vmatpush3.bf16.msra.mxu0 %v1327_v1  ;;  %3652 = vmatprep.mubr.msk.bf16.mxu0 %vm4211_vm1, %v4210_v3  ;;  %v1437_v25 = vmul.f32 %v3987_v20, %v4602_v41 }
 0x3e7   : > { %3662 = vmatprep.subr.bf16.mxu0 %v4210_v3  ;;  %v1320_v23 = vpack.c.bf16 %v1319_v22, %v1319_v22 }
 0x3e8   : > { %v1438_v28 = vpack.c.bf16 %v1437_v25, %v1437_v25  ;;  %v3989_v29 = vpop.eup %3988  ;;  %v1622_v25 = vsub.s32 3, %v4455_v11 }
 0x3e9   : > { %v1555_v34 = vmul.f32 %v3989_v29, %v4608_v45 }
 0x3ea   : > { %v1623_v27 = vrot.slane %v4460_v14, %v1622_v25 }
 0x3eb   : > { %v1556_v38 = vpack.c.bf16 %v1555_v34, %v1555_v34 }
 0x3ed   : > { %3653 = vmatmul.mubr.msk.bf16.vlgmr.msra.gmra.mxu0 %vm681_vm3, %v1320_v23 }
 0x3ee   : > { %3663 = vmatpush3.bf16.msra.mxu0 %v1445_v24  ;;  %3664 = vmatprep.mubr.msk.bf16.mxu0 %vm4211_vm1, %v4210_v3 }
 0x3ef   : > { %3674 = vmatprep.subr.bf16.mxu0 %v4210_v3 }
 0x3f3   : > { %v781_v30 = vpop.f32.mrf.mxu0 }
 0x3f4   : > { %v787_v32 = vpack.c.bf16 %v781_v30, %v781_v30 }
 0x3f5   : > { %3665 = vmatmul.mubr.msk.bf16.vlgmr.msra.gmra.mxu0 %vm681_vm3, %v1438_v28  ;;  %v3594_v33 = vpop.f32.mrf.mxu0 }
 0x3f6   : > { %3675 = vmatpush3.bf16.msra.mxu0 %v1563_v31  ;;  %3676 = vmatprep.mubr.msk.bf16.mxu0 %vm4211_vm1, %v4210_v3  ;;  %789 = vst.msk [vmem:[#allocation3] sm:$0xf] %vm788_vm6, %v787_v32 }
 0x3f7   : > { %3688 = vmatprep.subr.bf16.mxu0 %v4210_v3  ;;  %v784_v36 = vpop.f32.mrf.mxu0 }
 0x3f9   : > { %v3595_v37 = vpop.f32.mrf.mxu0 }
 0x3fd   : > { %3677 = vmatmul.mubr.msk.bf16.vlgmr.msra.gmra.mxu0 %vm681_vm3, %v1556_v38 }
 0x3fe   : > { %3692 = vmatprep.mubr.msk.bf16.mxu0 %vm4211_vm1, %v4210_v3 }
 0x46a   : > { %v897_v26 = vpop.f32.mrf.mxu0 }
 0x46b   : > { %v3452_v39 = vpack.c.bf16 %v897_v26, %v897_v26 }
 0x46c   : > { %v3606_v40 = vpop.f32.mrf.mxu0 }
 0x46d   : > { %907 = vrot.lane.b32.xlu0 %v3452_v39, %s4216_s25 }
 0x46e   : > { %v900_v35 = vpop.f32.mrf.mxu0 }
 0x470   : > { %v3607_v41 = vpop.f32.mrf.mxu0 }
 0x472   : > { %v1016_v42 = vpop.f32.mrf.mxu0 }
 0x473   : > { %v3453_v44 = vpack.c.bf16 %v1016_v42, %v1016_v42 }
 0x474   : > { %v3618_v45 = vpop.f32.mrf.mxu0 }
 0x475   : > { %1026 = vrot.lane.b32.xlu0 %v3453_v44, %s4217_s24 }
 0x476   : > { %v1019_v46 = vpop.f32.mrf.mxu0 }
 0x478   : > { %v3619_v47 = vpop.f32.mrf.mxu0 }
 0x479   : > { %v3943_v47 = vld [vmem:[%s4390_s27 + $0x10] sm:$0xff]  }
 0x47a   : > { %v1135_v48 = vpop.f32.mrf.mxu0 }
 0x47b   : > { %v3454_v49 = vpack.c.bf16 %v1135_v48, %v1135_v48  ;;  %v4690_v48 = vld [vmem:[#allocation7] sm:$0xff]  }
 0x47c   : > { %v3630_v50 = vpop.f32.mrf.mxu0 }
 0x47d   : > { %1145 = vrot.lane.b32.xlu0 %v3454_v49, %s4218_s14  ;;  %v3945_v49 = vld [vmem:[%s4390_s27 + $0x8] sm:$0xff]   ;;  %v3946_v50 = vld [vmem:[%s4390_s27] sm:$0xff]  }
 0x47e   : > { %v1138_v51 = vpop.f32.mrf.mxu0  ;;  %3689 = vmatpush3.bf16.msra.mxu0 %v3945_v49 }
 0x47f   : > { %3690 = vmatprep.subr.bf16.mxu0 %v4210_v3 }
 0x480   : > { %v3631_v52 = vpop.f32.mrf.mxu0 }
 0x482   : > { %3691 = vmatpush3.bf16.msra.mxu0 %v3946_v50 }
 0x483   : > { %3704 = vmatprep.subr.bf16.mxu0 %v4210_v3 }
 0x4a5   : > { %v1251_v53 = vpop.f32.mrf.mxu0 }
 0x4a6   : > { %v1257_v54 = vpack.c.bf16 %v1251_v53, %v1251_v53 }
 0x4a7   : > { %v3642_v55 = vpop.f32.mrf.mxu0 }
 0x4a8   : > { %1258 = vst.msk [vmem:[#allocation3 + $0x4] sm:$0xf] %vm788_vm6, %v1257_v54 }
 0x4a9   : > { %v1254_v56 = vpop.f32.mrf.mxu0 }
 0x4ab   : > { %v3643_v58 = vpop.f32.mrf.mxu0 }
 0x4ac   : > { %v4702_v58 = vld [vmem:[%s4425_s19 + $0x8] sm:$0x7f] }
 0x4ad   : > { %v1363_v59 = vpop.f32.mrf.mxu0 }
 0x4ae   : > { %v3455_v60 = vpack.c.bf16 %v1363_v59, %v1363_v59 }
 0x4af   : > { %v3654_v61 = vpop.f32.mrf.mxu0 }
 0x4b0   : > { %1373 = vrot.lane.b32.xlu1 %v3455_v60, %s4216_s25  ;;  %v1717_v60 = vrot.slane %v4702_v58, %v562_v12  ;;  %v1799_v12 = vsub.s32 5, %v4455_v11 }
 0x4b1   : > { %v1366_v62 = vpop.f32.mrf.mxu0 }
 0x4b2   : > { %v1722_v62 = vsub.s32 4, %v4455_v11 }
 0x4b3   : > { %v3655_v63 = vpop.f32.mrf.mxu0 }
 0x4b4   : > { %v1723_v57 = vrot.slane %v4702_v58, %v1722_v62 }
 0x4b5   : > { %v1481_v2 = vpop.f32.mrf.mxu0 }
 0x4b6   : > { %v3456_v4 = vpack.c.bf16 %v1481_v2, %v1481_v2 }
 0x4b7   : > { %v3666_v5 = vpop.f32.mrf.mxu0 }
 0x4b8   : > { %1491 = vrot.lane.b32.xlu1 %v3456_v4, %s4217_s24 }
 0x4b9   : > { %v1484_v6 = vpop.f32.mrf.mxu0 }
 0x4bb   : > { %v3667_v9 = vpop.f32.mrf.mxu0 }
 0x4bd   : > { %v1599_v15 = vpop.f32.mrf.mxu0 }
 0x4be   : > { %v3457_v16 = vpack.c.bf16 %v1599_v15, %v1599_v15  ;;  %v1800_v15 = vrot.slane %v4460_v14, %v1799_v12 }
 0x4bf   : > { %v3678_v17 = vpop.f32.mrf.mxu0 }
 0x4c0   : > { %1609 = vrot.lane.b32.xlu1 %v3457_v16, %s4218_s14 }
 0x4c1   : > { %v1602_v18 = vpop.f32.mrf.mxu0 }
 0x4c3   : > { %v3679_v19 = vpop.f32.mrf.mxu0 }
 0x4df   : > { %v908_v21 = vpop.permute.xlu0 %907 }
 0x4e0   : > { %911 = vst.msk [vmem:[#allocation3] sm:$0xf] %vm910_vm7, %v908_v21 }
 0x4e7   : > { %v1027_v1 = vpop.permute.xlu0 %1026 }
 0x4e8   : > { %1030 = vst.msk [vmem:[#allocation3] sm:$0xf] %vm1029_vm8, %v1027_v1 }
 0x4ef   : > { %v1146_v22 = vpop.permute.xlu0 %1145 }
 0x4f0   : > { %1149 = vst.msk [vmem:[#allocation3] sm:$0xf] %vm1148_vm9, %v1146_v22 }
 0x522   : > { %v1374_v10 = vpop.permute.xlu1 %1373 }
 0x523   : > { %1376 = vst.msk [vmem:[#allocation3 + $0x4] sm:$0xf] %vm910_vm7, %v1374_v10 }
 0x52a   : > { %v1492_v23 = vpop.permute.xlu1 %1491 }
 0x52b   : > { %1494 = vst.msk [vmem:[#allocation3 + $0x4] sm:$0xf] %vm1029_vm8, %v1492_v23 }
 0x532   : > { %v1610_v20 = vpop.permute.xlu1 %1609 }
 0x533   : > { %1612 = vst.msk [vmem:[#allocation3 + $0x4] sm:$0xf] %vm1148_vm9, %v1610_v20  ;;  %v1734_v20 = vrot.slane %v4460_v14, %v1722_v62 }
 0x53a   : > { %v3941_v24 = vld [vmem:[#allocation3] sm:$0xff]  }
 0x53b   : > { %3685 = vmatmul.mubr.msk.bf16.vlgmr.msra.gmra.mxu1 %vm509_vm2, %v3941_v24 }
 0x53c   : > { %3700 = vmatprep.mubr.msk.bf16.mxu1 %vm4211_vm1, %v4210_v3 }
 0x5fb   : > { %v1678_v28 = vpop.f32.mrf.mxu1 }
 0x5fc   : > { %v1679_v29 = vadd.f32 %v1678_v28, %v1623_v27 }
 0x5fd   : > { %v3686_v30 = vpop.f32.mrf.mxu1 }
 0x5fe   : > { %v1685_v31 = vadd.f32 %v1679_v29, %v4438_v7 }
 0x5ff   : > { %v1681_v32 = vpop.f32.mrf.mxu1 }
 0x600   : > { %v1682_v33 = vadd.f32 %v1681_v32, %v1623_v27  ;;  %v1687_v34 = vsel %vm509_vm2, %v1685_v31, 0.0 }
 0x601   : > { %1688 = vadd.xlane.f32.xlu0 %v1687_v34  ;;  %v3687_v36 = vpop.f32.mrf.mxu1 }
 0x602   : > { %v1686_v37 = vadd.f32 %v1682_v33, %v4440_v8  ;;  %v3942_v8 = vld [vmem:[%s4390_s27 + $0x18] sm:$0xff]   ;;  %v3947_v36 = vld [vmem:[%s4390_s27 + $0x28] sm:$0xff]  }
 0x603   : > { %3697 = vmatpush3.bf16.msra.mxu1 %v3942_v8 }
 0x604   : > { %v1690_v38 = vsel %vm509_vm2, %v1686_v37, 0.0  ;;  %3698 = vmatprep.subr.bf16.mxu1 %v4210_v3 }
 0x605   : > { %1691 = vadd.xlane.f32.xlu1 %v1690_v38 }
 0x607   : > { %3699 = vmatpush3.bf16.msra.mxu1 %v3943_v47 }
 0x608   : > { %3712 = vmatprep.subr.bf16.mxu1 %v4210_v3 }
 0x60a   : > { %3701 = vmatmul.mubr.msk.bf16.vlgmr.msra.gmra.mxu1 %vm509_vm2, %v4690_v48 }
 0x60b   : > { %3714 = vmatprep.mubr.msk.bf16.mxu1 %vm4211_vm1, %v4210_v3 }
 0x68a   : > { %v1689_v26 = vpop.xlane.xlu0 %1688 }
 0x68b   : > { %v1694_v39 = vmul.f32 0.03125, %v1689_v26 }
 0x68d   : > { %v1696_v40 = vsub.f32 %v1685_v31, %v1694_v39 }
 0x68e   : > { %v1692_v35 = vpop.xlane.xlu1 %1691 }
 0x68f   : > { %v1695_v41 = vmul.f32 0.03125, %v1692_v35  ;;  %v1698_v42 = vmul.f32 %v1696_v40, %v1696_v40 }
 0x691   : > { %v1697_v7 = vsub.f32 %v1686_v37, %v1695_v41  ;;  %v1700_v44 = vsel %vm509_vm2, %v1698_v42, 0.0  ;;  %v3948_v37 = vld [vmem:[%s4390_s27 + $0x20] sm:$0xff]  }
 0x692   : > { %1701 = vadd.xlane.f32.xlu0 %v1700_v44 }
 0x693   : > { %v1699_v45 = vmul.f32 %v1697_v7, %v1697_v7 }
 0x695   : > { %v1703_v46 = vsel %vm509_vm2, %v1699_v45, 0.0 }
 0x696   : > { %1704 = vadd.xlane.f32.xlu0 %v1703_v46 }
 0x6ca   : > { %v1855_v16 = vpop.f32.mrf.mxu1 }
 0x6cb   : > { %v1856_v18 = vadd.f32 %v1855_v16, %v1800_v15 }
 0x6cc   : > { %v3702_v17 = vpop.f32.mrf.mxu1 }
 0x6ce   : > { %v1858_v19 = vpop.f32.mrf.mxu1 }
 0x6cf   : > { %v1859_v21 = vadd.f32 %v1858_v19, %v1800_v15 }
 0x6d0   : > { %v3703_v1 = vpop.f32.mrf.mxu1 }
 0x6d1   : > { %v1862_v22 = vpack.c.bf16 %v1859_v21, %v1856_v18 }
 0x6d3   : > { %2036 = vrot.lane.b32.xlu1 %v1862_v22, %s4213_s3  ;;  %v1930_v10 = vsel %vm681_vm3, %v1862_v22, 0  ;;  %v2390_v14 = vrot.slane %v1862_v22, 4 }
 0x6d4   : > { %3713 = vmatpush3.bf16.xpose.msra.mxu1 %v1930_v10 }
 0x6d5   : > { %3724 = vmatprep.subr.bf16.mxu1 %v4210_v3 }
 0x6d7   : > { %2155 = vrot.lane.b32.xlu1 %v1862_v22, %s4212_s1 }
 0x71b   : > { %v1702_v51 = vpop.xlane.xlu0 %1701 }
 0x71c   : > { %v1706_v52 = vmul.f32 0.03125, %v1702_v51 }
 0x71e   : > { %v1708_v53 = vadd.f32 1e-05, %v1706_v52 }
 0x71f   : > { %v1705_v54 = vpop.xlane.xlu0 %1704 }
 0x720   : > { %3990 = vrsqrt.f32 %v1708_v53  ;;  %v1707_v55 = vmul.f32 0.03125, %v1705_v54 }
 0x722   : > { %v1709_v56 = vadd.f32 1e-05, %v1707_v55 }
 0x724   : > { %3992 = vrsqrt.f32 %v1709_v56 }
 0x72d   : > { %v3991_v59 = vpop.eup %3990 }
 0x72e   : > { %v1712_v61 = vmul.f32 %v3991_v59, %v1696_v40 }
 0x730   : > { %v1718_v2 = vmul.f32 %v1717_v60, %v1712_v61 }
 0x731   : > { %v3993_v63 = vpop.eup %3992 }
 0x732   : > { %v1713_v0 = vmul.f32 %v3993_v63, %v1697_v7  ;;  %v4709_v5 = vadd.f32 %v1723_v57, %v1718_v2  ;;  %v2395_v7 = vsel %vm681_vm3, %v2390_v14, 0 }
 0x734   : > { %v1719_v4 = vmul.f32 %v1717_v60, %v1713_v0 }
 0x736   : > { %v4711_v6 = vadd.f32 %v1723_v57, %v1719_v4 }
 0x738   : > { %v1726_v9 = vpack.c.bf16 %v4711_v6, %v4709_v5 }
 0x73a   : > { %3693 = vmatmul.mubr.msk.bf16.vlgmr.msra.gmra.mxu0 %vm509_vm2, %v1726_v9 }
 0x73b   : > { %3708 = vmatprep.mubr.msk.bf16.mxu0 %vm4211_vm1, %v4210_v3  ;;  %3705 = vmatpush3.bf16.msra.mxu0 %v3947_v36 }
 0x73c   : > { %3706 = vmatprep.subr.bf16.mxu0 %v4210_v3 }
 0x73f   : > { %3707 = vmatpush3.bf16.msra.mxu0 %v3948_v37 }
 0x740   : > { %3718 = vmatprep.subr.bf16.mxu0 %v4210_v3 }
 0x742   : > { %3709 = vmatmul.mubr.msk.bf16.vlgmr.msra.gmra.mxu0 %vm509_vm2, %v4690_v48 }
 0x743   : > { %3720 = vmatprep.mubr.msk.bf16.mxu0 %vm4211_vm1, %v4210_v3 }
 0x745   : > { %v2037_v32 = vpop.permute.xlu1 %2036 }
 0x746   : > { %v2042_v33 = vsel %vm681_vm3, %v2037_v32, 0 }
 0x749   : > { %v2156_v38 = vpop.permute.xlu1 %2155 }
 0x74a   : > { %v2161_v39 = vsel %vm681_vm3, %v2156_v38, 0  ;;  %v4804_v38 = vld [vmem:[%s4425_s19] sm:$0xff] }
 0x7fa   : > { %v1784_v23 = vpop.f32.mrf.mxu0 }
 0x7fb   : > { %v1785_v28 = vadd.f32 %v1784_v23, %v1734_v20 }
 0x7fc   : > { %v3694_v24 = vpop.f32.mrf.mxu0 }
 0x7fe   : > { %v1787_v27 = vpop.f32.mrf.mxu0 }
 0x7ff   : > { %v1788_v29 = vadd.f32 %v1787_v27, %v1734_v20 }
 0x800   : > { %v3695_v30 = vpop.f32.mrf.mxu0 }
 0x801   : > { %v1791_v31 = vpack.c.bf16 %v1788_v29, %v1785_v28 }
 0x803   : > { %2153 = vrot.lane.b32.xlu1 %v1791_v31, %s4212_s1  ;;  %2033 = vrot.lane.b32.xlu0 %v1791_v31, %s4213_s3  ;;  %v2389_v34 = vrot.slane %v1791_v31, 4 }
 0x804   : > { %3715 = vmatmul.mubr.msk.bf16.vlgmr.msra.gmra.mxu1 %vm681_vm3, %v1791_v31 }
 0x805   : > { %3725 = vmatpush3.bf16.xpose.msra.mxu1 %v2042_v33  ;;  %3726 = vmatprep.mubr.msk.bf16.mxu1 %vm4211_vm1, %v4210_v3 }
 0x806   : > { %3736 = vmatprep.subr.bf16.mxu1 %v4210_v3 }
 0x807   : > { %2271 = vrot.lane.b32.xlu1 %v1791_v31, %s4214_s22  ;;  %2273 = vrot.lane.b32.xlu0 %v1862_v22, %s4214_s22 }
 0x80b   : > { %2500 = vrot.lane.b32.xlu0 %v2390_v14, %s4213_s3  ;;  %2498 = vrot.lane.b32.xlu1 %v2389_v34, %s4213_s3 }
 0x80f   : > { %2618 = vrot.lane.b32.xlu0 %v2390_v14, %s4212_s1  ;;  %2616 = vrot.lane.b32.xlu1 %v2389_v34, %s4212_s1 }
 0x813   : > { %2736 = vrot.lane.b32.xlu0 %v2390_v14, %s4214_s22  ;;  %2734 = vrot.lane.b32.xlu1 %v2389_v34, %s4214_s22  ;;  %v1870_v14 = vsub.s32 6, %v4455_v11 }
 0x875   : > { %v2034_v26 = vpop.permute.xlu0 %2033  ;;  %v2154_v35 = vpop.permute.xlu1 %2153 }
 0x876   : > { %3727 = vmatmul.mubr.msk.bf16.vlgmr.msra.gmra.mxu1 %vm681_vm3, %v2034_v26  ;;  %v1871_v26 = vrot.slane %v4804_v38, %v1870_v14 }
 0x877   : > { %3737 = vmatpush3.bf16.xpose.msra.mxu1 %v2161_v39  ;;  %3738 = vmatprep.mubr.msk.bf16.mxu1 %vm4211_vm1, %v4210_v3 }
 0x878   : > { %3748 = vmatprep.subr.bf16.mxu1 %v4210_v3 }
 0x879   : > { %v2274_v40 = vpop.permute.xlu0 %2273  ;;  %v2272_v42 = vpop.permute.xlu1 %2271 }
 0x87a   : > { %v2279_v41 = vsel %vm681_vm3, %v2274_v40, 0 }
 0x87d   : > { %v2501_v44 = vpop.permute.xlu0 %2500  ;;  %v2499_v8 = vpop.permute.xlu1 %2498 }
 0x87e   : > { %3739 = vmatmul.mubr.msk.bf16.vlgmr.msra.gmra.mxu1 %vm681_vm3, %v2154_v35  ;;  %v2506_v45 = vsel %vm681_vm3, %v2501_v44, 0 }
 0x87f   : > { %3749 = vmatpush3.bf16.xpose.msra.mxu1 %v2279_v41  ;;  %3750 = vmatprep.mubr.msk.bf16.mxu1 %vm4211_vm1, %v4210_v3 }
 0x880   : > { %3760 = vmatprep.subr.bf16.mxu1 %v4210_v3 }
 0x881   : > { %v2619_v46 = vpop.permute.xlu0 %2618  ;;  %v2617_v49 = vpop.permute.xlu1 %2616 }
 0x882   : > { %v2624_v47 = vsel %vm681_vm3, %v2619_v46, 0 }
 0x885   : > { %v2737_v48 = vpop.permute.xlu0 %2736  ;;  %v2735_v51 = vpop.permute.xlu1 %2734 }
 0x886   : > { %3751 = vmatmul.mubr.msk.bf16.vlgmr.msra.gmra.mxu1 %vm681_vm3, %v2272_v42  ;;  %v2742_v50 = vsel %vm681_vm3, %v2737_v48, 0 }
 0x887   : > { %3761 = vmatpush3.bf16.xpose.msra.mxu1 %v2395_v7  ;;  %3762 = vmatprep.mubr.msk.bf16.mxu1 %vm4211_vm1, %v4210_v3 }
 0x888   : > { %3772 = vmatprep.subr.bf16.mxu1 %v4210_v3 }
 0x88e   : > { %3763 = vmatmul.mubr.msk.bf16.vlgmr.msra.gmra.mxu1 %vm681_vm3, %v2389_v34  ;;  %v1918_v34 = vpop.f32.mrf.mxu0 }
 0x88f   : > { %3773 = vmatpush3.bf16.xpose.msra.mxu1 %v2506_v45  ;;  %3774 = vmatprep.mubr.msk.bf16.mxu1 %vm4211_vm1, %v4210_v3  ;;  %v1919_v7 = vadd.f32 %v1918_v34, %v1871_v26 }
 0x890   : > { %3784 = vmatprep.subr.bf16.mxu1 %v4210_v3  ;;  %v3710_v39 = vpop.f32.mrf.mxu0 }
 0x892   : > { %v1921_v44 = vpop.f32.mrf.mxu0 }
 0x893   : > { %v1922_v46 = vadd.f32 %v1921_v44, %v1871_v26 }
 0x896   : > { %3775 = vmatmul.mubr.msk.bf16.vlgmr.msra.gmra.mxu1 %vm681_vm3, %v2499_v8  ;;  %v3711_v8 = vpop.f32.mrf.mxu0 }
 0x897   : > { %3785 = vmatpush3.bf16.xpose.msra.mxu1 %v2624_v47  ;;  %3786 = vmatprep.mubr.msk.bf16.mxu1 %vm4211_vm1, %v4210_v3 }
 0x898   : > { %3796 = vmatprep.subr.bf16.mxu1 %v4210_v3 }
 0x89e   : > { %3787 = vmatmul.mubr.msk.bf16.vlgmr.msra.gmra.mxu1 %vm681_vm3, %v2617_v49  ;;  %v4811_v49 = vpack.c.bf16 %v1922_v46, %v1919_v7 }
 0x89f   : > { %3797 = vmatpush3.bf16.xpose.msra.mxu1 %v2742_v50  ;;  %3798 = vmatprep.mubr.msk.bf16.mxu1 %vm4211_vm1, %v4210_v3 }
 0x8a0   : > { %3808 = vmatprep.subr.bf16.mxu1 %v4210_v3 }
 0x8a6   : > { %3799 = vmatmul.mubr.msk.bf16.vlgmr.msra.gmra.mxu1 %vm681_vm3, %v2735_v51  ;;  %v1988_v51 = vsel %vm743_vm5, %v4811_v49, 0 }
 0x8a7   : > { %3812 = vmatprep.mubr.msk.bf16.mxu1 %vm4211_vm1, %v4210_v3  ;;  %3719 = vmatpush3.bf16.msra.mxu0 %v1988_v51 }
 0x8a8   : > { %3730 = vmatprep.subr.bf16.mxu0 %v4210_v3 }
 0x8c4   : > { %v1966_v52 = vpop.f32.mrf.mxu1 }
 0x8c5   : > { %v1972_v53 = vsel %vm681_vm3, %v1966_v52, -inf }
 0x8c6   : > { %1973 = vmax.xlane.f32.xlu0 %v1972_v53  ;;  %v3716_v54 = vpop.f32.mrf.mxu1 }
 0x8c8   : > { %v1969_v55 = vpop.f32.mrf.mxu1 }
 0x8ca   : > { %v3717_v56 = vpop.f32.mrf.mxu1 }
 0x936   : > { %v4784_v59 = vpop.f32.mrf.mxu1 }
 0x937   : > { %v2084_v60 = vsel %vm681_vm3, %v4784_v59, -inf }
 0x938   : > { %2085 = vmax.xlane.f32.xlu1 %v2084_v60  ;;  %v3728_v61 = vpop.f32.mrf.mxu1 }
 0x93a   : > { %v2081_v62 = vpop.f32.mrf.mxu1 }
 0x93c   : > { %v3729_v63 = vpop.f32.mrf.mxu1 }
 0x93e   : > { %v2197_v0 = vpop.f32.mrf.mxu1 }
 0x93f   : > { %v2203_v2 = vsel %vm681_vm3, %v2197_v0, -inf }
 0x940   : > { %2204 = vmax.xlane.f32.xlu0 %v2203_v2  ;;  %v3740_v57 = vpop.f32.mrf.mxu1 }
 0x942   : > { %v2200_v4 = vpop.f32.mrf.mxu1 }
 0x944   : > { %v3741_v9 = vpop.f32.mrf.mxu1 }
 0x946   : > { %v2315_v15 = vpop.f32.mrf.mxu1 }
 0x947   : > { %v2321_v16 = vsel %vm681_vm3, %v2315_v15, -inf }
 0x948   : > { %2322 = vmax.xlane.f32.xlu0 %v2321_v16  ;;  %v3752_v17 = vpop.f32.mrf.mxu1 }
 0x94a   : > { %v2318_v18 = vpop.f32.mrf.mxu1 }
 0x94c   : > { %v3753_v19 = vpop.f32.mrf.mxu1 }
 0x94e   : > { %v4790_v21 = vpop.f32.mrf.mxu1 }
 0x94f   : > { %v1974_v1 = vpop.xlane.xlu0 %1973  ;;  %v2437_v22 = vsel %vm681_vm3, %v4790_v21, -inf }
 0x950   : > { %v1975_v10 = vsub.f32 %v1966_v52, %v1974_v1  ;;  %2438 = vmax.xlane.f32.xlu1 %v2437_v22  ;;  %v3764_v23 = vpop.f32.mrf.mxu1 }
 0x952   : > { %v1976_v20 = vmul.f32 1.442695, %v1975_v10  ;;  %v2434_v24 = vpop.f32.mrf.mxu1 }
 0x954   : > { %3994 = vpow2.f32 %v1976_v20  ;;  %v3765_v27 = vpop.f32.mrf.mxu1 }
 0x956   : > { %v4794_v28 = vpop.f32.mrf.mxu1 }
 0x957   : > { %v2548_v29 = vsel %vm681_vm3, %v4794_v28, -inf }
 0x958   : > { %2549 = vmax.xlane.f32.xlu0 %v2548_v29  ;;  %v3776_v30 = vpop.f32.mrf.mxu1 }
 0x95a   : > { %v2545_v31 = vpop.f32.mrf.mxu1 }
 0x95c   : > { %v3777_v32 = vpop.f32.mrf.mxu1 }
 0x95e   : > { %v4798_v33 = vpop.f32.mrf.mxu1 }
 0x95f   : > { %v2666_v36 = vsel %vm681_vm3, %v4798_v33, -inf }
 0x960   : > { %2667 = vmax.xlane.f32.xlu1 %v2666_v36  ;;  %v3788_v37 = vpop.f32.mrf.mxu1 }
 0x961   : > { %v3995_v40 = vpop.eup %3994 }
 0x962   : > { %v2663_v35 = vpop.f32.mrf.mxu1  ;;  %v1978_v41 = vsel %vm681_vm3, %v3995_v40, 0.0 }
 0x963   : > { %v2449_v35 = vrot.slane %v4811_v49, 4 }
 0x964   : > { %1979 = vadd.xlane.f32.xlu1 %v1978_v41  ;;  %v3789_v42 = vpop.f32.mrf.mxu1 }
 0x966   : > { %v2778_v45 = vpop.f32.mrf.mxu1 }
 0x967   : > { %v2784_v47 = vsel %vm681_vm3, %v2778_v45, -inf }
 0x968   : > { %2785 = vmax.xlane.f32.xlu0 %v2784_v47  ;;  %v3800_v48 = vpop.f32.mrf.mxu1 }
 0x96a   : > { %v2781_v50 = vpop.f32.mrf.mxu1 }
 0x96c   : > { %v3801_v52 = vpop.f32.mrf.mxu1 }
 0x9c1   : > { %v2086_v53 = vpop.xlane.xlu1 %2085 }
 0x9c2   : > { %v2087_v54 = vsub.f32 %v4784_v59, %v2086_v53 }
 0x9c4   : > { %v2088_v55 = vmul.f32 1.442695, %v2087_v54 }
 0x9c6   : > { %3996 = vpow2.f32 %v2088_v55 }
 0x9c9   : > { %v2205_v56 = vpop.xlane.xlu0 %2204 }
 0x9ca   : > { %v2206_v60 = vsub.f32 %v2197_v0, %v2205_v56 }
 0x9cc   : > { %v2207_v61 = vmul.f32 1.442695, %v2206_v60 }
 0x9ce   : > { %3998 = vpow2.f32 %v2207_v61  ;;  %v2454_v61 = vsel %vm743_vm5, %v2449_v35, 0 }
 0x9d1   : > { %v2323_v62 = vpop.xlane.xlu0 %2322 }
 0x9d2   : > { %v2324_v63 = vsub.f32 %v2315_v15, %v2323_v62 }
 0x9d3   : > { %v3997_v2 = vpop.eup %3996 }
 0x9d4   : > { %v2325_v57 = vmul.f32 1.442695, %v2324_v63  ;;  %v2090_v4 = vsel %vm681_vm3, %v3997_v2, 0.0 }
 0x9d5   : > { %2091 = vadd.xlane.f32.xlu0 %v2090_v4 }
 0x9d6   : > { %4000 = vpow2.f32 %v2325_v57 }
 0x9d9   : > { %v2439_v17 = vpop.xlane.xlu1 %2438 }
 0x9da   : > { %v2440_v1 = vsub.f32 %v4790_v21, %v2439_v17 }
 0x9db   : > { %v4818_v9 = vpop.eup %3998 }
 0x9dc   : > { %v2209_v16 = vsel %vm681_vm3, %v4818_v9, 0.0  ;;  %v2441_v24 = vmul.f32 1.442695, %v2440_v1 }
 0x9dd   : > { %2210 = vadd.xlane.f32.xlu1 %v2209_v16 }
 0x9e1   : > { %v2550_v22 = vpop.xlane.xlu0 %2549 }
 0x9e2   : > { %v2551_v20 = vsub.f32 %v4794_v28, %v2550_v22 }
 0x9e3   : > { %v4822_v59 = vpop.eup %4000 }
 0x9e4   : > { %v2327_v0 = vsel %vm681_vm3, %v4822_v59, 0.0  ;;  %v2552_v30 = vmul.f32 1.442695, %v2551_v20 }
 0x9e5   : > { %2328 = vadd.xlane.f32.xlu0 %v2327_v0 }
 0x9e9   : > { %v2668_v15 = vpop.xlane.xlu1 %2667 }
 0x9ea   : > { %v2669_v27 = vsub.f32 %v4798_v33, %v2668_v15 }
 0x9ec   : > { %v2670_v31 = vmul.f32 1.442695, %v2669_v27 }
 0x9ed   : > { %v1980_v18 = vpop.xlane.xlu1 %1979 }
 0x9ee   : > { %2215 = vrot.lane.b32.xlu1 %v4811_v49, %s4212_s1  ;;  %4002 = vrcp.f32 %v1980_v18 }
 0x9ef   : > { %4004 = vpow2.f32 %v2441_v24 }
 0x9f0   : > { %4006 = vpow2.f32 %v2552_v30 }
 0x9f1   : > { %v2786_v29 = vpop.xlane.xlu0 %2785  ;;  %4008 = vpow2.f32 %v2670_v31 }
 0x9f2   : > { %2333 = vrot.lane.b32.xlu1 %v4811_v49, %s4214_s22  ;;  %v2787_v32 = vsub.f32 %v2778_v45, %v2786_v29 }
 0x9f4   : > { %v2788_v21 = vmul.f32 1.442695, %v2787_v32 }
 0x9f6   : > { %4010 = vpow2.f32 %v2788_v21 }
 0x9fb   : > { %2097 = vrot.lane.b32.xlu0 %v4811_v49, %s4213_s3  ;;  %v4003_v19 = vpop.eup %4002 }
 0x9fc   : > { %v1982_v10 = vmul.f32 %v4003_v19, %v3995_v40  ;;  %v4005_v34 = vpop.eup %4004 }
 0x9fd   : > { %v4838_v36 = vpop.eup %4006  ;;  %v2443_v28 = vsel %vm681_vm3, %v4005_v34, 0.0 }
 0x9fe   : > { %v1983_v23 = vpack.c.bf16 %v1982_v10, %v1982_v10  ;;  %v4841_v33 = vpop.eup %4008  ;;  %v2554_v37 = vsel %vm681_vm3, %v4838_v36, 0.0 }
 0x9ff   : > { %v2672_v26 = vsel %vm681_vm3, %v4841_v33, 0.0 }
 0xa00   : > { %3721 = vmatmul.mubr.msk.bf16.vlgmr.msra.gmra.mxu0 %vm681_vm3, %v1983_v23 }
 0xa01   : > { %3732 = vmatprep.mubr.msk.bf16.mxu0 %vm4211_vm1, %v4210_v3 }
 0xa03   : > { %v4847_v39 = vpop.eup %4010 }
 0xa04   : > { %v2790_v40 = vsel %vm681_vm3, %v4847_v39, 0.0 }
 0xa16   : > { %2444 = vadd.xlane.f32.xlu1 %v2443_v28 }
 0xa1a   : > { %2555 = vadd.xlane.f32.xlu1 %v2554_v37  ;;  %2673 = vadd.xlane.f32.xlu0 %v2672_v26 }
 0xa1e   : > { %2791 = vadd.xlane.f32.xlu1 %v2790_v40 }
 0xa2f   : > { %2678 = vrot.lane.b32.xlu1 %v2449_v35, %s4212_s1 }
 0xa30   : > { %2560 = vrot.lane.b32.xlu0 %v2449_v35, %s4213_s3 }
 0xa34   : > { %2796 = vrot.lane.b32.xlu0 %v2449_v35, %s4214_s22 }
 0xa5e   : > { %v2092_v41 = vpop.xlane.xlu0 %2091 }
 0xa5f   : > { %4012 = vrcp.f32 %v2092_v41 }
 0xa66   : > { %v2211_v42 = vpop.xlane.xlu1 %2210 }
 0xa67   : > { %4014 = vrcp.f32 %v2211_v42 }
 0xa6a   : > { %v2216_v47 = vpop.permute.xlu1 %2215 }
 0xa6b   : > { %v2221_v50 = vsel %vm743_vm5, %v2216_v47, 0 }
 0xa6c   : > { %v4013_v7 = vpop.eup %4012 }
 0xa6d   : > { %v2094_v45 = vmul.f32 %v4013_v7, %v3997_v2 }
 0xa6e   : > { %v2329_v44 = vpop.xlane.xlu0 %2328  ;;  %v2334_v52 = vpop.permute.xlu1 %2333 }
 0xa6f   : > { %4016 = vrcp.f32 %v2329_v44  ;;  %v2095_v48 = vpack.c.bf16 %v2094_v45, %v2094_v45  ;;  %v2339_v55 = vsel %vm743_vm5, %v2334_v52, 0 }
 0xa72   : > { %v2098_v46 = vpop.permute.xlu0 %2097 }
 0xa73   : > { %v2103_v8 = vsel %vm743_vm5, %v2098_v46, 0 }
 0xa74   : > { %3731 = vmatpush3.bf16.msra.mxu0 %v2103_v8  ;;  %v4015_v49 = vpop.eup %4014 }
 0xa75   : > { %3742 = vmatprep.subr.bf16.mxu0 %v4210_v3  ;;  %v2213_v51 = vmul.f32 %v4015_v49, %v4818_v9 }
 0xa77   : > { %3733 = vmatmul.mubr.msk.bf16.vlgmr.msra.gmra.mxu0 %vm681_vm3, %v2095_v48  ;;  %v2214_v53 = vpack.c.bf16 %v2213_v51, %v2213_v51 }
 0xa78   : > { %3743 = vmatpush3.bf16.msra.mxu0 %v2221_v50  ;;  %3744 = vmatprep.mubr.msk.bf16.mxu0 %vm4211_vm1, %v4210_v3 }
 0xa79   : > { %3754 = vmatprep.subr.bf16.mxu0 %v4210_v3 }
 0xa7c   : > { %v4017_v54 = vpop.eup %4016 }
 0xa7d   : > { %v2331_v56 = vmul.f32 %v4017_v54, %v4822_v59 }
 0xa7f   : > { %3745 = vmatmul.mubr.msk.bf16.vlgmr.msra.gmra.mxu0 %vm681_vm3, %v2214_v53  ;;  %v2332_v60 = vpack.c.bf16 %v2331_v56, %v2331_v56 }
 0xa80   : > { %3755 = vmatpush3.bf16.msra.mxu0 %v2339_v55  ;;  %3756 = vmatprep.mubr.msk.bf16.mxu0 %vm4211_vm1, %v4210_v3 }
 0xa81   : > { %3766 = vmatprep.subr.bf16.mxu0 %v4210_v3 }
 0xa87   : > { %3757 = vmatmul.mubr.msk.bf16.vlgmr.msra.gmra.mxu0 %vm681_vm3, %v2332_v60 }
 0xa88   : > { %3767 = vmatpush3.bf16.msra.mxu0 %v2454_v61  ;;  %3768 = vmatprep.mubr.msk.bf16.mxu0 %vm4211_vm1, %v4210_v3  ;;  %v3949_v61 = vld [vmem:[%s4390_s27 + $0x38] sm:$0xff]  }
 0xa89   : > { %3778 = vmatprep.subr.bf16.mxu0 %v4210_v3  ;;  %3809 = vmatpush3.bf16.msra.mxu1 %v3949_v61 }
 0xa8a   : > { %3810 = vmatprep.subr.bf16.mxu1 %v4210_v3 }
 0xa9f   : > { %v2445_v62 = vpop.xlane.xlu1 %2444 }
 0xaa0   : > { %4018 = vrcp.f32 %v2445_v62 }
 0xaa3   : > { %v2556_v63 = vpop.xlane.xlu1 %2555  ;;  %v2674_v2 = vpop.xlane.xlu0 %2673 }
 0xaa4   : > { %4020 = vrcp.f32 %v2556_v63  ;;  %v3950_v63 = vld [vmem:[%s4390_s27 + $0x30] sm:$0xff]  }
 0xaa5   : > { %4022 = vrcp.f32 %v2674_v2  ;;  %3811 = vmatpush3.bf16.msra.mxu1 %v3950_v63 }
 0xaa6   : > { %3824 = vmatprep.subr.bf16.mxu1 %v4210_v3 }
 0xaa7   : > { %v2561_v9 = vpop.permute.xlu0 %2560  ;;  %v2792_v0 = vpop.xlane.xlu1 %2791 }
 0xaa8   : > { %v2566_v17 = vsel %vm743_vm5, %v2561_v9, 0  ;;  %4024 = vrcp.f32 %v2792_v0 }
 0xaab   : > { %v2679_v18 = vpop.permute.xlu1 %2678  ;;  %v2797_v23 = vpop.permute.xlu0 %2796 }
 0xaac   : > { %v2684_v22 = vsel %vm743_vm5, %v2679_v18, 0  ;;  %v2802_v29 = vsel %vm743_vm5, %v2797_v23, 0 }
 0xaad   : > { %v4019_v57 = vpop.eup %4018 }
 0xaae   : > { %v2447_v4 = vmul.f32 %v4019_v57, %v4005_v34 }
 0xab0   : > { %v2448_v16 = vpack.c.bf16 %v2447_v4, %v2447_v4 }
 0xab1   : > { %v4021_v59 = vpop.eup %4020 }
 0xab2   : > { %3769 = vmatmul.mubr.msk.bf16.vlgmr.msra.gmra.mxu0 %vm681_vm3, %v2448_v16  ;;  %v2558_v15 = vmul.f32 %v4021_v59, %v4838_v36  ;;  %v4023_v1 = vpop.eup %4022 }
 0xab3   : > { %3779 = vmatpush3.bf16.msra.mxu0 %v2566_v17  ;;  %3780 = vmatprep.mubr.msk.bf16.mxu0 %vm4211_vm1, %v4210_v3  ;;  %v2676_v10 = vmul.f32 %v4023_v1, %v4841_v33 }
 0xab4   : > { %3790 = vmatprep.subr.bf16.mxu0 %v4210_v3  ;;  %v2559_v19 = vpack.c.bf16 %v2558_v15, %v2558_v15 }
 0xab5   : > { %v2677_v20 = vpack.c.bf16 %v2676_v10, %v2676_v10  ;;  %v4025_v24 = vpop.eup %4024 }
 0xab6   : > { %v2794_v32 = vmul.f32 %v4025_v24, %v4847_v39  ;;  %v2861_v24 = vsub.s32 7, %v4455_v11 }
 0xab8   : > { %v2795_v36 = vpack.c.bf16 %v2794_v32, %v2794_v32 }
 0xaba   : > { %3781 = vmatmul.mubr.msk.bf16.vlgmr.msra.gmra.mxu0 %vm681_vm3, %v2559_v19 }
 0xabb   : > { %3791 = vmatpush3.bf16.msra.mxu0 %v2684_v22  ;;  %3792 = vmatprep.mubr.msk.bf16.mxu0 %vm4211_vm1, %v4210_v3 }
 0xabc   : > { %3802 = vmatprep.subr.bf16.mxu0 %v4210_v3 }
 0xac0   : > { %v2024_v27 = vpop.f32.mrf.mxu0 }
 0xac1   : > { %v2030_v30 = vpack.c.bf16 %v2024_v27, %v2024_v27  ;;  %v2862_v27 = vrot.slane %v4804_v38, %v2861_v24 }
 0xac2   : > { %3793 = vmatmul.mubr.msk.bf16.vlgmr.msra.gmra.mxu0 %vm681_vm3, %v2677_v20  ;;  %v3722_v31 = vpop.f32.mrf.mxu0 }
 0xac3   : > { %3803 = vmatpush3.bf16.msra.mxu0 %v2802_v29  ;;  %3804 = vmatprep.mubr.msk.bf16.mxu0 %vm4211_vm1, %v4210_v3  ;;  %2031 = vst.msk [vmem:[#allocation3] sm:$0xf] %vm788_vm6, %v2030_v30 }
 0xac4   : > { %3816 = vmatprep.subr.bf16.mxu0 %v4210_v3  ;;  %v2027_v21 = vpop.f32.mrf.mxu0 }
 0xac6   : > { %v3723_v34 = vpop.f32.mrf.mxu0 }
 0xaca   : > { %3805 = vmatmul.mubr.msk.bf16.vlgmr.msra.gmra.mxu0 %vm681_vm3, %v2795_v36 }
 0xacb   : > { %3820 = vmatprep.mubr.msk.bf16.mxu0 %vm4211_vm1, %v4210_v3 }
 0xb37   : > { %v2139_v28 = vpop.f32.mrf.mxu0 }
 0xb38   : > { %v3458_v33 = vpack.c.bf16 %v2139_v28, %v2139_v28 }
 0xb39   : > { %v3734_v37 = vpop.f32.mrf.mxu0 }
 0xb3a   : > { %2149 = vrot.lane.b32.xlu0 %v3458_v33, %s4216_s25 }
 0xb3b   : > { %v2142_v26 = vpop.f32.mrf.mxu0 }
 0xb3d   : > { %v3735_v40 = vpop.f32.mrf.mxu0 }
 0xb3f   : > { %v2257_v35 = vpop.f32.mrf.mxu0 }
 0xb40   : > { %v3459_v41 = vpack.c.bf16 %v2257_v35, %v2257_v35 }
 0xb41   : > { %v3746_v39 = vpop.f32.mrf.mxu0 }
 0xb42   : > { %2267 = vrot.lane.b32.xlu0 %v3459_v41, %s4217_s24 }
 0xb43   : > { %v2260_v42 = vpop.f32.mrf.mxu0 }
 0xb45   : > { %v3747_v7 = vpop.f32.mrf.mxu0 }
 0xb47   : > { %v2375_v44 = vpop.f32.mrf.mxu0 }
 0xb48   : > { %v3460_v45 = vpack.c.bf16 %v2375_v44, %v2375_v44 }
 0xb49   : > { %v3758_v46 = vpop.f32.mrf.mxu0 }
 0xb4a   : > { %2385 = vrot.lane.b32.xlu0 %v3460_v45, %s4218_s14  ;;  %v3953_v45 = vld [vmem:[%s4410_s12] sm:$0xff]   ;;  %v3954_v46 = vld [vmem:[%s4420_s13 + $0x18] sm:$0xff]  }
 0xb4b   : > { %v2378_v8 = vpop.f32.mrf.mxu0 }
 0xb4d   : > { %v3759_v47 = vpop.f32.mrf.mxu0 }
 0xb72   : > { %v2490_v48 = vpop.f32.mrf.mxu0 }
 0xb73   : > { %v2496_v49 = vpack.c.bf16 %v2490_v48, %v2490_v48 }
 0xb74   : > { %v3770_v50 = vpop.f32.mrf.mxu0 }
 0xb75   : > { %2497 = vst.msk [vmem:[#allocation3 + $0x4] sm:$0xf] %vm788_vm6, %v2496_v49 }
 0xb76   : > { %v2493_v51 = vpop.f32.mrf.mxu0 }
 0xb78   : > { %v3771_v52 = vpop.f32.mrf.mxu0 }
 0xb79   : > { %v2955_v52 = vrot.slane %v4702_v58, %v625_v43  ;;  %v3956_v43 = vld [vmem:[%s4420_s13 + $0x8] sm:$0xff]  }
 0xb7a   : > { %v2602_v53 = vpop.f32.mrf.mxu0 }
 0xb7b   : > { %v3461_v54 = vpack.c.bf16 %v2602_v53, %v2602_v53 }
 0xb7c   : > { %v3782_v55 = vpop.f32.mrf.mxu0 }
 0xb7d   : > { %2612 = vrot.lane.b32.xlu1 %v3461_v54, %s4216_s25  ;;  %v2961_v54 = vrot.slane %v4702_v58, %v1799_v12  ;;  %v3957_v12 = vld [vmem:[%s4420_s13] sm:$0xff]  }
 0xb7e   : > { %v2605_v56 = vpop.f32.mrf.mxu0 }
 0xb80   : > { %v3783_v60 = vpop.f32.mrf.mxu0 }
 0xb82   : > { %v2720_v62 = vpop.f32.mrf.mxu0 }
 0xb83   : > { %v3462_v2 = vpack.c.bf16 %v2720_v62, %v2720_v62 }
 0xb84   : > { %v3794_v57 = vpop.f32.mrf.mxu0 }
 0xb85   : > { %2730 = vrot.lane.b32.xlu1 %v3462_v2, %s4217_s24 }
 0xb86   : > { %v2723_v4 = vpop.f32.mrf.mxu0 }
 0xb87   : > { %v3955_v4 = vld [vmem:[%s4420_s13 + $0x10] sm:$0xff]  }
 0xb88   : > { %v3795_v9 = vpop.f32.mrf.mxu0 }
 0xb89   : > { %v3433_v9 = vld [vmem:[%s460_s7] ss:$0 sm:$0xff] }
 0xb8a   : > { %v2838_v16 = vpop.f32.mrf.mxu0 }
 0xb8b   : > { %v3463_v59 = vpack.c.bf16 %v2838_v16, %v2838_v16 }
 0xb8c   : > { %v3806_v0 = vpop.f32.mrf.mxu0 }
 0xb8d   : > { %2848 = vrot.lane.b32.xlu1 %v3463_v59, %s4218_s14 }
 0xb8e   : > { %v2841_v17 = vpop.f32.mrf.mxu0 }
 0xb90   : > { %v3807_v15 = vpop.f32.mrf.mxu0 }
 0xbac   : > { %v2150_v18 = vpop.permute.xlu0 %2149 }
 0xbad   : > { %2152 = vst.msk [vmem:[#allocation3] sm:$0xf] %vm910_vm7, %v2150_v18 }
 0xbb4   : > { %v2268_v19 = vpop.permute.xlu0 %2267 }
 0xbb5   : > { %2270 = vst.msk [vmem:[#allocation3] sm:$0xf] %vm1029_vm8, %v2268_v19 }
 0xbbc   : > { %v2386_v1 = vpop.permute.xlu0 %2385 }
 0xbbd   : > { %2388 = vst.msk [vmem:[#allocation3] sm:$0xf] %vm1148_vm9, %v2386_v1 }
 0xbef   : > { %v2613_v22 = vpop.permute.xlu1 %2612 }
 0xbf0   : > { %2615 = vst.msk [vmem:[#allocation3 + $0x4] sm:$0xf] %vm910_vm7, %v2613_v22 }
 0xbf7   : > { %v2731_v10 = vpop.permute.xlu1 %2730 }
 0xbf8   : > { %2733 = vst.msk [vmem:[#allocation3 + $0x4] sm:$0xf] %vm1029_vm8, %v2731_v10 }
 0xbff   : > { %v2849_v23 = vpop.permute.xlu1 %2848 }
 0xc00   : > { %2851 = vst.msk [vmem:[#allocation3 + $0x4] sm:$0xf] %vm1148_vm9, %v2849_v23 }
 0xc07   : > { %v3951_v20 = vld [vmem:[#allocation3] sm:$0xff]  }
 0xc08   : > { %3813 = vmatmul.mubr.msk.bf16.vlgmr.msra.gmra.mxu1 %vm509_vm2, %v3951_v20 }
 0xc09   : > { %3832 = vmatprep.mubr.msk.bf16.mxu1 %vm4211_vm1, %v4210_v3  ;;  %3825 = vmatpush3.bf16.msra.mxu1 %v3954_v46  ;;  %v3153_v46 = vrot.slane %v4702_v58, %v1870_v14 }
 0xc0a   : > { %3826 = vmatprep.subr.bf16.mxu1 %v4210_v3 }
 0xc0d   : > { %3827 = vmatpush3.bf16.msra.mxu1 %v3955_v4 }
 0xc0e   : > { %3828 = vmatprep.subr.bf16.mxu1 %v4210_v3 }
 0xc11   : > { %3829 = vmatpush3.bf16.msra.mxu1 %v3956_v43 }
 0xc12   : > { %3830 = vmatprep.subr.bf16.mxu1 %v4210_v3 }
 0xc15   : > { %3831 = vmatpush3.bf16.msra.mxu1 %v3957_v12 }
 0xcc8   : > { %v2917_v29 = vpop.f32.mrf.mxu1 }
 0xcc9   : > { %v2918_v30 = vadd.f32 %v2917_v29, %v2862_v27 }
 0xcca   : > { %v3814_v31 = vpop.f32.mrf.mxu1 }
 0xccb   : > { %v2924_v32 = vadd.f32 %v2918_v30, %v4709_v5 }
 0xccc   : > { %v2920_v21 = vpop.f32.mrf.mxu1 }
 0xccd   : > { %v2921_v34 = vadd.f32 %v2920_v21, %v2862_v27  ;;  %v2926_v36 = vsel %vm509_vm2, %v2924_v32, 0.0 }
 0xcce   : > { %2927 = vadd.xlane.f32.xlu0 %v2926_v36  ;;  %v3815_v28 = vpop.f32.mrf.mxu1 }
 0xccf   : > { %v2925_v33 = vadd.f32 %v2921_v34, %v4711_v6  ;;  %v3952_v6 = vld [vmem:[%s4410_s12 + $0x8] sm:$0xff]  }
 0xcd0   : > { %3817 = vmatpush3.bf16.msra.mxu0 %v3952_v6  ;;  %v3147_v6 = vrot.slane %v4702_v58, %v1622_v25 }
 0xcd1   : > { %v2929_v37 = vsel %vm509_vm2, %v2925_v33, 0.0  ;;  %3818 = vmatprep.subr.bf16.mxu0 %v4210_v3  ;;  %v3046_v3 = vrot.slane %v4702_v58, %v495_v13 }
 0xcd2   : > { %2930 = vadd.xlane.f32.xlu1 %v2929_v37 }
 0xcd4   : > { %3819 = vmatpush3.bf16.msra.mxu0 %v3953_v45 }
 0xd57   : > { %v2928_v26 = vpop.xlane.xlu0 %2927 }
 0xd58   : > { %v2932_v38 = vmul.f32 0.03125, %v2928_v26 }
 0xd5a   : > { %v2934_v40 = vsub.f32 %v2924_v32, %v2932_v38 }
 0xd5b   : > { %v2931_v35 = vpop.xlane.xlu1 %2930 }
 0xd5c   : > { %v2933_v41 = vmul.f32 0.03125, %v2931_v35  ;;  %v2936_v5 = vmul.f32 %v2934_v40, %v2934_v40 }
 0xd5e   : > { %v2935_v39 = vsub.f32 %v2925_v33, %v2933_v41  ;;  %v2938_v42 = vsel %vm509_vm2, %v2936_v5, 0.0 }
 0xd5f   : > { %2939 = vadd.xlane.f32.xlu0 %v2938_v42 }
 0xd60   : > { %v2937_v7 = vmul.f32 %v2935_v39, %v2935_v39 }
 0xd62   : > { %v2941_v44 = vsel %vm509_vm2, %v2937_v7, 0.0 }
 0xd63   : > { %2942 = vadd.xlane.f32.xlu0 %v2941_v44 }
 0xde8   : > { %v2940_v8 = vpop.xlane.xlu0 %2939 }
 0xde9   : > { %v2944_v47 = vmul.f32 0.03125, %v2940_v8 }
 0xdeb   : > { %v2946_v48 = vadd.f32 1e-05, %v2944_v47 }
 0xdec   : > { %v2943_v49 = vpop.xlane.xlu0 %2942 }
 0xded   : > { %4026 = vrsqrt.f32 %v2946_v48  ;;  %v2945_v50 = vmul.f32 0.03125, %v2943_v49 }
 0xdef   : > { %v2947_v51 = vadd.f32 1e-05, %v2945_v50 }
 0xdf1   : > { %4028 = vrsqrt.f32 %v2947_v51 }
 0xdfa   : > { %v4027_v53 = vpop.eup %4026 }
 0xdfb   : > { %v2950_v55 = vmul.f32 %v4027_v53, %v2934_v40 }
 0xdfd   : > { %v2956_v56 = vmul.f32 %v2955_v52, %v2950_v55 }
 0xdfe   : > { %v4029_v60 = vpop.eup %4028 }
 0xdff   : > { %v2951_v61 = vmul.f32 %v4029_v60, %v2935_v39  ;;  %v2962_v62 = vadd.f32 %v2961_v54, %v2956_v56 }
 0xe01   : > { %v2957_v63 = vmul.f32 %v2955_v52, %v2951_v61 }
 0xe03   : > { %v2963_v2 = vadd.f32 %v2961_v54, %v2957_v63 }
 0xe05   : > { %v2964_v57 = vpack.c.bf16 %v2963_v2, %v2962_v62 }
 0xe07   : > { %3821 = vmatmul.mubr.msk.bf16.vlgmr.msra.gmra.mxu0 %vm509_vm2, %v2964_v57 }
 0xec7   : > { %v3025_v16 = vpop.f32.mrf.mxu0 }
 0xec8   : > { %v3026_v0 = vadd.f32 %v3433_v9, %v3025_v16 }
 0xec9   : > { %v3822_v59 = vpop.f32.mrf.mxu0 }
 0xeca   : > { %v3032_v19 = vmax.f32 %v3026_v0, 0.0 }
 0xecb   : > { %v3028_v17 = vpop.f32.mrf.mxu0 }
 0xecc   : > { %v3029_v15 = vadd.f32 %v3433_v9, %v3028_v17 }
 0xecd   : > { %v3823_v18 = vpop.f32.mrf.mxu0 }
 0xece   : > { %v3033_v1 = vmax.f32 %v3029_v15, 0.0 }
 0xed0   : > { %v3034_v22 = vpack.c.bf16 %v3033_v1, %v3032_v19 }
 0xed2   : > { %3833 = vmatmul.mubr.msk.bf16.vlgmr.msra.gmra.mxu1 %vm3071_vm10, %v3034_v22 }
 0xf92   : > { %v3109_v10 = vpop.f32.mrf.mxu1 }
 0xf93   : > { %v3110_v23 = vadd.f32 %v3109_v10, %v3046_v3 }
 0xf94   : > { %v3834_v20 = vpop.f32.mrf.mxu1 }
 0xf95   : > { %v3116_v24 = vadd.f32 %v3110_v23, %v2962_v62 }
 0xf96   : > { %v3112_v27 = vpop.f32.mrf.mxu1 }
 0xf97   : > { %v3113_v29 = vadd.f32 %v3112_v27, %v3046_v3  ;;  %v3118_v30 = vsel %vm509_vm2, %v3116_v24, 0.0 }
 0xf98   : > { %3119 = vadd.xlane.f32.xlu1 %v3118_v30  ;;  %v3835_v31 = vpop.f32.mrf.mxu1 }
 0xf99   : > { %v3117_v32 = vadd.f32 %v3113_v29, %v2963_v2 }
 0xf9b   : > { %v3121_v21 = vsel %vm509_vm2, %v3117_v32, 0.0 }
 0xf9c   : > { %3122 = vadd.xlane.f32.xlu0 %v3121_v21 }
0x1021   : > { %v3120_v34 = vpop.xlane.xlu1 %3119 }
0x1022   : > { %v3124_v36 = vmul.f32 0.03125, %v3120_v34 }
0x1024   : > { %v3126_v28 = vsub.f32 %v3116_v24, %v3124_v36 }
0x1025   : > { %v3123_v33 = vpop.xlane.xlu0 %3122 }
0x1026   : > { %v3125_v37 = vmul.f32 0.03125, %v3123_v33  ;;  %v3128_v13 = vmul.f32 %v3126_v28, %v3126_v28 }
0x1028   : > { %v3127_v26 = vsub.f32 %v3117_v32, %v3125_v37  ;;  %v3130_v38 = vsel %vm509_vm2, %v3128_v13, 0.0 }
0x1029   : > { %3131 = vadd.xlane.f32.xlu1 %v3130_v38 }
0x102a   : > { %v3129_v40 = vmul.f32 %v3127_v26, %v3127_v26 }
0x102c   : > { %v3133_v35 = vsel %vm509_vm2, %v3129_v40, 0.0 }
0x102d   : > { %3134 = vadd.xlane.f32.xlu0 %v3133_v35 }
0x10b2   : > { %v3132_v41 = vpop.xlane.xlu1 %3131 }
0x10b3   : > { %v3136_v5 = vmul.f32 0.03125, %v3132_v41 }
0x10b5   : > { %v3138_v39 = vadd.f32 1e-05, %v3136_v5 }
0x10b6   : > { %v3135_v42 = vpop.xlane.xlu0 %3134 }
0x10b7   : > { %4030 = vrsqrt.f32 %v3138_v39  ;;  %v3137_v7 = vmul.f32 0.03125, %v3135_v42 }
0x10b9   : > { %v3139_v44 = vadd.f32 1e-05, %v3137_v7 }
0x10bb   : > { %4032 = vrsqrt.f32 %v3139_v44 }
0x10c4   : > { %v4031_v45 = vpop.eup %4030 }
0x10c5   : > { %v3142_v8 = vmul.f32 %v4031_v45, %v3126_v28 }
0x10c7   : > { %v3148_v47 = vmul.f32 %v3147_v6, %v3142_v8 }
0x10c8   : > { %v4033_v48 = vpop.eup %4032 }
0x10c9   : > { %v3154_v49 = vadd.f32 %v3153_v46, %v3148_v47  ;;  %v3143_v50 = vmul.f32 %v4033_v48, %v3127_v26 }
0x10cb   : > { %3156 = vst.msk [vmem:[#allocation2] sm:$0xff] %vm509_vm2, %v3154_v49  ;;  %v3149_v51 = vmul.f32 %v3147_v6, %v3143_v50  ;;  %3161 = sbr.rel (%p3442_p12) target bundleno = 4305 (0x10d1), region = 72 }
0x10cd   : > { %v3155_v52 = vadd.f32 %v3153_v46, %v3149_v51 }
0x10cf   : > { %3157 = vst.msk [vmem:[#allocation2 + $0x8] sm:$0xff] %vm509_vm2, %v3155_v52 }
0x10d0   : > { %3162 = vst.msk [vmem:[#allocation10] sm:$0xff] %vm509_vm2, %v3154_v49  ;;  %3163 = vst.msk [vmem:[#allocation10 + $0x8] sm:$0xff] %vm509_vm2, %v3155_v52 }
0x10d1 PF: > { %p3866_p6 = scmp.eq.s32.totalorder %s4295_s11, 1  ;;  %s4219_s18 = smov [#allocation10]  }
0x10d2   : > { %s3173_s12 = sshll.u32 %s4219_s18, 4  ;;  %s3174_s12 = int_to_ptr.vmem [resolvable:$true] %s3173_s12 }
0x10d3   : > { %s4115_s15 = scalar_lea.vmem %s3174_s12, 256  ;;  %p4122_p1 = scmp.lt.s32.totalorder %s3174_s12, %s3174_s12 }
0x10d4   : > { %p4116_p5 = scmp.ne.s32.totalorder %s3174_s12, %s4115_s15  ;;  %p4123_p3 = scmp.lt.s32.totalorder %s4115_s15, %s4115_s15 }
0x10d6   : > { %p4117_p11 = pnand %p4116_p5, %p3866_p6  ;;  %p4124_p2 = por %p4123_p3, %p4122_p1 }
0x10d8   : > { %p4118_p0 = pneg %p4117_p11 }
0x10da   : > { %p4125_p4 = pnand %p4124_p2, %p4118_p0 }
0x10dc   : > { %4128 = shalt.err (!%p4125_p4)
}
0x10dd   : > { %s4220_s30 = smov 128   ;;  %s5026_s7 = sld [smem:[#allocation20_spill]] }
0x10e3   : > { %3847 = dma.vmem_to_hbm [thread:$0]  (%p3866_p6), %s3174_s12, 256, %s5026_s7, [#allocation6], %s4220_s30, %s4220_s30, %s4216_s25  }
0x10e4   : > { %4176 = dma.done.wait (%p3866_p6), [#allocation6], 256  }
0x10e5   : > { %4178 = vsyncadd (%p3866_p6), [#allocation6], 4294967040 }
0x10e6 PF: > { %s21_s10 = sadd.s32 1, %s4201_s10   ;;  %s5027_s27 = smov %s4185_s28 }
0x10e7   : > { %p18_p13 = scmp.ge.s32.totalorder %s21_s10, 4   ;;  %s5028_s28 = smov %s4189_s29 }
0x10e8   : > { %s5029_s29 = smov %s4376_s8  ;;  %s5030_s30 = smov %s4197_s9 }
0x10e9   : > { %s5031_s9 = smov %s5033_s20  ;;  %20 = sbr.rel (!%p18_p13) target bundleno = 12 (0xc), region = 128 }
0x10ee   :  { %3189 = vsyncpa [#allocation5], 1 }
0x10ef   :  { %3191 = vsyncpa [#allocation5 + $0x1], 1 }
0x10f0   :  { %3192 = vsyncpa [#allocation8], 1 }
0x10f1   :  { %3193 = vsyncpa [#allocation6], 1 }
0x10f2   :  { %3195 = vsyncpa [#allocation6 + $0x1], 1 }

</bundles_post_ra>
